<compile_context>
chip_gen: v7x
topology: tpu7x:2x2x1
jax: 0.10.0
libtpu: 0.0.40
codegen_flags: <defaults>
</compile_context>

<pallas_src>
import functools
import math

import jax
import jax.numpy as jnp
from jax.experimental import pallas as pl
from jax.experimental.pallas import tpu as pltpu


# ----------------------------------------------------------------------------
# Small helpers
# ----------------------------------------------------------------------------
def _layernorm(x, gamma, beta, eps):
    mean = jnp.mean(x, axis=-1, keepdims=True)
    var = jnp.mean(jnp.square(x - mean), axis=-1, keepdims=True)
    return (x - mean) * jax.lax.rsqrt(var + eps) * gamma + beta


# ----------------------------------------------------------------------------
# Plain linear kernel (input / output projections)
# ----------------------------------------------------------------------------
def _linear_kernel(x_ref, w_ref, b_ref, o_ref, *, activation):
    x = x_ref[...].astype(w_ref.dtype)
    y = jnp.dot(x, w_ref[...], preferred_element_type=jnp.float32)
    y = y + b_ref[...]
    if activation == "relu":
        y = jnp.maximum(y, 0.0)
    o_ref[...] = y


def pallas_linear(x2d, w, b, activation=None, tile_m=256):
    """x2d: (M, K) f32, w: (K, N) bf16, b: (1, N) f32 -> (M, N) f32."""
    M, K = x2d.shape
    N = w.shape[1]
    tm = M if M <= tile_m else tile_m
    kernel = functools.partial(_linear_kernel, activation=activation)
    return pl.pallas_call(
        kernel,
        grid=(pl.cdiv(M, tm),),
        out_shape=jax.ShapeDtypeStruct((M, N), jnp.float32),
        in_specs=[
            pl.BlockSpec((tm, K), lambda i: (i, 0)),
            pl.BlockSpec((K, N), lambda i: (0, 0)),
            pl.BlockSpec((1, N), lambda i: (0, 0)),
        ],
        out_specs=pl.BlockSpec((tm, N), lambda i: (i, 0)),
        compiler_params=pltpu.CompilerParams(dimension_semantics=("parallel",)),
    )(x2d, w, b)


# ----------------------------------------------------------------------------
# Fused transformer-encoder-layer kernel (one grid step == one batch element)
# ----------------------------------------------------------------------------
def _encoder_layer_kernel(h_ref, wqkv_ref, bqkv_ref, wo_ref, bo_ref,
                          ln1g_ref, ln1b_ref, ff1w_ref, ff1b_ref,
                          ff2w_ref, ff2b_ref, ln2g_ref, ln2b_ref,
                          o_ref, *, nhead, scale, eps):
    h = h_ref[...]                                   # (S, D) f32, VMEM resident
    D = h.shape[-1]
    dh = D // nhead

    # --- self attention (packed QKV, per-head, lane-dense output) ---
    qkv = jnp.dot(h.astype(jnp.bfloat16), wqkv_ref[...],
                  preferred_element_type=jnp.float32) + bqkv_ref[...]   # (S, 3D)
    q = qkv[:, :D] * scale                           # fold 1/sqrt(dh) into q
    k = qkv[:, D:2 * D]
    v = qkv[:, 2 * D:]

    heads = []
    for hh in range(nhead):                          # static unroll, nhead=4
        sl = slice(hh * dh, (hh + 1) * dh)
        qh = q[:, sl].astype(jnp.bfloat16)           # (S, dh)
        kh = k[:, sl].astype(jnp.bfloat16)
        vh = v[:, sl].astype(jnp.bfloat16)
        s = jax.lax.dot_general(qh, kh, (((1,), (1,)), ((), ())),
                                preferred_element_type=jnp.float32)      # (S, S)
        m = jnp.max(s, axis=-1, keepdims=True)
        p = jnp.exp(s - m)
        p = p * pl.reciprocal(jnp.sum(p, axis=-1, keepdims=True), approx=True)
        heads.append(jnp.dot(p.astype(jnp.bfloat16), vh,
                             preferred_element_type=jnp.float32))        # (S, dh)
    attn = jnp.concatenate(heads, axis=-1)           # (S, D) lane-dense
    attn = jnp.dot(attn.astype(jnp.bfloat16), wo_ref[...],
                   preferred_element_type=jnp.float32) + bo_ref[...]
    h1 = _layernorm(h + attn, ln1g_ref[...], ln1b_ref[...], eps)         # norm1

    # --- feed forward (2048-wide intermediate never leaves VMEM) ---
    ff = jnp.dot(h1.astype(jnp.bfloat16), ff1w_ref[...],
                 preferred_element_type=jnp.float32) + ff1b_ref[...]
    ff = jnp.maximum(ff, 0.0)
    ff = jnp.dot(ff.astype(jnp.bfloat16), ff2w_ref[...],
                 preferred_element_type=jnp.float32) + ff2b_ref[...]
    o_ref[...] = _layernorm(h1 + ff, ln2g_ref[...], ln2b_ref[...], eps)  # norm2


def pallas_encoder_layer(h2d, p, *, B, S, nhead, eps=1e-5):
    """h2d: (B*S, D) f32 -> (B*S, D) f32. Whole encoder layer in one launch."""
    M, D = h2d.shape
    assert M == B * S
    scale = 1.0 / math.sqrt(D // nhead)
    kernel = functools.partial(_encoder_layer_kernel,
                               nhead=nhead, scale=scale, eps=eps)

    row_spec = pl.BlockSpec((S, D), lambda b: (b, 0))

    def w_spec(arr):
        return pl.BlockSpec(arr.shape, lambda b: (0, 0))

    args = (h2d,
            p["in_proj_w"], p["in_proj_b"],
            p["out_proj_w"], p["out_proj_b"],
            p["ln1_g"], p["ln1_b"],
            p["ff1_w"], p["ff1_b"],
            p["ff2_w"], p["ff2_b"],
            p["ln2_g"], p["ln2_b"])

    return pl.pallas_call(
        kernel,
        grid=(B,),
        out_shape=jax.ShapeDtypeStruct((M, D), jnp.float32),
        in_specs=[row_spec] + [w_spec(a) for a in args[1:]],
        out_specs=row_spec,
        compiler_params=pltpu.CompilerParams(dimension_semantics=("parallel",)),
    )(*args)


# ----------------------------------------------------------------------------
# Parameter initialization (deterministic, synthetic). Weights in bf16.
# ----------------------------------------------------------------------------
def init_params(key, obs_dim, action_dim, goal_embedding_dim=16, d_model=128,
                nhead=4, num_layers=3, dim_feedforward=2048):
    del nhead  # static config, not stored in the (traced) params pytree
    scale = 0.05

    def dense(k, fan_in, fan_out):
        kw, kb = jax.random.split(k)
        w = (jax.random.normal(kw, (fan_in, fan_out), jnp.float32)
             * scale).astype(jnp.bfloat16)
        b = jax.random.normal(kb, (1, fan_out), jnp.float32) * scale
        return w, b

    keys = jax.random.split(key, 3 + num_layers)
    params = {}
    params["goal_embedding"] = (
        jax.random.normal(keys[0], (4, goal_embedding_dim), jnp.float32) * scale
    )
    params["input_proj_w"], params["input_proj_b"] = dense(
        keys[1], obs_dim + goal_embedding_dim, d_model)
    params["output_proj_w"], params["output_proj_b"] = dense(
        keys[2], d_model, action_dim)

    layers = []
    for li in range(num_layers):
        lk = jax.random.split(keys[3 + li], 4)
        in_w, in_b = dense(lk[0], d_model, 3 * d_model)       # packed QKV proj
        out_w, out_b = dense(lk[1], d_model, d_model)         # attention out proj
        ff1_w, ff1_b = dense(lk[2], d_model, dim_feedforward)
        ff2_w, ff2_b = dense(lk[3], dim_feedforward, d_model)
        layers.append(dict(
            in_proj_w=in_w, in_proj_b=in_b,
            out_proj_w=out_w, out_proj_b=out_b,
            ff1_w=ff1_w, ff1_b=ff1_b,
            ff2_w=ff2_w, ff2_b=ff2_b,
            ln1_g=jnp.ones((1, d_model), jnp.float32),
            ln1_b=jnp.zeros((1, d_model), jnp.float32),
            ln2_g=jnp.ones((1, d_model), jnp.float32),
            ln2_b=jnp.zeros((1, d_model), jnp.float32),
        ))
    params["layers"] = layers
    return params


# ----------------------------------------------------------------------------
# Forward pass (glue in plain JAX, hot paths in Pallas)
# ----------------------------------------------------------------------------
def trajectory_transformer_forward(params, obs, goal_idx, *, nhead=4):
    B, S, _ = obs.shape
    goal_emb = params["goal_embedding"][goal_idx]                   # (B, G)
    goal_emb = jnp.broadcast_to(goal_emb[:, None, :],
                                (B, S, goal_emb.shape[-1]))
    x = jnp.concatenate([obs, goal_emb], axis=-1)                   # (B, S, obs+G)
    h = pallas_linear(x.reshape(B * S, -1),
                      params["input_proj_w"], params["input_proj_b"])
    for layer in params["layers"]:
        h = pallas_encoder_layer(h, layer, B=B, S=S, nhead=nhead)
    out = pallas_linear(h, params["output_proj_w"], params["output_proj_b"])
    return out.reshape(B, S, -1)


# ----------------------------------------------------------------------------
if __name__ == "__main__":
    obs_dim, action_dim = 16, 4
    B, S = 2, 8

    key = jax.random.PRNGKey(0)
    k_params, k_obs, k_goal = jax.random.split(key, 3)

    params = init_params(k_params, obs_dim, action_dim)
    obs = jax.random.normal(k_obs, (B, S, obs_dim), jnp.float32)
    goal_idx = jax.random.randint(k_goal, (B,), 0, 4)

    fwd = jax.jit(trajectory_transformer_forward)
    out = fwd(params, obs, goal_idx)
    jax.block_until_ready(out)

    assert out.shape == (B, S, action_dim), out.shape
    assert out.dtype == jnp.float32
    assert bool(jnp.all(jnp.isfinite(out)))
    print("KERNEL_OK")
</pallas_src>

<mosaic_0001>
module attributes {stable_mosaic.version = 11 : i64} {
  func.func @_linear_kernel(%arg0: i32, %arg1: memref<16x32xf32, #tpu.memory_space<vmem>>, %arg2: memref<32x128xbf16, #tpu.memory_space<vmem>>, %arg3: memref<1x128xf32, #tpu.memory_space<vmem>>, %arg4: memref<16x128xf32, #tpu.memory_space<vmem>>) attributes {dimension_semantics = [#tpu.dimension_semantics<parallel>], iteration_bounds = array<i64: 1>, scalar_prefetch = 0 : i64, scratch_operands = 0 : i64, tpu.core_type = #tpu.core_type<tc>, window_params = [{transform_indices = @transform_0, window_bounds = array<i64: 16, 32>}, {pipeline_mode = #tpu.pipeline_mode<synchronous>, transform_indices = @transform_1, window_bounds = array<i64: 32, 128>}, {pipeline_mode = #tpu.pipeline_mode<synchronous>, transform_indices = @transform_2, window_bounds = array<i64: 1, 128>}, {transform_indices = @transform_3, window_bounds = array<i64: 16, 128>}]} {
    %c0 = arith.constant 0 : index
    %c0_0 = arith.constant 0 : index
    %0 = vector.load %arg1[%c0, %c0_0] : memref<16x32xf32, #tpu.memory_space<vmem>>, vector<16x32xf32>
    %1 = arith.truncf %0 : vector<16x32xf32> to vector<16x32xbf16>
    %c0_1 = arith.constant 0 : index
    %c0_2 = arith.constant 0 : index
    %2 = vector.load %arg2[%c0_1, %c0_2] : memref<32x128xbf16, #tpu.memory_space<vmem>>, vector<32x128xbf16>
    %cst = arith.constant dense<0.000000e+00> : vector<16x128xf32>
    %3 = tpu.matmul %1, %2, %cst {dimension_numbers = #tpu.dot_dimension_numbers<[1], [0], [0], [1], [0, 0, 1, 1], [], []>} : vector<16x32xbf16>, vector<32x128xbf16>, vector<16x128xf32> -> vector<16x128xf32>
    %c0_3 = arith.constant 0 : index
    %c0_4 = arith.constant 0 : index
    %4 = vector.load %arg3[%c0_3, %c0_4] : memref<1x128xf32, #tpu.memory_space<vmem>>, vector<1x128xf32>
    %5 = vector.broadcast %4 : vector<1x128xf32> to vector<16x128xf32>
    %6 = arith.addf %3, %5 : vector<16x128xf32>
    %c0_5 = arith.constant 0 : index
    %c0_6 = arith.constant 0 : index
    %7 = vector.load %arg4[%c0_5, %c0_6] : memref<16x128xf32, #tpu.memory_space<vmem>>, vector<16x128xf32>
    tpu.vector_store %arg4[%c0_5, %c0_6], %6 {strides = array<i32>} : memref<16x128xf32, #tpu.memory_space<vmem>>, vector<16x128xf32>,
    return
  }
  func.func @transform_0(%arg0: i32) -> (i32, i32) {
    %c0_i32 = arith.constant 0 : i32
    %c0_i32_0 = arith.constant 0 : i32
    return %arg0, %c0_i32 : i32, i32
  }
  func.func @transform_1(%arg0: i32) -> (i32, i32) {
    %c0_i32 = arith.constant 0 : i32
    %c0_i32_0 = arith.constant 0 : i32
    %c0_i32_1 = arith.constant 0 : i32
    return %c0_i32, %c0_i32_0 : i32, i32
  }
  func.func @transform_2(%arg0: i32) -> (i32, i32) {
    %c0_i32 = arith.constant 0 : i32
    %c0_i32_0 = arith.constant 0 : i32
    %c0_i32_1 = arith.constant 0 : i32
    return %c0_i32, %c0_i32_0 : i32, i32
  }
  func.func @transform_3(%arg0: i32) -> (i32, i32) {
    %c0_i32 = arith.constant 0 : i32
    %c0_i32_0 = arith.constant 0 : i32
    return %arg0, %c0_i32 : i32, i32
  }
}

module attributes {stable_mosaic.version = 11 : i64} {
  func.func @_encoder_layer_kernel(%arg0: i32, %arg1: memref<8x128xf32, #tpu.memory_space<vmem>>, %arg2: memref<128x384xbf16, #tpu.memory_space<vmem>>, %arg3: memref<1x384xf32, #tpu.memory_space<vmem>>, %arg4: memref<128x128xbf16, #tpu.memory_space<vmem>>, %arg5: memref<1x128xf32, #tpu.memory_space<vmem>>, %arg6: memref<1x128xf32, #tpu.memory_space<vmem>>, %arg7: memref<1x128xf32, #tpu.memory_space<vmem>>, %arg8: memref<128x2048xbf16, #tpu.memory_space<vmem>>, %arg9: memref<1x2048xf32, #tpu.memory_space<vmem>>, %arg10: memref<2048x128xbf16, #tpu.memory_space<vmem>>, %arg11: memref<1x128xf32, #tpu.memory_space<vmem>>, %arg12: memref<1x128xf32, #tpu.memory_space<vmem>>, %arg13: memref<1x128xf32, #tpu.memory_space<vmem>>, %arg14: memref<8x128xf32, #tpu.memory_space<vmem>>) attributes {dimension_semantics = [#tpu.dimension_semantics<parallel>], iteration_bounds = array<i64: 2>, scalar_prefetch = 0 : i64, scratch_operands = 0 : i64, tpu.core_type = #tpu.core_type<tc>, window_params = [{transform_indices = @transform_0, window_bounds = array<i64: 8, 128>}, {pipeline_mode = #tpu.pipeline_mode<synchronous>, transform_indices = @transform_1, window_bounds = array<i64: 128, 384>}, {pipeline_mode = #tpu.pipeline_mode<synchronous>, transform_indices = @transform_2, window_bounds = array<i64: 1, 384>}, {pipeline_mode = #tpu.pipeline_mode<synchronous>, transform_indices = @transform_3, window_bounds = array<i64: 128, 128>}, {pipeline_mode = #tpu.pipeline_mode<synchronous>, transform_indices = @transform_4, window_bounds = array<i64: 1, 128>}, {pipeline_mode = #tpu.pipeline_mode<synchronous>, transform_indices = @transform_5, window_bounds = array<i64: 1, 128>}, {pipeline_mode = #tpu.pipeline_mode<synchronous>, transform_indices = @transform_6, window_bounds = array<i64: 1, 128>}, {pipeline_mode = #tpu.pipeline_mode<synchronous>, transform_indices = @transform_7, window_bounds = array<i64: 128, 2048>}, {pipeline_mode = #tpu.pipeline_mode<synchronous>, transform_indices = @transform_8, window_bounds = array<i64: 1, 2048>}, {pipeline_mode = #tpu.pipeline_mode<synchronous>, transform_indices = @transform_9, window_bounds = array<i64: 2048, 128>}, {pipeline_mode = #tpu.pipeline_mode<synchronous>, transform_indices = @transform_10, window_bounds = array<i64: 1, 128>}, {pipeline_mode = #tpu.pipeline_mode<synchronous>, transform_indices = @transform_11, window_bounds = array<i64: 1, 128>}, {pipeline_mode = #tpu.pipeline_mode<synchronous>, transform_indices = @transform_12, window_bounds = array<i64: 1, 128>}, {transform_indices = @transform_13, window_bounds = array<i64: 8, 128>}]} {
    %c0 = arith.constant 0 : index
    %c0_0 = arith.constant 0 : index
    %0 = vector.load %arg1[%c0, %c0_0] : memref<8x128xf32, #tpu.memory_space<vmem>>, vector<8x128xf32>
    %1 = arith.truncf %0 : vector<8x128xf32> to vector<8x128xbf16>
    %c0_1 = arith.constant 0 : index
    %c0_2 = arith.constant 0 : index
    %2 = vector.load %arg2[%c0_1, %c0_2] : memref<128x384xbf16, #tpu.memory_space<vmem>>, vector<128x384xbf16>
    %cst = arith.constant dense<0.000000e+00> : vector<8x384xf32>
    %3 = tpu.matmul %1, %2, %cst {dimension_numbers = #tpu.dot_dimension_numbers<[1], [0], [0], [1], [0, 0, 1, 1], [], []>} : vector<8x128xbf16>, vector<128x384xbf16>, vector<8x384xf32> -> vector<8x384xf32>
    %c0_3 = arith.constant 0 : index
    %c0_4 = arith.constant 0 : index
    %4 = vector.load %arg3[%c0_3, %c0_4] : memref<1x384xf32, #tpu.memory_space<vmem>>, vector<1x384xf32>
    %5 = vector.broadcast %4 : vector<1x384xf32> to vector<8x384xf32>
    %6 = arith.addf %3, %5 : vector<8x384xf32>
    %7 = vector.extract_strided_slice %6 {offsets = [0, 0], sizes = [8, 128], strides = [1, 1]} : vector<8x384xf32> to vector<8x128xf32>
    %cst_5 = arith.constant 0.176776692 : f32
    %8 = vector.broadcast %cst_5 : f32 to vector<8x128xf32>
    %9 = arith.mulf %7, %8 : vector<8x128xf32>
    %10 = vector.extract_strided_slice %6 {offsets = [0, 128], sizes = [8, 128], strides = [1, 1]} : vector<8x384xf32> to vector<8x128xf32>
    %11 = vector.extract_strided_slice %6 {offsets = [0, 256], sizes = [8, 128], strides = [1, 1]} : vector<8x384xf32> to vector<8x128xf32>
    %12 = vector.extract_strided_slice %9 {offsets = [0, 0], sizes = [8, 32], strides = [1, 1]} : vector<8x128xf32> to vector<8x32xf32>
    %13 = arith.truncf %12 : vector<8x32xf32> to vector<8x32xbf16>
    %14 = vector.extract_strided_slice %10 {offsets = [0, 0], sizes = [8, 32], strides = [1, 1]} : vector<8x128xf32> to vector<8x32xf32>
    %15 = arith.truncf %14 : vector<8x32xf32> to vector<8x32xbf16>
    %16 = vector.extract_strided_slice %11 {offsets = [0, 0], sizes = [8, 32], strides = [1, 1]} : vector<8x128xf32> to vector<8x32xf32>
    %17 = arith.truncf %16 : vector<8x32xf32> to vector<8x32xbf16>
    %cst_6 = arith.constant dense<0.000000e+00> : vector<8x8xf32>
    %18 = tpu.matmul %13, %15, %cst_6 {dimension_numbers = #tpu.dot_dimension_numbers<[1], [1], [0], [0], [0, 0, 1, 0], [], []>} : vector<8x32xbf16>, vector<8x32xbf16>, vector<8x8xf32> -> vector<8x8xf32>
    %cst_7 = arith.constant dense<0xFF800000> : vector<8xf32>
    %19 = vector.multi_reduction <maximumf>, %18, %cst_7 [1] : vector<8x8xf32> to vector<8xf32>
    %20 = vector.shape_cast %19 : vector<8xf32> to vector<8x1xf32>
    %21 = vector.broadcast %20 : vector<8x1xf32> to vector<8x8xf32>
    %22 = arith.subf %18, %21 : vector<8x8xf32>
    %23 = math.exp %22 : vector<8x8xf32>
    %cst_8 = arith.constant dense<0.000000e+00> : vector<8xf32>
    %24 = vector.multi_reduction <add>, %23, %cst_8 [1] : vector<8x8xf32> to vector<8xf32>
    %25 = vector.shape_cast %24 : vector<8xf32> to vector<8x1xf32>
    %26 = tpu.reciprocal %25 {approx = true} : vector<8x1xf32> -> vector<8x1xf32>
    %27 = vector.broadcast %26 : vector<8x1xf32> to vector<8x8xf32>
    %28 = arith.mulf %23, %27 : vector<8x8xf32>
    %29 = arith.truncf %28 : vector<8x8xf32> to vector<8x8xbf16>
    %cst_9 = arith.constant dense<0.000000e+00> : vector<8x32xf32>
    %30 = tpu.matmul %29, %17, %cst_9 {dimension_numbers = #tpu.dot_dimension_numbers<[1], [0], [0], [1], [0, 0, 1, 1], [], []>} : vector<8x8xbf16>, vector<8x32xbf16>, vector<8x32xf32> -> vector<8x32xf32>
    %31 = vector.extract_strided_slice %9 {offsets = [0, 32], sizes = [8, 32], strides = [1, 1]} : vector<8x128xf32> to vector<8x32xf32>
    %32 = arith.truncf %31 : vector<8x32xf32> to vector<8x32xbf16>
    %33 = vector.extract_strided_slice %10 {offsets = [0, 32], sizes = [8, 32], strides = [1, 1]} : vector<8x128xf32> to vector<8x32xf32>
    %34 = arith.truncf %33 : vector<8x32xf32> to vector<8x32xbf16>
    %35 = vector.extract_strided_slice %11 {offsets = [0, 32], sizes = [8, 32], strides = [1, 1]} : vector<8x128xf32> to vector<8x32xf32>
    %36 = arith.truncf %35 : vector<8x32xf32> to vector<8x32xbf16>
    %cst_10 = arith.constant dense<0.000000e+00> : vector<8x8xf32>
    %37 = tpu.matmul %32, %34, %cst_10 {dimension_numbers = #tpu.dot_dimension_numbers<[1], [1], [0], [0], [0, 0, 1, 0], [], []>} : vector<8x32xbf16>, vector<8x32xbf16>, vector<8x8xf32> -> vector<8x8xf32>
    %cst_11 = arith.constant dense<0xFF800000> : vector<8xf32>
    %38 = vector.multi_reduction <maximumf>, %37, %cst_11 [1] : vector<8x8xf32> to vector<8xf32>
    %39 = vector.shape_cast %38 : vector<8xf32> to vector<8x1xf32>
    %40 = vector.broadcast %39 : vector<8x1xf32> to vector<8x8xf32>
    %41 = arith.subf %37, %40 : vector<8x8xf32>
    %42 = math.exp %41 : vector<8x8xf32>
    %cst_12 = arith.constant dense<0.000000e+00> : vector<8xf32>
    %43 = vector.multi_reduction <add>, %42, %cst_12 [1] : vector<8x8xf32> to vector<8xf32>
    %44 = vector.shape_cast %43 : vector<8xf32> to vector<8x1xf32>
    %45 = tpu.reciprocal %44 {approx = true} : vector<8x1xf32> -> vector<8x1xf32>
    %46 = vector.broadcast %45 : vector<8x1xf32> to vector<8x8xf32>
    %47 = arith.mulf %42, %46 : vector<8x8xf32>
    %48 = arith.truncf %47 : vector<8x8xf32> to vector<8x8xbf16>
    %cst_13 = arith.constant dense<0.000000e+00> : vector<8x32xf32>
    %49 = tpu.matmul %48, %36, %cst_13 {dimension_numbers = #tpu.dot_dimension_numbers<[1], [0], [0], [1], [0, 0, 1, 1], [], []>} : vector<8x8xbf16>, vector<8x32xbf16>, vector<8x32xf32> -> vector<8x32xf32>
    %50 = vector.extract_strided_slice %9 {offsets = [0, 64], sizes = [8, 32], strides = [1, 1]} : vector<8x128xf32> to vector<8x32xf32>
    %51 = arith.truncf %50 : vector<8x32xf32> to vector<8x32xbf16>
    %52 = vector.extract_strided_slice %10 {offsets = [0, 64], sizes = [8, 32], strides = [1, 1]} : vector<8x128xf32> to vector<8x32xf32>
    %53 = arith.truncf %52 : vector<8x32xf32> to vector<8x32xbf16>
    %54 = vector.extract_strided_slice %11 {offsets = [0, 64], sizes = [8, 32], strides = [1, 1]} : vector<8x128xf32> to vector<8x32xf32>
    %55 = arith.truncf %54 : vector<8x32xf32> to vector<8x32xbf16>
    %cst_14 = arith.constant dense<0.000000e+00> : vector<8x8xf32>
    %56 = tpu.matmul %51, %53, %cst_14 {dimension_numbers = #tpu.dot_dimension_numbers<[1], [1], [0], [0], [0, 0, 1, 0], [], []>} : vector<8x32xbf16>, vector<8x32xbf16>, vector<8x8xf32> -> vector<8x8xf32>
    %cst_15 = arith.constant dense<0xFF800000> : vector<8xf32>
    %57 = vector.multi_reduction <maximumf>, %56, %cst_15 [1] : vector<8x8xf32> to vector<8xf32>
    %58 = vector.shape_cast %57 : vector<8xf32> to vector<8x1xf32>
    %59 = vector.broadcast %58 : vector<8x1xf32> to vector<8x8xf32>
    %60 = arith.subf %56, %59 : vector<8x8xf32>
    %61 = math.exp %60 : vector<8x8xf32>
    %cst_16 = arith.constant dense<0.000000e+00> : vector<8xf32>
    %62 = vector.multi_reduction <add>, %61, %cst_16 [1] : vector<8x8xf32> to vector<8xf32>
    %63 = vector.shape_cast %62 : vector<8xf32> to vector<8x1xf32>
    %64 = tpu.reciprocal %63 {approx = true} : vector<8x1xf32> -> vector<8x1xf32>
    %65 = vector.broadcast %64 : vector<8x1xf32> to vector<8x8xf32>
    %66 = arith.mulf %61, %65 : vector<8x8xf32>
    %67 = arith.truncf %66 : vector<8x8xf32> to vector<8x8xbf16>
    %cst_17 = arith.constant dense<0.000000e+00> : vector<8x32xf32>
    %68 = tpu.matmul %67, %55, %cst_17 {dimension_numbers = #tpu.dot_dimension_numbers<[1], [0], [0], [1], [0, 0, 1, 1], [], []>} : vector<8x8xbf16>, vector<8x32xbf16>, vector<8x32xf32> -> vector<8x32xf32>
    %69 = vector.extract_strided_slice %9 {offsets = [0, 96], sizes = [8, 32], strides = [1, 1]} : vector<8x128xf32> to vector<8x32xf32>
    %70 = arith.truncf %69 : vector<8x32xf32> to vector<8x32xbf16>
    %71 = vector.extract_strided_slice %10 {offsets = [0, 96], sizes = [8, 32], strides = [1, 1]} : vector<8x128xf32> to vector<8x32xf32>
    %72 = arith.truncf %71 : vector<8x32xf32> to vector<8x32xbf16>
    %73 = vector.extract_strided_slice %11 {offsets = [0, 96], sizes = [8, 32], strides = [1, 1]} : vector<8x128xf32> to vector<8x32xf32>
    %74 = arith.truncf %73 : vector<8x32xf32> to vector<8x32xbf16>
    %cst_18 = arith.constant dense<0.000000e+00> : vector<8x8xf32>
    %75 = tpu.matmul %70, %72, %cst_18 {dimension_numbers = #tpu.dot_dimension_numbers<[1], [1], [0], [0], [0, 0, 1, 0], [], []>} : vector<8x32xbf16>, vector<8x32xbf16>, vector<8x8xf32> -> vector<8x8xf32>
    %cst_19 = arith.constant dense<0xFF800000> : vector<8xf32>
    %76 = vector.multi_reduction <maximumf>, %75, %cst_19 [1] : vector<8x8xf32> to vector<8xf32>
    %77 = vector.shape_cast %76 : vector<8xf32> to vector<8x1xf32>
    %78 = vector.broadcast %77 : vector<8x1xf32> to vector<8x8xf32>
    %79 = arith.subf %75, %78 : vector<8x8xf32>
    %80 = math.exp %79 : vector<8x8xf32>
    %cst_20 = arith.constant dense<0.000000e+00> : vector<8xf32>
    %81 = vector.multi_reduction <add>, %80, %cst_20 [1] : vector<8x8xf32> to vector<8xf32>
    %82 = vector.shape_cast %81 : vector<8xf32> to vector<8x1xf32>
    %83 = tpu.reciprocal %82 {approx = true} : vector<8x1xf32> -> vector<8x1xf32>
    %84 = vector.broadcast %83 : vector<8x1xf32> to vector<8x8xf32>
    %85 = arith.mulf %80, %84 : vector<8x8xf32>
    %86 = arith.truncf %85 : vector<8x8xf32> to vector<8x8xbf16>
    %cst_21 = arith.constant dense<0.000000e+00> : vector<8x32xf32>
    %87 = tpu.matmul %86, %74, %cst_21 {dimension_numbers = #tpu.dot_dimension_numbers<[1], [0], [0], [1], [0, 0, 1, 1], [], []>} : vector<8x8xbf16>, vector<8x32xbf16>, vector<8x32xf32> -> vector<8x32xf32>
    %88 = tpu.concatenate %30, %49, %68, %87 in 1 : vector<8x32xf32>, vector<8x32xf32>, vector<8x32xf32>, vector<8x32xf32> -> vector<8x128xf32>
    %89 = arith.truncf %88 : vector<8x128xf32> to vector<8x128xbf16>
    %c0_22 = arith.constant 0 : index
    %c0_23 = arith.constant 0 : index
    %90 = vector.load %arg4[%c0_22, %c0_23] : memref<128x128xbf16, #tpu.memory_space<vmem>>, vector<128x128xbf16>
    %cst_24 = arith.constant dense<0.000000e+00> : vector<8x128xf32>
    %91 = tpu.matmul %89, %90, %cst_24 {dimension_numbers = #tpu.dot_dimension_numbers<[1], [0], [0], [1], [0, 0, 1, 1], [], []>} : vector<8x128xbf16>, vector<128x128xbf16>, vector<8x128xf32> -> vector<8x128xf32>
    %c0_25 = arith.constant 0 : index
    %c0_26 = arith.constant 0 : index
    %92 = vector.load %arg5[%c0_25, %c0_26] : memref<1x128xf32, #tpu.memory_space<vmem>>, vector<1x128xf32>
    %93 = vector.broadcast %92 : vector<1x128xf32> to vector<8x128xf32>
    %94 = arith.addf %91, %93 : vector<8x128xf32>
    %95 = arith.addf %0, %94 : vector<8x128xf32>
    %c0_27 = arith.constant 0 : index
    %c0_28 = arith.constant 0 : index
    %96 = vector.load %arg6[%c0_27, %c0_28] : memref<1x128xf32, #tpu.memory_space<vmem>>, vector<1x128xf32>
    %c0_29 = arith.constant 0 : index
    %c0_30 = arith.constant 0 : index
    %97 = vector.load %arg7[%c0_29, %c0_30] : memref<1x128xf32, #tpu.memory_space<vmem>>, vector<1x128xf32>
    %cst_31 = arith.constant dense<0.000000e+00> : vector<8xf32>
    %98 = vector.multi_reduction <add>, %95, %cst_31 [1] : vector<8x128xf32> to vector<8xf32>
    %99 = vector.shape_cast %98 : vector<8xf32> to vector<8x1xf32>
    %cst_32 = arith.constant 1.280000e+02 : f32
    %100 = vector.broadcast %cst_32 : f32 to vector<8x1xf32>
    %101 = arith.divf %99, %100 : vector<8x1xf32>
    %102 = vector.broadcast %101 : vector<8x1xf32> to vector<8x128xf32>
    %103 = arith.subf %95, %102 : vector<8x128xf32>
    %104 = arith.mulf %103, %103 : vector<8x128xf32>
    %cst_33 = arith.constant dense<0.000000e+00> : vector<8xf32>
    %105 = vector.multi_reduction <add>, %104, %cst_33 [1] : vector<8x128xf32> to vector<8xf32>
    %106 = vector.shape_cast %105 : vector<8xf32> to vector<8x1xf32>
    %cst_34 = arith.constant 1.280000e+02 : f32
    %107 = vector.broadcast %cst_34 : f32 to vector<8x1xf32>
    %108 = arith.divf %106, %107 : vector<8x1xf32>
    %109 = vector.broadcast %101 : vector<8x1xf32> to vector<8x128xf32>
    %110 = arith.subf %95, %109 : vector<8x128xf32>
    %cst_35 = arith.constant 9.99999974E-6 : f32
    %111 = vector.broadcast %cst_35 : f32 to vector<8x1xf32>
    %112 = arith.addf %108, %111 : vector<8x1xf32>
    %113 = math.rsqrt %112 : vector<8x1xf32>
    %114 = vector.broadcast %113 : vector<8x1xf32> to vector<8x128xf32>
    %115 = arith.mulf %110, %114 : vector<8x128xf32>
    %116 = vector.broadcast %96 : vector<1x128xf32> to vector<8x128xf32>
    %117 = arith.mulf %115, %116 : vector<8x128xf32>
    %118 = vector.broadcast %97 : vector<1x128xf32> to vector<8x128xf32>
    %119 = arith.addf %117, %118 : vector<8x128xf32>
    %120 = arith.truncf %119 : vector<8x128xf32> to vector<8x128xbf16>
    %c0_36 = arith.constant 0 : index
    %c0_37 = arith.constant 0 : index
    %121 = vector.load %arg8[%c0_36, %c0_37] : memref<128x2048xbf16, #tpu.memory_space<vmem>>, vector<128x2048xbf16>
    %cst_38 = arith.constant dense<0.000000e+00> : vector<8x2048xf32>
    %122 = tpu.matmul %120, %121, %cst_38 {dimension_numbers = #tpu.dot_dimension_numbers<[1], [0], [0], [1], [0, 0, 1, 1], [], []>} : vector<8x128xbf16>, vector<128x2048xbf16>, vector<8x2048xf32> -> vector<8x2048xf32>
    %c0_39 = arith.constant 0 : index
    %c0_40 = arith.constant 0 : index
    %123 = vector.load %arg9[%c0_39, %c0_40] : memref<1x2048xf32, #tpu.memory_space<vmem>>, vector<1x2048xf32>
    %124 = vector.broadcast %123 : vector<1x2048xf32> to vector<8x2048xf32>
    %125 = arith.addf %122, %124 : vector<8x2048xf32>
    %cst_41 = arith.constant 0.000000e+00 : f32
    %126 = vector.broadcast %cst_41 : f32 to vector<8x2048xf32>
    %127 = arith.maximumf %125, %126 : vector<8x2048xf32>
    %128 = arith.truncf %127 : vector<8x2048xf32> to vector<8x2048xbf16>
    %c0_42 = arith.constant 0 : index
    %c0_43 = arith.constant 0 : index
    %129 = vector.load %arg10[%c0_42, %c0_43] : memref<2048x128xbf16, #tpu.memory_space<vmem>>, vector<2048x128xbf16>
    %cst_44 = arith.constant dense<0.000000e+00> : vector<8x128xf32>
    %130 = tpu.matmul %128, %129, %cst_44 {dimension_numbers = #tpu.dot_dimension_numbers<[1], [0], [0], [1], [0, 0, 1, 1], [], []>} : vector<8x2048xbf16>, vector<2048x128xbf16>, vector<8x128xf32> -> vector<8x128xf32>
    %c0_45 = arith.constant 0 : index
    %c0_46 = arith.constant 0 : index
    %131 = vector.load %arg11[%c0_45, %c0_46] : memref<1x128xf32, #tpu.memory_space<vmem>>, vector<1x128xf32>
    %132 = vector.broadcast %131 : vector<1x128xf32> to vector<8x128xf32>
    %133 = arith.addf %130, %132 : vector<8x128xf32>
    %134 = arith.addf %119, %133 : vector<8x128xf32>
    %c0_47 = arith.constant 0 : index
    %c0_48 = arith.constant 0 : index
    %135 = vector.load %arg12[%c0_47, %c0_48] : memref<1x128xf32, #tpu.memory_space<vmem>>, vector<1x128xf32>
    %c0_49 = arith.constant 0 : index
    %c0_50 = arith.constant 0 : index
    %136 = vector.load %arg13[%c0_49, %c0_50] : memref<1x128xf32, #tpu.memory_space<vmem>>, vector<1x128xf32>
    %cst_51 = arith.constant dense<0.000000e+00> : vector<8xf32>
    %137 = vector.multi_reduction <add>, %134, %cst_51 [1] : vector<8x128xf32> to vector<8xf32>
    %138 = vector.shape_cast %137 : vector<8xf32> to vector<8x1xf32>
    %cst_52 = arith.constant 1.280000e+02 : f32
    %139 = vector.broadcast %cst_52 : f32 to vector<8x1xf32>
    %140 = arith.divf %138, %139 : vector<8x1xf32>
    %141 = vector.broadcast %140 : vector<8x1xf32> to vector<8x128xf32>
    %142 = arith.subf %134, %141 : vector<8x128xf32>
    %143 = arith.mulf %142, %142 : vector<8x128xf32>
    %cst_53 = arith.constant dense<0.000000e+00> : vector<8xf32>
    %144 = vector.multi_reduction <add>, %143, %cst_53 [1] : vector<8x128xf32> to vector<8xf32>
    %145 = vector.shape_cast %144 : vector<8xf32> to vector<8x1xf32>
    %cst_54 = arith.constant 1.280000e+02 : f32
    %146 = vector.broadcast %cst_54 : f32 to vector<8x1xf32>
    %147 = arith.divf %145, %146 : vector<8x1xf32>
    %148 = vector.broadcast %140 : vector<8x1xf32> to vector<8x128xf32>
    %149 = arith.subf %134, %148 : vector<8x128xf32>
    %cst_55 = arith.constant 9.99999974E-6 : f32
    %150 = vector.broadcast %cst_55 : f32 to vector<8x1xf32>
    %151 = arith.addf %147, %150 : vector<8x1xf32>
    %152 = math.rsqrt %151 : vector<8x1xf32>
    %153 = vector.broadcast %152 : vector<8x1xf32> to vector<8x128xf32>
    %154 = arith.mulf %149, %153 : vector<8x128xf32>
    %155 = vector.broadcast %135 : vector<1x128xf32> to vector<8x128xf32>
    %156 = arith.mulf %154, %155 : vector<8x128xf32>
    %157 = vector.broadcast %136 : vector<1x128xf32> to vector<8x128xf32>
    %158 = arith.addf %156, %157 : vector<8x128xf32>
    %c0_56 = arith.constant 0 : index
    %c0_57 = arith.constant 0 : index
    %159 = vector.load %arg14[%c0_56, %c0_57] : memref<8x128xf32, #tpu.memory_space<vmem>>, vector<8x128xf32>
    tpu.vector_store %arg14[%c0_56, %c0_57], %158 {strides = array<i32>} : memref<8x128xf32, #tpu.memory_space<vmem>>, vector<8x128xf32>,
    return
  }
  func.func @transform_0(%arg0: i32) -> (i32, i32) {
    %c0_i32 = arith.constant 0 : i32
    %c0_i32_0 = arith.constant 0 : i32
    return %arg0, %c0_i32 : i32, i32
  }
  func.func @transform_1(%arg0: i32) -> (i32, i32) {
    %c0_i32 = arith.constant 0 : i32
    %c0_i32_0 = arith.constant 0 : i32
    %c0_i32_1 = arith.constant 0 : i32
    return %c0_i32, %c0_i32_0 : i32, i32
  }
  func.func @transform_2(%arg0: i32) -> (i32, i32) {
    %c0_i32 = arith.constant 0 : i32
    %c0_i32_0 = arith.constant 0 : i32
    %c0_i32_1 = arith.constant 0 : i32
    return %c0_i32, %c0_i32_0 : i32, i32
  }
  func.func @transform_3(%arg0: i32) -> (i32, i32) {
    %c0_i32 = arith.constant 0 : i32
    %c0_i32_0 = arith.constant 0 : i32
    %c0_i32_1 = arith.constant 0 : i32
    return %c0_i32, %c0_i32_0 : i32, i32
  }
  func.func @transform_4(%arg0: i32) -> (i32, i32) {
    %c0_i32 = arith.constant 0 : i32
    %c0_i32_0 = arith.constant 0 : i32
    %c0_i32_1 = arith.constant 0 : i32
    return %c0_i32, %c0_i32_0 : i32, i32
  }
  func.func @transform_5(%arg0: i32) -> (i32, i32) {
    %c0_i32 = arith.constant 0 : i32
    %c0_i32_0 = arith.constant 0 : i32
    %c0_i32_1 = arith.constant 0 : i32
    return %c0_i32, %c0_i32_0 : i32, i32
  }
  func.func @transform_6(%arg0: i32) -> (i32, i32) {
    %c0_i32 = arith.constant 0 : i32
    %c0_i32_0 = arith.constant 0 : i32
    %c0_i32_1 = arith.constant 0 : i32
    return %c0_i32, %c0_i32_0 : i32, i32
  }
  func.func @transform_7(%arg0: i32) -> (i32, i32) {
    %c0_i32 = arith.constant 0 : i32
    %c0_i32_0 = arith.constant 0 : i32
    %c0_i32_1 = arith.constant 0 : i32
    return %c0_i32, %c0_i32_0 : i32, i32
  }
  func.func @transform_8(%arg0: i32) -> (i32, i32) {
    %c0_i32 = arith.constant 0 : i32
    %c0_i32_0 = arith.constant 0 : i32
    %c0_i32_1 = arith.constant 0 : i32
    return %c0_i32, %c0_i32_0 : i32, i32
  }
  func.func @transform_9(%arg0: i32) -> (i32, i32) {
    %c0_i32 = arith.constant 0 : i32
    %c0_i32_0 = arith.constant 0 : i32
    %c0_i32_1 = arith.constant 0 : i32
    return %c0_i32, %c0_i32_0 : i32, i32
  }
  func.func @transform_10(%arg0: i32) -> (i32, i32) {
    %c0_i32 = arith.constant 0 : i32
    %c0_i32_0 = arith.constant 0 : i32
    %c0_i32_1 = arith.constant 0 : i32
    return %c0_i32, %c0_i32_0 : i32, i32
  }
  func.func @transform_11(%arg0: i32) -> (i32, i32) {
    %c0_i32 = arith.constant 0 : i32
    %c0_i32_0 = arith.constant 0 : i32
    %c0_i32_1 = arith.constant 0 : i32
    return %c0_i32, %c0_i32_0 : i32, i32
  }
  func.func @transform_12(%arg0: i32) -> (i32, i32) {
    %c0_i32 = arith.constant 0 : i32
    %c0_i32_0 = arith.constant 0 : i32
    %c0_i32_1 = arith.constant 0 : i32
    return %c0_i32, %c0_i32_0 : i32, i32
  }
  func.func @transform_13(%arg0: i32) -> (i32, i32) {
    %c0_i32 = arith.constant 0 : i32
    %c0_i32_0 = arith.constant 0 : i32
    return %arg0, %c0_i32 : i32, i32
  }
}

module attributes {stable_mosaic.version = 11 : i64} {
  func.func @_linear_kernel(%arg0: i32, %arg1: memref<16x128xf32, #tpu.memory_space<vmem>>, %arg2: memref<128x4xbf16, #tpu.memory_space<vmem>>, %arg3: memref<1x4xf32, #tpu.memory_space<vmem>>, %arg4: memref<16x4xf32, #tpu.memory_space<vmem>>) attributes {dimension_semantics = [#tpu.dimension_semantics<parallel>], iteration_bounds = array<i64: 1>, scalar_prefetch = 0 : i64, scratch_operands = 0 : i64, tpu.core_type = #tpu.core_type<tc>, window_params = [{transform_indices = @transform_0, window_bounds = array<i64: 16, 128>}, {pipeline_mode = #tpu.pipeline_mode<synchronous>, transform_indices = @transform_1, window_bounds = array<i64: 128, 4>}, {pipeline_mode = #tpu.pipeline_mode<synchronous>, transform_indices = @transform_2, window_bounds = array<i64: 1, 4>}, {transform_indices = @transform_3, window_bounds = array<i64: 16, 4>}]} {
    %c0 = arith.constant 0 : index
    %c0_0 = arith.constant 0 : index
    %0 = vector.load %arg1[%c0, %c0_0] : memref<16x128xf32, #tpu.memory_space<vmem>>, vector<16x128xf32>
    %1 = arith.truncf %0 : vector<16x128xf32> to vector<16x128xbf16>
    %c0_1 = arith.constant 0 : index
    %c0_2 = arith.constant 0 : index
    %2 = vector.load %arg2[%c0_1, %c0_2] : memref<128x4xbf16, #tpu.memory_space<vmem>>, vector<128x4xbf16>
    %cst = arith.constant dense<0.000000e+00> : vector<16x4xf32>
    %3 = tpu.matmul %1, %2, %cst {dimension_numbers = #tpu.dot_dimension_numbers<[1], [0], [0], [1], [0, 0, 1, 1], [], []>} : vector<16x128xbf16>, vector<128x4xbf16>, vector<16x4xf32> -> vector<16x4xf32>
    %c0_3 = arith.constant 0 : index
    %c0_4 = arith.constant 0 : index
    %4 = vector.load %arg3[%c0_3, %c0_4] : memref<1x4xf32, #tpu.memory_space<vmem>>, vector<1x4xf32>
    %5 = vector.broadcast %4 : vector<1x4xf32> to vector<16x4xf32>
    %6 = arith.addf %3, %5 : vector<16x4xf32>
    %c0_5 = arith.constant 0 : index
    %c0_6 = arith.constant 0 : index
    %7 = vector.load %arg4[%c0_5, %c0_6] : memref<16x4xf32, #tpu.memory_space<vmem>>, vector<16x4xf32>
    tpu.vector_store %arg4[%c0_5, %c0_6], %6 {strides = array<i32>} : memref<16x4xf32, #tpu.memory_space<vmem>>, vector<16x4xf32>,
    return
  }
  func.func @transform_0(%arg0: i32) -> (i32, i32) {
    %c0_i32 = arith.constant 0 : i32
    %c0_i32_0 = arith.constant 0 : i32
    return %arg0, %c0_i32 : i32, i32
  }
  func.func @transform_1(%arg0: i32) -> (i32, i32) {
    %c0_i32 = arith.constant 0 : i32
    %c0_i32_0 = arith.constant 0 : i32
    %c0_i32_1 = arith.constant 0 : i32
    return %c0_i32, %c0_i32_0 : i32, i32
  }
  func.func @transform_2(%arg0: i32) -> (i32, i32) {
    %c0_i32 = arith.constant 0 : i32
    %c0_i32_0 = arith.constant 0 : i32
    %c0_i32_1 = arith.constant 0 : i32
    return %c0_i32, %c0_i32_0 : i32, i32
  }
  func.func @transform_3(%arg0: i32) -> (i32, i32) {
    %c0_i32 = arith.constant 0 : i32
    %c0_i32_0 = arith.constant 0 : i32
    return %arg0, %c0_i32 : i32, i32
  }
}

module attributes {stable_mosaic.version = 11 : i64} {
  func.func @_encoder_layer_kernel(%arg0: i32, %arg1: memref<8x128xf32, #tpu.memory_space<vmem>>, %arg2: memref<128x384xbf16, #tpu.memory_space<vmem>>, %arg3: memref<1x384xf32, #tpu.memory_space<vmem>>, %arg4: memref<128x128xbf16, #tpu.memory_space<vmem>>, %arg5: memref<1x128xf32, #tpu.memory_space<vmem>>, %arg6: memref<1x128xf32, #tpu.memory_space<vmem>>, %arg7: memref<1x128xf32, #tpu.memory_space<vmem>>, %arg8: memref<128x2048xbf16, #tpu.memory_space<vmem>>, %arg9: memref<1x2048xf32, #tpu.memory_space<vmem>>, %arg10: memref<2048x128xbf16, #tpu.memory_space<vmem>>, %arg11: memref<1x128xf32, #tpu.memory_space<vmem>>, %arg12: memref<1x128xf32, #tpu.memory_space<vmem>>, %arg13: memref<1x128xf32, #tpu.memory_space<vmem>>, %arg14: memref<8x128xf32, #tpu.memory_space<vmem>>) attributes {dimension_semantics = [#tpu.dimension_semantics<parallel>], iteration_bounds = array<i64: 2>, scalar_prefetch = 0 : i64, scratch_operands = 0 : i64, tpu.core_type = #tpu.core_type<tc>, window_params = [{transform_indices = @transform_0, window_bounds = array<i64: 8, 128>}, {pipeline_mode = #tpu.pipeline_mode<synchronous>, transform_indices = @transform_1, window_bounds = array<i64: 128, 384>}, {pipeline_mode = #tpu.pipeline_mode<synchronous>, transform_indices = @transform_2, window_bounds = array<i64: 1, 384>}, {pipeline_mode = #tpu.pipeline_mode<synchronous>, transform_indices = @transform_3, window_bounds = array<i64: 128, 128>}, {pipeline_mode = #tpu.pipeline_mode<synchronous>, transform_indices = @transform_4, window_bounds = array<i64: 1, 128>}, {pipeline_mode = #tpu.pipeline_mode<synchronous>, transform_indices = @transform_5, window_bounds = array<i64: 1, 128>}, {pipeline_mode = #tpu.pipeline_mode<synchronous>, transform_indices = @transform_6, window_bounds = array<i64: 1, 128>}, {pipeline_mode = #tpu.pipeline_mode<synchronous>, transform_indices = @transform_7, window_bounds = array<i64: 128, 2048>}, {pipeline_mode = #tpu.pipeline_mode<synchronous>, transform_indices = @transform_8, window_bounds = array<i64: 1, 2048>}, {pipeline_mode = #tpu.pipeline_mode<synchronous>, transform_indices = @transform_9, window_bounds = array<i64: 2048, 128>}, {pipeline_mode = #tpu.pipeline_mode<synchronous>, transform_indices = @transform_10, window_bounds = array<i64: 1, 128>}, {pipeline_mode = #tpu.pipeline_mode<synchronous>, transform_indices = @transform_11, window_bounds = array<i64: 1, 128>}, {pipeline_mode = #tpu.pipeline_mode<synchronous>, transform_indices = @transform_12, window_bounds = array<i64: 1, 128>}, {transform_indices = @transform_13, window_bounds = array<i64: 8, 128>}]} {
    %c0 = arith.constant 0 : index
    %c0_0 = arith.constant 0 : index
    %0 = vector.load %arg1[%c0, %c0_0] : memref<8x128xf32, #tpu.memory_space<vmem>>, vector<8x128xf32>
    %1 = arith.truncf %0 : vector<8x128xf32> to vector<8x128xbf16>
    %c0_1 = arith.constant 0 : index
    %c0_2 = arith.constant 0 : index
    %2 = vector.load %arg2[%c0_1, %c0_2] : memref<128x384xbf16, #tpu.memory_space<vmem>>, vector<128x384xbf16>
    %cst = arith.constant dense<0.000000e+00> : vector<8x384xf32>
    %3 = tpu.matmul %1, %2, %cst {dimension_numbers = #tpu.dot_dimension_numbers<[1], [0], [0], [1], [0, 0, 1, 1], [], []>} : vector<8x128xbf16>, vector<128x384xbf16>, vector<8x384xf32> -> vector<8x384xf32>
    %c0_3 = arith.constant 0 : index
    %c0_4 = arith.constant 0 : index
    %4 = vector.load %arg3[%c0_3, %c0_4] : memref<1x384xf32, #tpu.memory_space<vmem>>, vector<1x384xf32>
    %5 = vector.broadcast %4 : vector<1x384xf32> to vector<8x384xf32>
    %6 = arith.addf %3, %5 : vector<8x384xf32>
    %7 = vector.extract_strided_slice %6 {offsets = [0, 0], sizes = [8, 128], strides = [1, 1]} : vector<8x384xf32> to vector<8x128xf32>
    %cst_5 = arith.constant 0.176776692 : f32
    %8 = vector.broadcast %cst_5 : f32 to vector<8x128xf32>
    %9 = arith.mulf %7, %8 : vector<8x128xf32>
    %10 = vector.extract_strided_slice %6 {offsets = [0, 128], sizes = [8, 128], strides = [1, 1]} : vector<8x384xf32> to vector<8x128xf32>
    %11 = vector.extract_strided_slice %6 {offsets = [0, 256], sizes = [8, 128], strides = [1, 1]} : vector<8x384xf32> to vector<8x128xf32>
    %12 = vector.extract_strided_slice %9 {offsets = [0, 0], sizes = [8, 32], strides = [1, 1]} : vector<8x128xf32> to vector<8x32xf32>
    %13 = arith.truncf %12 : vector<8x32xf32> to vector<8x32xbf16>
    %14 = vector.extract_strided_slice %10 {offsets = [0, 0], sizes = [8, 32], strides = [1, 1]} : vector<8x128xf32> to vector<8x32xf32>
    %15 = arith.truncf %14 : vector<8x32xf32> to vector<8x32xbf16>
    %16 = vector.extract_strided_slice %11 {offsets = [0, 0], sizes = [8, 32], strides = [1, 1]} : vector<8x128xf32> to vector<8x32xf32>
    %17 = arith.truncf %16 : vector<8x32xf32> to vector<8x32xbf16>
    %cst_6 = arith.constant dense<0.000000e+00> : vector<8x8xf32>
    %18 = tpu.matmul %13, %15, %cst_6 {dimension_numbers = #tpu.dot_dimension_numbers<[1], [1], [0], [0], [0, 0, 1, 0], [], []>} : vector<8x32xbf16>, vector<8x32xbf16>, vector<8x8xf32> -> vector<8x8xf32>
    %cst_7 = arith.constant dense<0xFF800000> : vector<8xf32>
    %19 = vector.multi_reduction <maximumf>, %18, %cst_7 [1] : vector<8x8xf32> to vector<8xf32>
    %20 = vector.shape_cast %19 : vector<8xf32> to vector<8x1xf32>
    %21 = vector.broadcast %20 : vector<8x1xf32> to vector<8x8xf32>
    %22 = arith.subf %18, %21 : vector<8x8xf32>
    %23 = math.exp %22 : vector<8x8xf32>
    %cst_8 = arith.constant dense<0.000000e+00> : vector<8xf32>
    %24 = vector.multi_reduction <add>, %23, %cst_8 [1] : vector<8x8xf32> to vector<8xf32>
    %25 = vector.shape_cast %24 : vector<8xf32> to vector<8x1xf32>
    %26 = tpu.reciprocal %25 {approx = true} : vector<8x1xf32> -> vector<8x1xf32>
    %27 = vector.broadcast %26 : vector<8x1xf32> to vector<8x8xf32>
    %28 = arith.mulf %23, %27 : vector<8x8xf32>
    %29 = arith.truncf %28 : vector<8x8xf32> to vector<8x8xbf16>
    %cst_9 = arith.constant dense<0.000000e+00> : vector<8x32xf32>
    %30 = tpu.matmul %29, %17, %cst_9 {dimension_numbers = #tpu.dot_dimension_numbers<[1], [0], [0], [1], [0, 0, 1, 1], [], []>} : vector<8x8xbf16>, vector<8x32xbf16>, vector<8x32xf32> -> vector<8x32xf32>
    %31 = vector.extract_strided_slice %9 {offsets = [0, 32], sizes = [8, 32], strides = [1, 1]} : vector<8x128xf32> to vector<8x32xf32>
    %32 = arith.truncf %31 : vector<8x32xf32> to vector<8x32xbf16>
    %33 = vector.extract_strided_slice %10 {offsets = [0, 32], sizes = [8, 32], strides = [1, 1]} : vector<8x128xf32> to vector<8x32xf32>
    %34 = arith.truncf %33 : vector<8x32xf32> to vector<8x32xbf16>
    %35 = vector.extract_strided_slice %11 {offsets = [0, 32], sizes = [8, 32], strides = [1, 1]} : vector<8x128xf32> to vector<8x32xf32>
    %36 = arith.truncf %35 : vector<8x32xf32> to vector<8x32xbf16>
    %cst_10 = arith.constant dense<0.000000e+00> : vector<8x8xf32>
    %37 = tpu.matmul %32, %34, %cst_10 {dimension_numbers = #tpu.dot_dimension_numbers<[1], [1], [0], [0], [0, 0, 1, 0], [], []>} : vector<8x32xbf16>, vector<8x32xbf16>, vector<8x8xf32> -> vector<8x8xf32>
    %cst_11 = arith.constant dense<0xFF800000> : vector<8xf32>
    %38 = vector.multi_reduction <maximumf>, %37, %cst_11 [1] : vector<8x8xf32> to vector<8xf32>
    %39 = vector.shape_cast %38 : vector<8xf32> to vector<8x1xf32>
    %40 = vector.broadcast %39 : vector<8x1xf32> to vector<8x8xf32>
    %41 = arith.subf %37, %40 : vector<8x8xf32>
    %42 = math.exp %41 : vector<8x8xf32>
    %cst_12 = arith.constant dense<0.000000e+00> : vector<8xf32>
    %43 = vector.multi_reduction <add>, %42, %cst_12 [1] : vector<8x8xf32> to vector<8xf32>
    %44 = vector.shape_cast %43 : vector<8xf32> to vector<8x1xf32>
    %45 = tpu.reciprocal %44 {approx = true} : vector<8x1xf32> -> vector<8x1xf32>
    %46 = vector.broadcast %45 : vector<8x1xf32> to vector<8x8xf32>
    %47 = arith.mulf %42, %46 : vector<8x8xf32>
    %48 = arith.truncf %47 : vector<8x8xf32> to vector<8x8xbf16>
    %cst_13 = arith.constant dense<0.000000e+00> : vector<8x32xf32>
    %49 = tpu.matmul %48, %36, %cst_13 {dimension_numbers = #tpu.dot_dimension_numbers<[1], [0], [0], [1], [0, 0, 1, 1], [], []>} : vector<8x8xbf16>, vector<8x32xbf16>, vector<8x32xf32> -> vector<8x32xf32>
    %50 = vector.extract_strided_slice %9 {offsets = [0, 64], sizes = [8, 32], strides = [1, 1]} : vector<8x128xf32> to vector<8x32xf32>
    %51 = arith.truncf %50 : vector<8x32xf32> to vector<8x32xbf16>
    %52 = vector.extract_strided_slice %10 {offsets = [0, 64], sizes = [8, 32], strides = [1, 1]} : vector<8x128xf32> to vector<8x32xf32>
    %53 = arith.truncf %52 : vector<8x32xf32> to vector<8x32xbf16>
    %54 = vector.extract_strided_slice %11 {offsets = [0, 64], sizes = [8, 32], strides = [1, 1]} : vector<8x128xf32> to vector<8x32xf32>
    %55 = arith.truncf %54 : vector<8x32xf32> to vector<8x32xbf16>
    %cst_14 = arith.constant dense<0.000000e+00> : vector<8x8xf32>
    %56 = tpu.matmul %51, %53, %cst_14 {dimension_numbers = #tpu.dot_dimension_numbers<[1], [1], [0], [0], [0, 0, 1, 0], [], []>} : vector<8x32xbf16>, vector<8x32xbf16>, vector<8x8xf32> -> vector<8x8xf32>
    %cst_15 = arith.constant dense<0xFF800000> : vector<8xf32>
    %57 = vector.multi_reduction <maximumf>, %56, %cst_15 [1] : vector<8x8xf32> to vector<8xf32>
    %58 = vector.shape_cast %57 : vector<8xf32> to vector<8x1xf32>
    %59 = vector.broadcast %58 : vector<8x1xf32> to vector<8x8xf32>
    %60 = arith.subf %56, %59 : vector<8x8xf32>
    %61 = math.exp %60 : vector<8x8xf32>
    %cst_16 = arith.constant dense<0.000000e+00> : vector<8xf32>
    %62 = vector.multi_reduction <add>, %61, %cst_16 [1] : vector<8x8xf32> to vector<8xf32>
    %63 = vector.shape_cast %62 : vector<8xf32> to vector<8x1xf32>
    %64 = tpu.reciprocal %63 {approx = true} : vector<8x1xf32> -> vector<8x1xf32>
    %65 = vector.broadcast %64 : vector<8x1xf32> to vector<8x8xf32>
    %66 = arith.mulf %61, %65 : vector<8x8xf32>
    %67 = arith.truncf %66 : vector<8x8xf32> to vector<8x8xbf16>
    %cst_17 = arith.constant dense<0.000000e+00> : vector<8x32xf32>
    %68 = tpu.matmul %67, %55, %cst_17 {dimension_numbers = #tpu.dot_dimension_numbers<[1], [0], [0], [1], [0, 0, 1, 1], [], []>} : vector<8x8xbf16>, vector<8x32xbf16>, vector<8x32xf32> -> vector<8x32xf32>
    %69 = vector.extract_strided_slice %9 {offsets = [0, 96], sizes = [8, 32], strides = [1, 1]} : vector<8x128xf32> to vector<8x32xf32>
    %70 = arith.truncf %69 : vector<8x32xf32> to vector<8x32xbf16>
    %71 = vector.extract_strided_slice %10 {offsets = [0, 96], sizes = [8, 32], strides = [1, 1]} : vector<8x128xf32> to vector<8x32xf32>
    %72 = arith.truncf %71 : vector<8x32xf32> to vector<8x32xbf16>
    %73 = vector.extract_strided_slice %11 {offsets = [0, 96], sizes = [8, 32], strides = [1, 1]} : vector<8x128xf32> to vector<8x32xf32>
    %74 = arith.truncf %73 : vector<8x32xf32> to vector<8x32xbf16>
    %cst_18 = arith.constant dense<0.000000e+00> : vector<8x8xf32>
    %75 = tpu.matmul %70, %72, %cst_18 {dimension_numbers = #tpu.dot_dimension_numbers<[1], [1], [0], [0], [0, 0, 1, 0], [], []>} : vector<8x32xbf16>, vector<8x32xbf16>, vector<8x8xf32> -> vector<8x8xf32>
    %cst_19 = arith.constant dense<0xFF800000> : vector<8xf32>
    %76 = vector.multi_reduction <maximumf>, %75, %cst_19 [1] : vector<8x8xf32> to vector<8xf32>
    %77 = vector.shape_cast %76 : vector<8xf32> to vector<8x1xf32>
    %78 = vector.broadcast %77 : vector<8x1xf32> to vector<8x8xf32>
    %79 = arith.subf %75, %78 : vector<8x8xf32>
    %80 = math.exp %79 : vector<8x8xf32>
    %cst_20 = arith.constant dense<0.000000e+00> : vector<8xf32>
    %81 = vector.multi_reduction <add>, %80, %cst_20 [1] : vector<8x8xf32> to vector<8xf32>
    %82 = vector.shape_cast %81 : vector<8xf32> to vector<8x1xf32>
    %83 = tpu.reciprocal %82 {approx = true} : vector<8x1xf32> -> vector<8x1xf32>
    %84 = vector.broadcast %83 : vector<8x1xf32> to vector<8x8xf32>
    %85 = arith.mulf %80, %84 : vector<8x8xf32>
    %86 = arith.truncf %85 : vector<8x8xf32> to vector<8x8xbf16>
    %cst_21 = arith.constant dense<0.000000e+00> : vector<8x32xf32>
    %87 = tpu.matmul %86, %74, %cst_21 {dimension_numbers = #tpu.dot_dimension_numbers<[1], [0], [0], [1], [0, 0, 1, 1], [], []>} : vector<8x8xbf16>, vector<8x32xbf16>, vector<8x32xf32> -> vector<8x32xf32>
    %88 = tpu.concatenate %30, %49, %68, %87 in 1 : vector<8x32xf32>, vector<8x32xf32>, vector<8x32xf32>, vector<8x32xf32> -> vector<8x128xf32>
    %89 = arith.truncf %88 : vector<8x128xf32> to vector<8x128xbf16>
    %c0_22 = arith.constant 0 : index
    %c0_23 = arith.constant 0 : index
    %90 = vector.load %arg4[%c0_22, %c0_23] : memref<128x128xbf16, #tpu.memory_space<vmem>>, vector<128x128xbf16>
    %cst_24 = arith.constant dense<0.000000e+00> : vector<8x128xf32>
    %91 = tpu.matmul %89, %90, %cst_24 {dimension_numbers = #tpu.dot_dimension_numbers<[1], [0], [0], [1], [0, 0, 1, 1], [], []>} : vector<8x128xbf16>, vector<128x128xbf16>, vector<8x128xf32> -> vector<8x128xf32>
    %c0_25 = arith.constant 0 : index
    %c0_26 = arith.constant 0 : index
    %92 = vector.load %arg5[%c0_25, %c0_26] : memref<1x128xf32, #tpu.memory_space<vmem>>, vector<1x128xf32>
    %93 = vector.broadcast %92 : vector<1x128xf32> to vector<8x128xf32>
    %94 = arith.addf %91, %93 : vector<8x128xf32>
    %95 = arith.addf %0, %94 : vector<8x128xf32>
    %c0_27 = arith.constant 0 : index
    %c0_28 = arith.constant 0 : index
    %96 = vector.load %arg6[%c0_27, %c0_28] : memref<1x128xf32, #tpu.memory_space<vmem>>, vector<1x128xf32>
    %c0_29 = arith.constant 0 : index
    %c0_30 = arith.constant 0 : index
    %97 = vector.load %arg7[%c0_29, %c0_30] : memref<1x128xf32, #tpu.memory_space<vmem>>, vector<1x128xf32>
    %cst_31 = arith.constant dense<0.000000e+00> : vector<8xf32>
    %98 = vector.multi_reduction <add>, %95, %cst_31 [1] : vector<8x128xf32> to vector<8xf32>
    %99 = vector.shape_cast %98 : vector<8xf32> to vector<8x1xf32>
    %cst_32 = arith.constant 1.280000e+02 : f32
    %100 = vector.broadcast %cst_32 : f32 to vector<8x1xf32>
    %101 = arith.divf %99, %100 : vector<8x1xf32>
    %102 = vector.broadcast %101 : vector<8x1xf32> to vector<8x128xf32>
    %103 = arith.subf %95, %102 : vector<8x128xf32>
    %104 = arith.mulf %103, %103 : vector<8x128xf32>
    %cst_33 = arith.constant dense<0.000000e+00> : vector<8xf32>
    %105 = vector.multi_reduction <add>, %104, %cst_33 [1] : vector<8x128xf32> to vector<8xf32>
    %106 = vector.shape_cast %105 : vector<8xf32> to vector<8x1xf32>
    %cst_34 = arith.constant 1.280000e+02 : f32
    %107 = vector.broadcast %cst_34 : f32 to vector<8x1xf32>
    %108 = arith.divf %106, %107 : vector<8x1xf32>
    %109 = vector.broadcast %101 : vector<8x1xf32> to vector<8x128xf32>
    %110 = arith.subf %95, %109 : vector<8x128xf32>
    %cst_35 = arith.constant 9.99999974E-6 : f32
    %111 = vector.broadcast %cst_35 : f32 to vector<8x1xf32>
    %112 = arith.addf %108, %111 : vector<8x1xf32>
    %113 = math.rsqrt %112 : vector<8x1xf32>
    %114 = vector.broadcast %113 : vector<8x1xf32> to vector<8x128xf32>
    %115 = arith.mulf %110, %114 : vector<8x128xf32>
    %116 = vector.broadcast %96 : vector<1x128xf32> to vector<8x128xf32>
    %117 = arith.mulf %115, %116 : vector<8x128xf32>
    %118 = vector.broadcast %97 : vector<1x128xf32> to vector<8x128xf32>
    %119 = arith.addf %117, %118 : vector<8x128xf32>
    %120 = arith.truncf %119 : vector<8x128xf32> to vector<8x128xbf16>
    %c0_36 = arith.constant 0 : index
    %c0_37 = arith.constant 0 : index
    %121 = vector.load %arg8[%c0_36, %c0_37] : memref<128x2048xbf16, #tpu.memory_space<vmem>>, vector<128x2048xbf16>
    %cst_38 = arith.constant dense<0.000000e+00> : vector<8x2048xf32>
    %122 = tpu.matmul %120, %121, %cst_38 {dimension_numbers = #tpu.dot_dimension_numbers<[1], [0], [0], [1], [0, 0, 1, 1], [], []>} : vector<8x128xbf16>, vector<128x2048xbf16>, vector<8x2048xf32> -> vector<8x2048xf32>
    %c0_39 = arith.constant 0 : index
    %c0_40 = arith.constant 0 : index
    %123 = vector.load %arg9[%c0_39, %c0_40] : memref<1x2048xf32, #tpu.memory_space<vmem>>, vector<1x2048xf32>
    %124 = vector.broadcast %123 : vector<1x2048xf32> to vector<8x2048xf32>
    %125 = arith.addf %122, %124 : vector<8x2048xf32>
    %cst_41 = arith.constant 0.000000e+00 : f32
    %126 = vector.broadcast %cst_41 : f32 to vector<8x2048xf32>
    %127 = arith.maximumf %125, %126 : vector<8x2048xf32>
    %128 = arith.truncf %127 : vector<8x2048xf32> to vector<8x2048xbf16>
    %c0_42 = arith.constant 0 : index
    %c0_43 = arith.constant 0 : index
    %129 = vector.load %arg10[%c0_42, %c0_43] : memref<2048x128xbf16, #tpu.memory_space<vmem>>, vector<2048x128xbf16>
    %cst_44 = arith.constant dense<0.000000e+00> : vector<8x128xf32>
    %130 = tpu.matmul %128, %129, %cst_44 {dimension_numbers = #tpu.dot_dimension_numbers<[1], [0], [0], [1], [0, 0, 1, 1], [], []>} : vector<8x2048xbf16>, vector<2048x128xbf16>, vector<8x128xf32> -> vector<8x128xf32>
    %c0_45 = arith.constant 0 : index
    %c0_46 = arith.constant 0 : index
    %131 = vector.load %arg11[%c0_45, %c0_46] : memref<1x128xf32, #tpu.memory_space<vmem>>, vector<1x128xf32>
    %132 = vector.broadcast %131 : vector<1x128xf32> to vector<8x128xf32>
    %133 = arith.addf %130, %132 : vector<8x128xf32>
    %134 = arith.addf %119, %133 : vector<8x128xf32>
    %c0_47 = arith.constant 0 : index
    %c0_48 = arith.constant 0 : index
    %135 = vector.load %arg12[%c0_47, %c0_48] : memref<1x128xf32, #tpu.memory_space<vmem>>, vector<1x128xf32>
    %c0_49 = arith.constant 0 : index
    %c0_50 = arith.constant 0 : index
    %136 = vector.load %arg13[%c0_49, %c0_50] : memref<1x128xf32, #tpu.memory_space<vmem>>, vector<1x128xf32>
    %cst_51 = arith.constant dense<0.000000e+00> : vector<8xf32>
    %137 = vector.multi_reduction <add>, %134, %cst_51 [1] : vector<8x128xf32> to vector<8xf32>
    %138 = vector.shape_cast %137 : vector<8xf32> to vector<8x1xf32>
    %cst_52 = arith.constant 1.280000e+02 : f32
    %139 = vector.broadcast %cst_52 : f32 to vector<8x1xf32>
    %140 = arith.divf %138, %139 : vector<8x1xf32>
    %141 = vector.broadcast %140 : vector<8x1xf32> to vector<8x128xf32>
    %142 = arith.subf %134, %141 : vector<8x128xf32>
    %143 = arith.mulf %142, %142 : vector<8x128xf32>
    %cst_53 = arith.constant dense<0.000000e+00> : vector<8xf32>
    %144 = vector.multi_reduction <add>, %143, %cst_53 [1] : vector<8x128xf32> to vector<8xf32>
    %145 = vector.shape_cast %144 : vector<8xf32> to vector<8x1xf32>
    %cst_54 = arith.constant 1.280000e+02 : f32
    %146 = vector.broadcast %cst_54 : f32 to vector<8x1xf32>
    %147 = arith.divf %145, %146 : vector<8x1xf32>
    %148 = vector.broadcast %140 : vector<8x1xf32> to vector<8x128xf32>
    %149 = arith.subf %134, %148 : vector<8x128xf32>
    %cst_55 = arith.constant 9.99999974E-6 : f32
    %150 = vector.broadcast %cst_55 : f32 to vector<8x1xf32>
    %151 = arith.addf %147, %150 : vector<8x1xf32>
    %152 = math.rsqrt %151 : vector<8x1xf32>
    %153 = vector.broadcast %152 : vector<8x1xf32> to vector<8x128xf32>
    %154 = arith.mulf %149, %153 : vector<8x128xf32>
    %155 = vector.broadcast %135 : vector<1x128xf32> to vector<8x128xf32>
    %156 = arith.mulf %154, %155 : vector<8x128xf32>
    %157 = vector.broadcast %136 : vector<1x128xf32> to vector<8x128xf32>
    %158 = arith.addf %156, %157 : vector<8x128xf32>
    %c0_56 = arith.constant 0 : index
    %c0_57 = arith.constant 0 : index
    %159 = vector.load %arg14[%c0_56, %c0_57] : memref<8x128xf32, #tpu.memory_space<vmem>>, vector<8x128xf32>
    tpu.vector_store %arg14[%c0_56, %c0_57], %158 {strides = array<i32>} : memref<8x128xf32, #tpu.memory_space<vmem>>, vector<8x128xf32>,
    return
  }
  func.func @transform_0(%arg0: i32) -> (i32, i32) {
    %c0_i32 = arith.constant 0 : i32
    %c0_i32_0 = arith.constant 0 : i32
    return %arg0, %c0_i32 : i32, i32
  }
  func.func @transform_1(%arg0: i32) -> (i32, i32) {
    %c0_i32 = arith.constant 0 : i32
    %c0_i32_0 = arith.constant 0 : i32
    %c0_i32_1 = arith.constant 0 : i32
    return %c0_i32, %c0_i32_0 : i32, i32
  }
  func.func @transform_2(%arg0: i32) -> (i32, i32) {
    %c0_i32 = arith.constant 0 : i32
    %c0_i32_0 = arith.constant 0 : i32
    %c0_i32_1 = arith.constant 0 : i32
    return %c0_i32, %c0_i32_0 : i32, i32
  }
  func.func @transform_3(%arg0: i32) -> (i32, i32) {
    %c0_i32 = arith.constant 0 : i32
    %c0_i32_0 = arith.constant 0 : i32
    %c0_i32_1 = arith.constant 0 : i32
    return %c0_i32, %c0_i32_0 : i32, i32
  }
  func.func @transform_4(%arg0: i32) -> (i32, i32) {
    %c0_i32 = arith.constant 0 : i32
    %c0_i32_0 = arith.constant 0 : i32
    %c0_i32_1 = arith.constant 0 : i32
    return %c0_i32, %c0_i32_0 : i32, i32
  }
  func.func @transform_5(%arg0: i32) -> (i32, i32) {
    %c0_i32 = arith.constant 0 : i32
    %c0_i32_0 = arith.constant 0 : i32
    %c0_i32_1 = arith.constant 0 : i32
    return %c0_i32, %c0_i32_0 : i32, i32
  }
  func.func @transform_6(%arg0: i32) -> (i32, i32) {
    %c0_i32 = arith.constant 0 : i32
    %c0_i32_0 = arith.constant 0 : i32
    %c0_i32_1 = arith.constant 0 : i32
    return %c0_i32, %c0_i32_0 : i32, i32
  }
  func.func @transform_7(%arg0: i32) -> (i32, i32) {
    %c0_i32 = arith.constant 0 : i32
    %c0_i32_0 = arith.constant 0 : i32
    %c0_i32_1 = arith.constant 0 : i32
    return %c0_i32, %c0_i32_0 : i32, i32
  }
  func.func @transform_8(%arg0: i32) -> (i32, i32) {
    %c0_i32 = arith.constant 0 : i32
    %c0_i32_0 = arith.constant 0 : i32
    %c0_i32_1 = arith.constant 0 : i32
    return %c0_i32, %c0_i32_0 : i32, i32
  }
  func.func @transform_9(%arg0: i32) -> (i32, i32) {
    %c0_i32 = arith.constant 0 : i32
    %c0_i32_0 = arith.constant 0 : i32
    %c0_i32_1 = arith.constant 0 : i32
    return %c0_i32, %c0_i32_0 : i32, i32
  }
  func.func @transform_10(%arg0: i32) -> (i32, i32) {
    %c0_i32 = arith.constant 0 : i32
    %c0_i32_0 = arith.constant 0 : i32
    %c0_i32_1 = arith.constant 0 : i32
    return %c0_i32, %c0_i32_0 : i32, i32
  }
  func.func @transform_11(%arg0: i32) -> (i32, i32) {
    %c0_i32 = arith.constant 0 : i32
    %c0_i32_0 = arith.constant 0 : i32
    %c0_i32_1 = arith.constant 0 : i32
    return %c0_i32, %c0_i32_0 : i32, i32
  }
  func.func @transform_12(%arg0: i32) -> (i32, i32) {
    %c0_i32 = arith.constant 0 : i32
    %c0_i32_0 = arith.constant 0 : i32
    %c0_i32_1 = arith.constant 0 : i32
    return %c0_i32, %c0_i32_0 : i32, i32
  }
  func.func @transform_13(%arg0: i32) -> (i32, i32) {
    %c0_i32 = arith.constant 0 : i32
    %c0_i32_0 = arith.constant 0 : i32
    return %arg0, %c0_i32 : i32, i32
  }
}

</mosaic_0001>

<bundles_post_ra>
// kernel: trajectory_transformer_forward.5
= control target key start
LH: loop header
LB: loop body
LE: loop exit
PB: predicated region body
PF: predicated region fallthrough
CT: control target
= control target key end

     0   :  { %v111_v0 = vmov 0.0   ;;  %vm112_vm0 = vmmov 0   ;;  %vm41_vm1 = vcmask 261120   ;;  %s154_s1 = inlined_call_operand.vmem [shape: bf16[32,128], index: 1, kind: input, shape index: {}]   ;;  %s155_s0 = inlined_call_operand.vmem [shape: f32[16,32], index: 0, kind: input, shape index: {}]   ;;  %s156_s2 = inlined_call_operand.vmem [shape: f32[1,128], index: 2, kind: input, shape index: {}]   ;;  %s157_s3 = inlined_call_operand.vmem [shape: f32[16,128], index: 3, kind: output, shape index: {}]  }
   0x1   :  { %99 = vmatprep.subr.bf16.mxu0 %v111_v0  ;;  %v109_v1 = vld [vmem:[%s154_s1] sm:$0xff]   ;;  %103 = vmatprep.mubr.msk.bf16.mxu0 %vm112_vm0, %v111_v0  ;;  %v110_v2 = vld [vmem:[%s154_s1 + $0x8] sm:$0xff]  }
   0x2   :  { %100 = vmatpush3.bf16.msra.mxu0 %v109_v1  ;;  %v15_v3 = vld [vmem:[%s155_s0] sm:$0xff]  ;;  %v16_v4 = vld [vmem:[%s155_s0 + $0x8] sm:$0xff] }
   0x3   :  { %101 = vmatprep.subr.bf16.mxu0 %v111_v0  ;;  %v17_v5 = vpack.c.bf16 %v16_v4, %v15_v3  ;;  %v92_v6 = vld [vmem:[%s156_s2] ss:$0 sm:$0xff] }
   0x6   :  { %102 = vmatpush3.bf16.msra.mxu0 %v110_v2 }
   0x9   :  { %104 = vmatmul.mubr.msk.bf16.vlgmr.msra.gmra.mrb[0].mxu0 %vm41_vm1, %v17_v5 }
  0xdc   :  { %v79_v7 = vpop.f32.mrb[0].mxu0 }
  0xdd   :  { %v80_v8 = vadd.f32 %v92_v6, %v79_v7  ;;  %v105_v9 = vpop.f32.mrb[1].mxu0 }
  0xde   :  { %v82_v10 = vpop.f32.mrb[2].mxu0 }
  0xdf   :  { %86 = vst [vmem:[%s157_s3] sm:$0xff] %v80_v8  ;;  %v83_v11 = vadd.f32 %v92_v6, %v82_v10  ;;  %v106_v12 = vpop.f32.mrb[3].mxu0 }
  0xe1   :  { %87 = vst [vmem:[%s157_s3 + $0x8] sm:$0xff] %v83_v11 }

// kernel: trajectory_transformer_forward.9
= control target key start
LH: loop header
LB: loop body
LE: loop exit
PB: predicated region body
PF: predicated region fallthrough
CT: control target
= control target key end

     0   :  { %v185_v0 = vmov 0.0   ;;  %vm186_vm0 = vmmov 0   ;;  %vm130_vm1 = vcmask 31744   ;;  %s246_s1 = inlined_call_operand.vmem [shape: bf16[128,4], index: 1, kind: input, shape index: {}]   ;;  %s247_s0 = inlined_call_operand.vmem [shape: f32[16,128], index: 0, kind: input, shape index: {}]   ;;  %s248_s2 = inlined_call_operand.vmem [shape: f32[1,4], index: 2, kind: input, shape index: {}]   ;;  %s249_s3 = inlined_call_operand.vmem [shape: f32[16,4], index: 3, kind: output, shape index: {}]  }
   0x1   :  { %155 = vmatprep.subr.bf16.mxu0 %v185_v0  ;;  %v177_v1 = vld [vmem:[%s246_s1] sm:$0xff]   ;;  %171 = vmatprep.mubr.msk.bf16.mxu0 %vm186_vm0, %v185_v0  ;;  %v178_v2 = vld [vmem:[%s246_s1 + $0x8] sm:$0xff]   ;;  %v179_v3 = vld [vmem:[%s246_s1 + $0x10] sm:$0xff]  }
   0x2   :  { %156 = vmatpush3.bf16.msra.mxu0 %v177_v1  ;;  %v180_v4 = vld [vmem:[%s246_s1 + $0x18] sm:$0xff]   ;;  %v181_v5 = vld [vmem:[%s246_s1 + $0x20] sm:$0xff]   ;;  %v182_v6 = vld [vmem:[%s246_s1 + $0x28] sm:$0xff]  }
   0x3   :  { %157 = vmatprep.subr.bf16.mxu0 %v185_v0  ;;  %v183_v7 = vld [vmem:[%s246_s1 + $0x30] sm:$0xff]   ;;  %v184_v8 = vld [vmem:[%s246_s1 + $0x38] sm:$0xff]   ;;  %v15_v9 = vld [vmem:[%s247_s0] sm:$0xff] }
   0x4   :  { %v16_v10 = vld [vmem:[%s247_s0 + $0x8] sm:$0xff]  ;;  %v137_v12 = vld [vmem:[%s248_s2] ss:$0 sm:$0xff] }
   0x5   :  { %v17_v11 = vpack.c.bf16 %v16_v10, %v15_v9 }
   0x6   :  { %158 = vmatpush3.bf16.msra.mxu0 %v178_v2 }
   0x7   :  { %159 = vmatprep.subr.bf16.mxu0 %v185_v0 }
   0xa   :  { %160 = vmatpush3.bf16.msra.mxu0 %v179_v3 }
   0xb   :  { %161 = vmatprep.subr.bf16.mxu0 %v185_v0 }
   0xe   :  { %162 = vmatpush3.bf16.msra.mxu0 %v180_v4 }
   0xf   :  { %163 = vmatprep.subr.bf16.mxu0 %v185_v0 }
  0x12   :  { %164 = vmatpush3.bf16.msra.mxu0 %v181_v5 }
  0x13   :  { %165 = vmatprep.subr.bf16.mxu0 %v185_v0 }
  0x16   :  { %166 = vmatpush3.bf16.msra.mxu0 %v182_v6 }
  0x17   :  { %167 = vmatprep.subr.bf16.mxu0 %v185_v0 }
  0x1a   :  { %168 = vmatpush3.bf16.msra.mxu0 %v183_v7 }
  0x1b   :  { %169 = vmatprep.subr.bf16.mxu0 %v185_v0 }
  0x1e   :  { %170 = vmatpush3.bf16.msra.mxu0 %v184_v8 }
  0x21   :  { %172 = vmatmul.mubr.bf16.vlgmr.msra.gmra.mrb[0].mxu0 %v17_v11 }
  0xf4   :  { %v123_v13 = vpop.f32.mrb[0].mxu0 }
  0xf5   :  { %v124_v14 = vadd.f32 %v137_v12, %v123_v13  ;;  %v173_v15 = vpop.f32.mrb[1].mxu0 }
  0xf6   :  { %v126_v16 = vpop.f32.mrb[2].mxu0 }
  0xf7   :  { %131 = vst.msk [vmem:[%s249_s3] sm:$0xff] %vm130_vm1, %v124_v14  ;;  %v127_v17 = vadd.f32 %v137_v12, %v126_v16  ;;  %v174_v18 = vpop.f32.mrb[3].mxu0 }
  0xf9   :  { %132 = vst.msk [vmem:[%s249_s3 + $0x8] sm:$0xff] %vm130_vm1, %v127_v17 }

// kernel: trajectory_transformer_forward.6
= control target key start
LH: loop header
LB: loop body
LE: loop exit
PB: predicated region body
PF: predicated region fallthrough
CT: control target
= control target key end

     0   :  { %s5428_s0 = inlined_call_operand.vmem [shape: f32[16,128], index: 0, kind: input, shape index: {}]   ;;  %s5429_s1 = inlined_call_operand.hbm [shape: bf16[128,384], index: 1, kind: input, shape index: {}]   ;;  %s5430_s2 = inlined_call_operand.vmem [shape: f32[1,384], index: 2, kind: input, shape index: {}]   ;;  %s5431_s3 = inlined_call_operand.vmem [shape: bf16[128,128], index: 3, kind: input, shape index: {}]   ;;  %s5432_s4 = inlined_call_operand.vmem [shape: f32[1,128], index: 4, kind: input, shape index: {}]   ;;  %s5433_s5 = inlined_call_operand.vmem [shape: f32[1,128], index: 5, kind: input, shape index: {}]   ;;  %s5434_s6 = inlined_call_operand.vmem [shape: f32[1,128], index: 6, kind: input, shape index: {}]   ;;  %s5435_s7 = inlined_call_operand.hbm [shape: bf16[128,2048], index: 7, kind: input, shape index: {}]   ;;  %s5436_s8 = inlined_call_operand.vmem [shape: f32[1,2048], index: 8, kind: input, shape index: {}]   ;;  %s5437_s9 = inlined_call_operand.hbm [shape: bf16[2048,128], index: 9, kind: input, shape index: {}]   ;;  %s5438_s10 = inlined_call_operand.vmem [shape: f32[1,128], index: 10, kind: input, shape index: {}]   ;;  %s5439_s11 = inlined_call_operand.vmem [shape: f32[1,128], index: 11, kind: input, shape index: {}]   ;;  %s5440_s12 = inlined_call_operand.vmem [shape: f32[1,128], index: 12, kind: input, shape index: {}]   ;;  %s5441_s13 = inlined_call_operand.vmem [shape: f32[16,128], index: 13, kind: output, shape index: {}]  }
   0x1   :  { %5445 = sst [smem:[#allocation10_spill]] %s5441_s13 }
   0x2   :  { %18 = vsyncpa [#allocation3], 0 }
   0x3   :  { %19 = vsyncpa [#allocation5], 0  ;;  %s5057_s25 = smov 0  }
   0x4 LB: > { %5446 = sst [smem:[#allocation9_spill]] %s4971_s25  ;;  %s4973_s26 = smov [#allocation4]   ;;  %s4971_s25 = sphi %s5057_s25, %s25_s25  }
   0x5   : > { %s374_s27 = sshll.u32 %s4973_s26, 4  ;;  %s5063_s28 = sadd.s32 4294967295, %s4971_s25   ;;  %s5068_s27 = int_to_ptr.vmem [resolvable:$true] %s374_s27 }
   0x6   : > { %p4022_p0 = scmp.ge.s32.totalorder %s4971_s25, 1  ;;  %p334_p1 = scmp.lt.s32.totalorder %s4971_s25, 3 }
   0x7   : > { %p5443_p2 = scmp.eq.s32.totalorder %s5063_s28, 0  ;;  %s4974_s30 = smov [#allocation2]  }
   0x8   : > { %p5070_p3 = pnand %p4022_p0, %p334_p1  ;;  %s346_s14 = sshll.u32 %s4974_s30, 4  ;;  %s5076_s14 = int_to_ptr.vmem [resolvable:$true] %s346_s14 }
   0x9   : > { %s4975_s16 = smov [#allocation6]   ;;  %s4873_s20 = scalar_lea.hbm %s5435_s7, 16384 }
   0xa   : > { %s5447_s29 = scalar_select %p5070_p3, 1, 0 }
   0xb   : > { %p4647_p4 = pneg %p5070_p3  ;;  %s5084_s17 = sshll.u32 %s4975_s16, 4  ;;  %s391_s17 = int_to_ptr.vmem [resolvable:$true] %s5084_s17 }
   0xc   : > { %p4874_p6 = scmp.ne.s32.totalorder %s5435_s7, %s4873_s20  ;;  %p4880_p10 = scmp.lt.u32.totalorder %s4873_s20, %s5435_s7 }
   0xd   : > { %p5080_p5 = pnand %p5443_p2, %p4647_p4 }
   0xf   : > { %p5094_p7 = pneg %p5080_p5 }
  0x11   : > { %p4876_p8 = pnand %p5094_p7, %p4874_p6 }
  0x13   : > { %p4877_p9 = pneg %p4876_p8 }
  0x15   : > { %p4882_p11 = pnand %p4880_p10, %p4877_p9 }
  0x17   : > { %4885 = shalt.err (!%p4882_p11)
}
  0x18   : > { %s4886_s30 = scalar_lea.vmem %s5068_s27, 16384  ;;  %p4894_p1 = scmp.lt.s32.totalorder %s5068_s27, %s5068_s27 }
  0x19   : > { %p4887_p12 = scmp.ne.s32.totalorder %s5068_s27, %s4886_s30  ;;  %p4895_p4 = scmp.lt.s32.totalorder %s4886_s30, %s4886_s30 }
  0x1b   : > { %p4889_p13 = pnand %p4887_p12, %p5094_p7  ;;  %p4896_p6 = por %p4895_p4, %p4894_p1 }
  0x1d   : > { %p4890_p0 = pneg %p4889_p13 }
  0x1f   : > { %p4897_p8 = pnand %p4896_p6, %p4890_p0 }
  0x21   : > { %4900 = shalt.err (!%p4897_p8)
}
  0x22   : > { %s4976_s16 = smov 1024   ;;  %s4977_s18 = smov 64  }
  0x23   : > { %4653 = dma.hbm_to_vmem [thread:$0]  (!%p5080_p5), %s5435_s7, 16384, %s5068_s27, [#allocation5], %s4976_s16, %s4976_s16, %s4977_s18  }
  0x24   : > { %s4901_s24 = scalar_lea.hbm %s5429_s1, 3072 }
  0x25   : > { %p4902_p9 = scmp.ne.s32.totalorder %s5429_s1, %s4901_s24  ;;  %p4908_p12 = scmp.lt.u32.totalorder %s4901_s24, %s5429_s1 }
  0x27   : > { %p4904_p10 = pnand %p4902_p9, %p5094_p7 }
  0x29   : > { %p4905_p11 = pneg %p4904_p10 }
  0x2b   : > { %p4910_p13 = pnand %p4908_p12, %p4905_p11 }
  0x2d   : > { %4913 = shalt.err (!%p4910_p13)
}
  0x2e   : > { %s4914_s27 = scalar_lea.vmem %s5076_s14, 3072  ;;  %p4922_p6 = scmp.lt.s32.totalorder %s5076_s14, %s5076_s14 }
  0x2f   : > { %p4915_p0 = scmp.ne.s32.totalorder %s5076_s14, %s4914_s27  ;;  %p4923_p8 = scmp.lt.s32.totalorder %s4914_s27, %s4914_s27 }
  0x31   : > { %p4917_p1 = pnand %p4915_p0, %p5094_p7  ;;  %p4924_p9 = por %p4923_p8, %p4922_p6 }
  0x33   : > { %p4918_p4 = pneg %p4917_p1 }
  0x35   : > { %p4925_p10 = pnand %p4924_p9, %p4918_p4 }
  0x37   : > { %4928 = shalt.err (!%p4925_p10)
}
  0x38   : > { %s4978_s16 = smov 192   ;;  %s4979_s13 = smov 12  }
  0x39   : > { %4650 = dma.hbm_to_vmem [thread:$0]  (!%p5080_p5), %s5429_s1, 3072, %s5076_s14, [#allocation3], %s4978_s16, %s4978_s16, %s4979_s13  }
  0x3a   : > { %s4929_s22 = scalar_lea.hbm %s5437_s9, 16384 }
  0x3b   : > { %p4930_p11 = scmp.ne.s32.totalorder %s5437_s9, %s4929_s22  ;;  %p4936_p0 = scmp.lt.u32.totalorder %s4929_s22, %s5437_s9 }
  0x3d   : > { %p4932_p12 = pnand %p4930_p11, %p5094_p7 }
  0x3f   : > { %p4933_p13 = pneg %p4932_p12 }
  0x41   : > { %p4938_p1 = pnand %p4936_p0, %p4933_p13 }
  0x43   : > { %4941 = shalt.err (!%p4938_p1)
}
  0x44   : > { %s4942_s25 = scalar_lea.vmem %s391_s17, 16384  ;;  %p4950_p9 = scmp.lt.s32.totalorder %s391_s17, %s391_s17 }
  0x45   : > { %p4943_p4 = scmp.ne.s32.totalorder %s391_s17, %s4942_s25  ;;  %p4951_p10 = scmp.lt.s32.totalorder %s4942_s25, %s4942_s25 }
  0x47   : > { %p4945_p6 = pnand %p4943_p4, %p5094_p7  ;;  %p4952_p2 = por %p4951_p10, %p4950_p9 }
  0x49   : > { %p4946_p8 = pneg %p4945_p6 }
  0x4b   : > { %p4953_p3 = pnand %p4952_p2, %p4946_p8 }
  0x4d   : > { %4956 = shalt.err (!%p4953_p3)
}
  0x4e   : > { %s4980_s14 = smov 4   ;;  %p5450_p11 = scmp.ne.s32.totalorder %s5447_s29, 0 }
  0x4f   : > { %4656 = dma.hbm_to_vmem [thread:$0]  (!%p5080_p5), %s5437_s9, 16384, %s391_s17, [#allocation5], %s4977_s18, %s4977_s18, %s4980_s14  }
  0x50   : > { %422 = sbr.rel (%p5450_p11) target bundleno = 3146 (0xc4a), region = 72  ;;  %p5451_p7 = scmp.eq.s32.totalorder (!%p5450_p11), %s5063_s28, 0 }
  0x57   : > { %4962 = dma.done.wait (%p5451_p7), [#allocation3], 3072   ;;  %p5452_p12 = pmov %p5451_p7 }
  0x58   : > { %p5453_p2 = pmov %p5451_p7 }
  0x59   : > { %4964 = vsyncadd (%p5452_p12), [#allocation3], 4294964224 }
  0x5a   : > { %4966 = dma.done.wait (%p5453_p2), [#allocation5], 32768   ;;  %p5454_p3 = pmov %p5453_p2 }
  0x5b   : > { %v4981_v0 = vmov 0   ;;  %v4982_v1 = vmov 0.0   ;;  %v4685_v2 = vld [vmem:[#allocation2 + $0x4] ss:$12 sps:$4 sm:$0xff]   ;;  %v4687_v3 = vld [vmem:[#allocation2] ss:$12 sps:$4 sm:$0xff]   ;;  %v517_v28 = vlaneseq }
  0x5c   : > { %4968 = vsyncadd (%p5454_p3), [#allocation5], 4294934528  ;;  %692 = vmatprep.mubr.bf16.mxu0 %v4981_v0  ;;  %4547 = vmatprep.subr.bf16.mxu1 %v4982_v1  ;;  %v4688_v4 = vld [vmem:[#allocation2 + $0x1c] ss:$12 sps:$4 sm:$0xff]   ;;  %v4690_v5 = vld [vmem:[#allocation2 + $0x18] ss:$12 sps:$4 sm:$0xff]  }
  0x5d   : > { %660 = vmatprep.subr.bf16.mxu0 %v4685_v2  ;;  %v4691_v6 = vld [vmem:[#allocation2 + $0x34] ss:$12 sps:$4 sm:$0xff]   ;;  %p472_p5 = scmp.lt.s32.totalorder %s5063_s28, 1  ;;  %v4693_v7 = vld [vmem:[#allocation2 + $0x30] ss:$12 sps:$4 sm:$0xff]   ;;  %vm4983_vm0 = vmmov 0  }
  0x5e   : > { %661 = vmatpush1.bf16.msra.mxu0 %v4687_v3  ;;  %v4694_v8 = vld [vmem:[#allocation2 + $0x4c] ss:$12 sps:$4 sm:$0xff]   ;;  %v4696_v9 = vld [vmem:[#allocation2 + $0x48] ss:$12 sps:$4 sm:$0xff]   ;;  %v4697_v11 = vld [vmem:[#allocation2 + $0x64] ss:$12 sps:$4 sm:$0xff]   ;;  %4563 = vmatprep.mubr.msk.bf16.mxu1 %vm4983_vm0, %v4982_v1 }
  0x5f   : > { %662 = vmatprep.subr.bf16.mxu0 %v4688_v4  ;;  %s5458_s28 = smov (!%p472_p5, %s5063_s28), 1  ;;  %v4709_v10 = vld [vmem:[#allocation2 + $0x8] ss:$12 sps:$4 sm:$0xff]   ;;  %v4710_v12 = vld [vmem:[#allocation2 + $0x20] ss:$12 sps:$4 sm:$0xff]   ;;  %v5201_v29 = vshrl.u32 %v517_v28, 7 }
  0x60   : > { %4548 = vmatpush3.bf16.msra.mxu1 %v4709_v10  ;;  %s4031_s29 = sshll.u32 %s5458_s28, 3  ;;  %v4699_v13 = vld [vmem:[#allocation2 + $0x60] ss:$12 sps:$4 sm:$0xff]   ;;  %v4700_v14 = vld [vmem:[#allocation2 + $0x7c] ss:$12 sps:$4 sm:$0xff]   ;;  %vm745_vm1 = vcmask 261120  }
  0x61   : > { %4549 = vmatprep.subr.bf16.mxu1 %v4982_v1  ;;  %v4702_v15 = vld [vmem:[#allocation2 + $0x78] ss:$12 sps:$4 sm:$0xff]   ;;  %v4703_v17 = vld [vmem:[#allocation2 + $0x94] ss:$12 sps:$4 sm:$0xff]   ;;  %v4712_v18 = vld [vmem:[#allocation2 + $0x50] ss:$12 sps:$4 sm:$0xff]   ;;  %s475_s23 = scalar_lea.vmem %s5428_s0, %s4031_s29 }
  0x62   : > { %663 = vmatpush1.bf16.msra.mxu0 %v4690_v5  ;;  %v4711_v16 = vld [vmem:[#allocation2 + $0x38] ss:$12 sps:$4 sm:$0xff]   ;;  %v4705_v19 = vld [vmem:[#allocation2 + $0x90] ss:$12 sps:$4 sm:$0xff]   ;;  %v4713_v21 = vld [vmem:[#allocation2 + $0x68] ss:$12 sps:$4 sm:$0xff]  }
  0x63   : > { %664 = vmatprep.subr.bf16.mxu0 %v4691_v6  ;;  %v4706_v20 = vld [vmem:[#allocation2 + $0xac] ss:$12 sps:$4 sm:$0xff]   ;;  %v4708_v22 = vld [vmem:[#allocation2 + $0xa8] ss:$12 sps:$4 sm:$0xff]   ;;  %v5185_v23 = vld [vmem:[%s475_s23] sm:$0xff]  ;;  %v5204_v30 = vsub.s32 0, %v5201_v29 }
  0x64   : > { %4550 = vmatpush3.bf16.msra.mxu1 %v4710_v12  ;;  %v4714_v24 = vld [vmem:[#allocation2 + $0x80] ss:$12 sps:$4 sm:$0xff]   ;;  %v482_v25 = vpack.c.bf16 %v5185_v23, %v5185_v23  ;;  %v4715_v26 = vld [vmem:[#allocation2 + $0x98] ss:$12 sps:$4 sm:$0xff]   ;;  %v4716_v27 = vld [vmem:[#allocation2 + $0xb0] ss:$12 sps:$4 sm:$0xff]  }
  0x65   : > { %4551 = vmatprep.subr.bf16.mxu1 %v4982_v1  ;;  %v515_v31 = vld [vmem:[%s5430_s2] sm:$0x7]  ;;  %v5210_v32 = vsub.s32 1, %v5201_v29  ;;  %s4984_s20 = smov 96   ;;  %s4985_s21 = smov 64   ;;  %v5225_v45 = vsub.s32 2, %v5201_v29 }
  0x66   : > { %665 = vmatpush1.bf16.msra.mxu0 %v4693_v7  ;;  %v520_v33 = vrot.slane %v515_v31, %v5204_v30  ;;  %s4986_s22 = smov 32   ;;  %vm808_vm2 = vcmask 1043456   ;;  %vm792_vm3 = vcmask 64512   ;;  %vm1198_vm4 = vcmask 523264  }
  0x67   : > { %666 = vmatprep.subr.bf16.mxu0 %v4694_v8  ;;  %v524_v34 = vrot.slane %v515_v31, %v5210_v32  ;;  %v528_v46 = vrot.slane %v515_v31, %v5225_v45  ;;  %vm1200_vm5 = vcmask 785408  }
  0x68   : > { %4552 = vmatpush3.bf16.msra.mxu1 %v4711_v16 }
  0x69   : > { %4553 = vmatprep.subr.bf16.mxu1 %v4982_v1 }
  0x6a   : > { %667 = vmatpush1.bf16.msra.mxu0 %v4696_v9 }
  0x6b   : > { %668 = vmatprep.subr.bf16.mxu0 %v4697_v11 }
  0x6c   : > { %4554 = vmatpush3.bf16.msra.mxu1 %v4712_v18 }
  0x6d   : > { %4555 = vmatprep.subr.bf16.mxu1 %v4982_v1 }
  0x6e   : > { %669 = vmatpush1.bf16.msra.mxu0 %v4699_v13 }
  0x6f   : > { %670 = vmatprep.subr.bf16.mxu0 %v4700_v14 }
  0x70   : > { %4556 = vmatpush3.bf16.msra.mxu1 %v4713_v21 }
  0x71   : > { %4557 = vmatprep.subr.bf16.mxu1 %v4982_v1 }
  0x72   : > { %671 = vmatpush1.bf16.msra.mxu0 %v4702_v15 }
  0x73   : > { %672 = vmatprep.subr.bf16.mxu0 %v4703_v17 }
  0x74   : > { %4558 = vmatpush3.bf16.msra.mxu1 %v4714_v24 }
  0x75   : > { %4559 = vmatprep.subr.bf16.mxu1 %v4982_v1 }
  0x76   : > { %673 = vmatpush1.bf16.msra.mxu0 %v4705_v19 }
  0x77   : > { %674 = vmatprep.subr.bf16.mxu0 %v4706_v20 }
  0x78   : > { %4560 = vmatpush3.bf16.msra.mxu1 %v4715_v26 }
  0x79   : > { %4561 = vmatprep.subr.bf16.mxu1 %v4982_v1 }
  0x7a   : > { %675 = vmatpush1.bf16.msra.mxu0 %v4708_v22 }
  0x7b   : > { %4591 = vmatprep.subr.bf16.mxu0 %v4982_v1 }
  0x7c   : > { %4562 = vmatpush3.bf16.msra.mxu1 %v4716_v27 }
  0x7d   : > { %693 = vmatmul.mubr.bf16.vlgmr.msra.gmra.mrb[0].mxu0 %v482_v25  ;;  %4567 = vmatprep.subr.bf16.mxu1 %v4982_v1 }
  0x7e   : > { %4593 = vmatprep.mubr.msk.bf16.mxu0 %vm4983_vm0, %v4982_v1 }
  0x7f   : > { %4564 = vmatmul.mubr.bf16.vlgmr.msra.gmra.mrb[0].mxu1 %v482_v25 }
  0x80   : > { %4569 = vmatprep.mubr.msk.bf16.mxu1 %vm4983_vm0, %v4982_v1 }
 0x150   : > { %v694_v35 = vpop.f32.mrb[0].mxu0 }
 0x151   : > { %v695_v36 = vadd.f32 %v694_v35, %v520_v33  ;;  %v696_v37 = vpop.f32.mrb[1].mxu0 }
 0x152   : > { %v697_v38 = vadd.f32 %v696_v37, %v524_v34  ;;  %v698_v39 = vpop.f32.mrb[2].mxu0  ;;  %v735_v47 = vpop.f32.mrb[0].mxu1 }
 0x153   : > { %v699_v40 = vpop.f32.mrb[3].mxu0  ;;  %v741_v41 = vmul.f32 0.17677669, %v695_v36  ;;  %v736_v48 = vadd.f32 %v735_v47, %v528_v46  ;;  %v4565_v49 = vpop.f32.mrb[1].mxu1 }
 0x154   : > { %v743_v42 = vpack.c.bf16 %v697_v38, %v697_v38  ;;  %v738_v50 = vpop.f32.mrb[2].mxu1 }
 0x155   : > { %v742_v44 = vpack.c.bf16 %v741_v41, %v741_v41  ;;  %v5228_v51 = vpack.c.bf16 %v736_v48, %v736_v48  ;;  %v4566_v52 = vpop.f32.mrb[3].mxu1 }
 0x156   : > { %856 = vrot.lane.b32.xlu1 %v743_v42, %s4984_s20  ;;  %v750_v43 = vsel %vm745_vm1, %v743_v42, 0 }
 0x157   : > { %4568 = vmatpush3.bf16.xpose.msra.mxu1 %v750_v43  ;;  %v810_v53 = vsel %vm808_vm2, %v5228_v51, 0 }
 0x158   : > { %4573 = vmatprep.subr.bf16.mxu1 %v4982_v1 }
 0x15a   : > { %853 = vrot.lane.b32.xlu1 %v742_v44, %s4984_s20 }
 0x15e   : > { %965 = vrot.lane.b32.xlu1 %v742_v44, %s4985_s21  ;;  %4570 = vmatmul.mubr.msk.bf16.vlgmr.msra.gmra.mrb[4].mxu1 %vm745_vm1, %v742_v44 }
 0x15f   : > { %4575 = vmatprep.mubr.msk.bf16.mxu1 %vm4983_vm0, %v4982_v1  ;;  %4574 = vmatpush3.bf16.msra.mxu1 %v810_v53 }
 0x160   : > { %4579 = vmatprep.subr.bf16.mxu1 %v4982_v1 }
 0x162   : > { %1077 = vrot.lane.b32.xlu1 %v743_v42, %s4986_s22 }
 0x166   : > { %1075 = vrot.lane.b32.xlu1 %v742_v44, %s4986_s22 }
 0x1c8   : > { %v857_v2 = vpop.permute.xlu1 %856 }
 0x1c9   : > { %v862_v13 = vsel %vm745_vm1, %v857_v2, 0 }
 0x1cc   : > { %v854_v3 = vpop.permute.xlu1 %853 }
 0x1d0   : > { %v966_v5 = vpop.permute.xlu1 %965 }
 0x1d4   : > { %v1078_v8 = vpop.permute.xlu1 %1077 }
 0x1d5   : > { %v1083_v11 = vsel %vm745_vm1, %v1078_v8, 0 }
 0x1d8   : > { %v1076_v14 = vpop.permute.xlu1 %1075 }
 0x231   : > { %v786_v54 = vpop.f32.mrb[4].mxu1 }
 0x232   : > { %v4571_v55 = vpop.f32.mrb[5].mxu1  ;;  %v793_v56 = vsel %vm792_vm3, %v786_v54, -inf }
 0x233   : > { %794 = vmax.xlane.f32.xlu0 %v793_v56  ;;  %v789_v57 = vpop.f32.mrb[6].mxu1 }
 0x234   : > { %v4572_v58 = vpop.f32.mrb[7].mxu1 }
 0x2c0   : > { %v795_v59 = vpop.xlane.xlu0 %794 }
 0x2c1   : > { %v796_v60 = vsub.f32 %v786_v54, %v795_v59 }
 0x2c3   : > { %v797_v61 = vmul.f32 1.442695, %v796_v60 }
 0x2c5   : > { %4853 = vpow2.f32 %v797_v61 }
 0x2cf   : > { %v4854_v62 = vpop.eup %4853 }
 0x2d0   : > { %v799_v63 = vsel %vm792_vm3, %v4854_v62, 0.0 }
 0x2d1   : > { %800 = vadd.xlane.f32.xlu0 %v799_v63 }
 0x2e7   : > { %967 = vrot.lane.b32.xlu0 %v743_v42, %s4985_s21 }
 0x35e   : > { %v801_v4 = vpop.xlane.xlu0 %800 }
 0x35f   : > { %4855 = vrcp.f32 %v801_v4 }
 0x362   : > { %v968_v6 = vpop.permute.xlu0 %967 }
 0x363   : > { %v973_v7 = vsel %vm745_vm1, %v968_v6, 0 }
 0x364   : > { %4592 = vmatpush3.bf16.xpose.msra.mxu0 %v973_v7 }
 0x365   : > { %4603 = vmatprep.subr.bf16.mxu0 %v4982_v1 }
 0x369   : > { %v4856_v9 = vpop.eup %4855 }
 0x36a   : > { %v803_v10 = vmul.f32 %v4856_v9, %v4854_v62 }
 0x36b   : > { %4594 = vmatmul.mubr.msk.bf16.vlgmr.msra.gmra.mrb[4].mxu0 %vm745_vm1, %v966_v5 }
 0x36c   : > { %4604 = vmatpush3.bf16.xpose.msra.mxu0 %v1083_v11  ;;  %v804_v12 = vpack.c.bf16 %v803_v10, %v803_v10  ;;  %4605 = vmatprep.mubr.msk.bf16.mxu0 %vm4983_vm0, %v4982_v1  ;;  %v4717_v10 = vld [vmem:[%s5431_s3] sm:$0xff]   ;;  %v4718_v11 = vld [vmem:[%s5431_s3 + $0x8] sm:$0xff]  }
 0x36d   : > { %4615 = vmatprep.subr.bf16.mxu0 %v4982_v1 }
 0x36e   : > { %4576 = vmatmul.mubr.msk.bf16.vlgmr.msra.gmra.mrb[8].mxu1 %vm792_vm3, %v804_v12  ;;  %v4719_v12 = vld [vmem:[%s5431_s3 + $0x10] sm:$0xff]  }
 0x36f   : > { %4580 = vmatpush3.bf16.xpose.msra.mxu1 %v862_v13  ;;  %4581 = vmatprep.mubr.msk.bf16.mxu1 %vm4983_vm0, %v4982_v1  ;;  %v4720_v13 = vld [vmem:[%s5431_s3 + $0x18] sm:$0xff]  }
 0x370   : > { %4585 = vmatprep.subr.bf16.mxu1 %v4982_v1 }
 0x373   : > { %4606 = vmatmul.mubr.msk.bf16.vlgmr.msra.gmra.mrb[8].mxu0 %vm745_vm1, %v1076_v14  ;;  %v4721_v14 = vld [vmem:[%s5431_s3 + $0x20] sm:$0xff]  }
 0x374   : > { %4631 = vmatprep.mubr.msk.bf16.mxu0 %vm4983_vm0, %v4982_v1  ;;  %4616 = vmatpush3.bf16.msra.mxu0 %v4717_v10 }
 0x375   : > { %4617 = vmatprep.subr.bf16.mxu0 %v4982_v1 }
 0x376   : > { %4582 = vmatmul.mubr.msk.bf16.vlgmr.msra.gmra.mrb[12].mxu1 %vm745_vm1, %v854_v3 }
 0x377   : > { %4587 = vmatprep.mubr.msk.bf16.mxu1 %vm4983_vm0, %v4982_v1 }
 0x378   : > { %4618 = vmatpush3.bf16.msra.mxu0 %v4718_v11 }
 0x379   : > { %4619 = vmatprep.subr.bf16.mxu0 %v4982_v1 }
 0x37c   : > { %4620 = vmatpush3.bf16.msra.mxu0 %v4719_v12 }
 0x37d   : > { %4621 = vmatprep.subr.bf16.mxu0 %v4982_v1 }
 0x380   : > { %4622 = vmatpush3.bf16.msra.mxu0 %v4720_v13  ;;  %v1392_v13 = vld [vmem:[#allocation4 + $0x180] sm:$0xff] }
 0x381   : > { %4623 = vmatprep.subr.bf16.mxu0 %v4982_v1 }
 0x384   : > { %4624 = vmatpush3.bf16.msra.mxu0 %v4721_v14  ;;  %v1400_v14 = vld [vmem:[#allocation4 + $0x1c0] sm:$0xff] }
 0x385   : > { %4625 = vmatprep.subr.bf16.mxu0 %v4982_v1 }
 0x43e   : > { %v1009_v15 = vpop.f32.mrb[4].mxu0 }
 0x43f   : > { %v4595_v16 = vpop.f32.mrb[5].mxu0  ;;  %v1015_v17 = vsel %vm792_vm3, %v1009_v15, -inf }
 0x440   : > { %1016 = vmax.xlane.f32.xlu0 %v1015_v17  ;;  %v1012_v18 = vpop.f32.mrb[6].mxu0  ;;  %v4723_v16 = vld [vmem:[%s5431_s3 + $0x30] sm:$0xff]  }
 0x441   : > { %v5255_v19 = vpop.f32.mrb[8].mxu1  ;;  %v4596_v20 = vpop.f32.mrb[7].mxu0 }
 0x442   : > { %v4577_v21 = vpop.f32.mrb[9].mxu1 }
 0x443   : > { %v849_v22 = vpop.f32.mrb[10].mxu1 }
 0x444   : > { %v4578_v24 = vpop.f32.mrb[11].mxu1  ;;  %v4724_v22 = vld [vmem:[%s5431_s3 + $0x38] sm:$0xff]  }
 0x446   : > { %v1119_v25 = vpop.f32.mrb[8].mxu0 }
 0x447   : > { %v4607_v26 = vpop.f32.mrb[9].mxu0  ;;  %v1125_v37 = vsel %vm792_vm3, %v1119_v25, -inf }
 0x448   : > { %v1122_v27 = vpop.f32.mrb[10].mxu0 }
 0x449   : > { %v898_v28 = vpop.f32.mrb[12].mxu1  ;;  %v4608_v31 = vpop.f32.mrb[11].mxu0 }
 0x44a   : > { %v4583_v33 = vpop.f32.mrb[13].mxu1  ;;  %v904_v34 = vsel %vm792_vm3, %v898_v28, -inf }
 0x44b   : > { %905 = vmax.xlane.f32.xlu1 %v904_v34  ;;  %v901_v35 = vpop.f32.mrb[14].mxu1 }
 0x44c   : > { %v4584_v36 = vpop.f32.mrb[15].mxu1 }
 0x44f   : > { %1126 = vmax.xlane.f32.xlu1 %v1125_v37 }
 0x4cd   : > { %v1017_v38 = vpop.xlane.xlu0 %1016 }
 0x4ce   : > { %v1018_v39 = vsub.f32 %v1009_v15, %v1017_v38  ;;  %v4722_v15 = vld [vmem:[%s5431_s3 + $0x28] sm:$0xff]  }
 0x4cf   : > { %4626 = vmatpush3.bf16.msra.mxu0 %v4722_v15  ;;  %v1393_v15 = vld [vmem:[#allocation4 + $0x188] sm:$0xff] }
 0x4d0   : > { %v1019_v40 = vmul.f32 1.442695, %v1018_v39  ;;  %4627 = vmatprep.subr.bf16.mxu0 %v4982_v1 }
 0x4d2   : > { %4857 = vpow2.f32 %v1019_v40 }
 0x4d3   : > { %4628 = vmatpush3.bf16.msra.mxu0 %v4723_v16  ;;  %v4125_v16 = vcombine.high %v1392_v13, %v1400_v14 }
 0x4d4   : > { %4629 = vmatprep.subr.bf16.mxu0 %v4982_v1 }
 0x4d7   : > { %4630 = vmatpush3.bf16.msra.mxu0 %v4724_v22  ;;  %v1408_v22 = vld [vmem:[#allocation4 + $0x200] sm:$0xff] }
 0x4d8   : > { %v906_v41 = vpop.xlane.xlu1 %905 }
 0x4d9   : > { %v907_v42 = vsub.f32 %v898_v28, %v906_v41  ;;  %v4065_v41 = vld [vmem:[%s5432_s4] ss:$0 sm:$0xff] }
 0x4db   : > { %v908_v48 = vmul.f32 1.442695, %v907_v42 }
 0x4dc   : > { %v4858_v43 = vpop.eup %4857  ;;  %v1127_v44 = vpop.xlane.xlu1 %1126 }
 0x4dd   : > { %v1128_v46 = vsub.f32 %v1119_v25, %v1127_v44  ;;  %v1021_v47 = vsel %vm792_vm3, %v4858_v43, 0.0 }
 0x4de   : > { %1022 = vadd.xlane.f32.xlu0 %v1021_v47 }
 0x4df   : > { %v1129_v49 = vmul.f32 1.442695, %v1128_v46 }
 0x4e1   : > { %4859 = vpow2.f32 %v1129_v49  ;;  %v1352_v49 = vld [vmem:[#allocation4 + $0x40] sm:$0xff] }
 0x4e2   : > { %4861 = vpow2.f32 %v908_v48 }
 0x4eb   : > { %v4860_v50 = vpop.eup %4859 }
 0x4ec   : > { %v1131_v52 = vsel %vm792_vm3, %v4860_v50, 0.0  ;;  %v4862_v53 = vpop.eup %4861 }
 0x4ed   : > { %1132 = vadd.xlane.f32.xlu1 %v1131_v52  ;;  %v910_v54 = vsel %vm792_vm3, %v4862_v53, 0.0 }
 0x4f1   : > { %911 = vadd.xlane.f32.xlu1 %v910_v54  ;;  %v1353_v54 = vld [vmem:[#allocation4 + $0x48] sm:$0xff] }
 0x4f4   : > { %917 = vrot.lane.b32.xlu0 %v5228_v51, %s4984_s20 }
 0x502   : > { %1027 = vrot.lane.b32.xlu1 %v5228_v51, %s4985_s21 }
 0x506   : > { %1137 = vrot.lane.b32.xlu1 %v5228_v51, %s4986_s22 }
 0x56b   : > { %v1023_v55 = vpop.xlane.xlu0 %1022 }
 0x56f   : > { %v918_v56 = vpop.permute.xlu0 %917 }
 0x570   : > { %v923_v57 = vsel %vm808_vm2, %v918_v56, 0  ;;  %v1368_v56 = vld [vmem:[#allocation4 + $0xc0] sm:$0xff] }
 0x571   : > { %4586 = vmatpush3.bf16.msra.mxu1 %v923_v57 }
 0x572   : > { %4597 = vmatprep.subr.bf16.mxu1 %v4982_v1 }
 0x57a   : > { %v1133_v58 = vpop.xlane.xlu1 %1132 }
 0x57e   : > { %v912_v59 = vpop.xlane.xlu1 %911 }
 0x57f   : > { %4863 = vrcp.f32 %v912_v59 }
 0x580   : > { %4865 = vrcp.f32 %v1023_v55  ;;  %v1360_v55 = vld [vmem:[#allocation4 + $0x80] sm:$0xff] }
 0x581   : > { %4867 = vrcp.f32 %v1133_v58  ;;  %v4093_v59 = vcombine.high %v1360_v55, %v1368_v56 }
 0x582   : > { %v1028_v62 = vpop.permute.xlu1 %1027 }
 0x583   : > { %v1033_v3 = vsel %vm808_vm2, %v1028_v62, 0  ;;  %v1376_v62 = vld [vmem:[#allocation4 + $0x100] sm:$0xff] }
 0x586   : > { %v1138_v4 = vpop.permute.xlu1 %1137 }
 0x587   : > { %v1143_v7 = vsel %vm808_vm2, %v1138_v4, 0 }
 0x589   : > { %v4864_v60 = vpop.eup %4863 }
 0x58a   : > { %v914_v61 = vmul.f32 %v4864_v60, %v4862_v53  ;;  %v4866_v2 = vpop.eup %4865  ;;  %v1361_v60 = vld [vmem:[#allocation4 + $0x88] sm:$0xff] }
 0x58b   : > { %v1025_v51 = vmul.f32 %v4866_v2, %v4858_v43  ;;  %v4868_v6 = vpop.eup %4867  ;;  %v1384_v2 = vld [vmem:[#allocation4 + $0x140] sm:$0xff] }
 0x58c   : > { %v915_v63 = vpack.c.bf16 %v914_v61, %v914_v61  ;;  %v1135_v8 = vmul.f32 %v4868_v6, %v4860_v50  ;;  %v1345_v50 = vld [vmem:[#allocation4 + $0x8] sm:$0xff] }
 0x58d   : > { %v1026_v5 = vpack.c.bf16 %v1025_v51, %v1025_v51  ;;  %v4078_v57 = vcombine.low %v1345_v50, %v1353_v54  ;;  %v4079_v58 = vcombine.high %v1345_v50, %v1353_v54  ;;  %v1369_v61 = vld [vmem:[#allocation4 + $0xc8] sm:$0xff]  ;;  %v4092_v51 = vcombine.low %v1360_v55, %v1368_v56  ;;  %v1464_v50 = vld [vmem:[#allocation4 + $0x3c0] sm:$0xff] }
 0x58e   : > { %4588 = vmatmul.mubr.msk.bf16.vlgmr.msra.gmra.mrb[16].mxu1 %vm792_vm3, %v915_v63  ;;  %v1136_v9 = vpack.c.bf16 %v1135_v8, %v1135_v8  ;;  %v4095_v63 = vcombine.high %v1361_v60, %v1369_v61  ;;  %v4094_v4 = vcombine.low %v1361_v60, %v1369_v61  ;;  %v1465_v54 = vld [vmem:[#allocation4 + $0x3c8] sm:$0xff]  ;;  %v1347_v60 = vld [vmem:[#allocation4 + $0x18] sm:$0xff] }
 0x58f   : > { %4598 = vmatpush3.bf16.msra.mxu1 %v1033_v3  ;;  %4599 = vmatprep.mubr.msk.bf16.mxu1 %vm4983_vm0, %v4982_v1  ;;  %v1377_v3 = vld [vmem:[#allocation4 + $0x108] sm:$0xff] }
 0x590   : > { %4609 = vmatprep.subr.bf16.mxu1 %v4982_v1  ;;  %2237 = vmatprep.subr.bf16.mxu0 %v4079_v58  ;;  %v1346_v58 = vld [vmem:[#allocation4 + $0x10] sm:$0xff] }
 0x596   : > { %4600 = vmatmul.mubr.msk.bf16.vlgmr.msra.gmra.mrb[20].mxu1 %vm792_vm3, %v1026_v5  ;;  %v4109_v5 = vcombine.high %v1376_v62, %v1384_v2 }
 0x597   : > { %4610 = vmatpush3.bf16.msra.mxu1 %v1143_v7  ;;  %4611 = vmatprep.mubr.msk.bf16.mxu1 %vm4983_vm0, %v4982_v1  ;;  %v4108_v7 = vcombine.low %v1376_v62, %v1384_v2 }
 0x59e   : > { %4612 = vmatmul.mubr.msk.bf16.vlgmr.msra.gmra.mrb[24].mxu1 %vm792_vm3, %v1136_v9 }
 0x59f   : > { %2228 = vmatprep.mubr.bf16.mxu1 %v4981_v0 }
 0x661   : > { %v959_v17 = vpop.f32.mrb[16].mxu1 }
 0x662   : > { %1186 = vrot.lane.b32.xlu0 %v959_v17, %s4986_s22  ;;  %v4589_v18 = vpop.f32.mrb[17].mxu1  ;;  %v1401_v17 = vld [vmem:[#allocation4 + $0x1c8] sm:$0xff] }
 0x663   : > { %v962_v20 = vpop.f32.mrb[18].mxu1  ;;  %v4124_v18 = vcombine.low %v1392_v13, %v1400_v14  ;;  %v1363_v13 = vld [vmem:[#allocation4 + $0x98] sm:$0xff] }
 0x664   : > { %v4590_v21 = vpop.f32.mrb[19].mxu1  ;;  %v4126_v20 = vcombine.low %v1393_v15, %v1401_v17  ;;  %v1371_v14 = vld [vmem:[#allocation4 + $0xd8] sm:$0xff] }
 0x665   : > { %v4127_v21 = vcombine.high %v1393_v15, %v1401_v17 }
 0x669   : > { %v1069_v24 = vpop.f32.mrb[20].mxu1 }
 0x66a   : > { %1190 = vrot.lane.b32.xlu1 %v1069_v24, %s4985_s21  ;;  %v4601_v25 = vpop.f32.mrb[21].mxu1  ;;  %v1416_v24 = vld [vmem:[#allocation4 + $0x240] sm:$0xff] }
 0x66b   : > { %v1072_v26 = vpop.f32.mrb[22].mxu1  ;;  %v1409_v25 = vld [vmem:[#allocation4 + $0x208] sm:$0xff] }
 0x66c   : > { %v4602_v27 = vpop.f32.mrb[23].mxu1  ;;  %v4141_v26 = vcombine.high %v1408_v22, %v1416_v24 }
 0x66d   : > { %v1417_v27 = vld [vmem:[#allocation4 + $0x248] sm:$0xff] }
 0x671   : > { %v1179_v28 = vpop.f32.mrb[24].mxu1 }
 0x672   : > { %1194 = vrot.lane.b32.xlu0 %v1179_v28, %s4984_s20  ;;  %v4613_v31 = vpop.f32.mrb[25].mxu1  ;;  %v4140_v28 = vcombine.low %v1408_v22, %v1416_v24  ;;  %v1387_v22 = vld [vmem:[#allocation4 + $0x158] sm:$0xff]  ;;  %s5455_s20 = sld [smem:[#allocation10_spill]] }
 0x673   : > { %v1182_v33 = vpop.f32.mrb[26].mxu1  ;;  %v4142_v31 = vcombine.low %v1409_v25, %v1417_v27 }
 0x674   : > { %v4614_v34 = vpop.f32.mrb[27].mxu1  ;;  %v4143_v33 = vcombine.high %v1409_v25, %v1417_v27  ;;  %v4098_v25 = vcombine.low %v1363_v13, %v1371_v14 }
 0x675   : > { %v1424_v34 = vld [vmem:[#allocation4 + $0x280] sm:$0xff] }
 0x678   : > { %s479_s27 = scalar_lea.vmem %s5455_s20, %s4031_s29 }
 0x6d4   : > { %v1187_v35 = vpop.permute.xlu0 %1186 }
 0x6d5   : > { %v1197_v36 = vsel %vm745_vm1, %v5255_v19, %v1187_v35  ;;  %v1344_v19 = vld [vmem:[#allocation4] sm:$0xff] }
 0x6d6   : > { %v4076_v52 = vcombine.low %v1344_v19, %v1352_v49  ;;  %v4077_v53 = vcombine.high %v1344_v19, %v1352_v49  ;;  %v1432_v35 = vld [vmem:[#allocation4 + $0x2c0] sm:$0xff] }
 0x6d7   : > { %v1456_v49 = vld [vmem:[#allocation4 + $0x380] sm:$0xff] }
 0x6d8   : > { %2196 = vmatprep.subr.bf16.mxu1 %v4077_v53  ;;  %v4189_v53 = vcombine.high %v1456_v49, %v1464_v50  ;;  %v4188_v55 = vcombine.low %v1456_v49, %v1464_v50  ;;  %v1435_v49 = vld [vmem:[#allocation4 + $0x2d8] sm:$0xff] }
 0x6d9   : > { %2197 = vmatpush1.bf16.msra.mxu1 %v4076_v52  ;;  %v1457_v52 = vld [vmem:[#allocation4 + $0x388] sm:$0xff] }
 0x6da   : > { %2198 = vmatprep.subr.bf16.mxu1 %v4093_v59  ;;  %v4190_v56 = vcombine.low %v1457_v52, %v1465_v54  ;;  %v1354_v59 = vld [vmem:[#allocation4 + $0x50] sm:$0xff] }
 0x6db   : > { %v4080_v61 = vcombine.low %v1346_v58, %v1354_v59  ;;  %v4081_v62 = vcombine.high %v1346_v58, %v1354_v59  ;;  %v1451_v58 = vld [vmem:[#allocation4 + $0x358] sm:$0xff] }
 0x6dc   : > { %v1191_v1 = vpop.permute.xlu1 %1190 }
 0x6dd   : > { %v1199_v37 = vsel %vm1198_vm4, %v1197_v36, %v1191_v1  ;;  %2199 = vmatpush1.bf16.msra.mxu1 %v4092_v51  ;;  %v1425_v1 = vld [vmem:[#allocation4 + $0x288] sm:$0xff]  ;;  %v4157_v36 = vcombine.high %v1424_v34, %v1432_v35 }
 0x6de   : > { %2200 = vmatprep.subr.bf16.mxu1 %v4109_v5 }
 0x6e1   : > { %2201 = vmatpush1.bf16.msra.mxu1 %v4108_v7 }
 0x6e2   : > { %2202 = vmatprep.subr.bf16.mxu1 %v4125_v16 }
 0x6e4   : > { %v1195_v38 = vpop.permute.xlu0 %1194 }
 0x6e5   : > { %v1201_v39 = vsel %vm1200_vm5, %v1199_v37, %v1195_v38  ;;  %2203 = vmatpush1.bf16.msra.mxu1 %v4124_v18  ;;  %v1433_v37 = vld [vmem:[#allocation4 + $0x2c8] sm:$0xff]  ;;  %v4156_v38 = vcombine.low %v1424_v34, %v1432_v35  ;;  %v4099_v18 = vcombine.high %v1363_v13, %v1371_v14  ;;  %v1403_v34 = vld [vmem:[#allocation4 + $0x1d8] sm:$0xff] }
 0x6e6   : > { %v1202_v40 = vpack.c.bf16 %v1201_v39, %v1201_v39  ;;  %2204 = vmatprep.subr.bf16.mxu1 %v4141_v26  ;;  %v4158_v39 = vcombine.low %v1425_v1, %v1433_v37 }
 0x6e8   : > { %4632 = vmatmul.mubr.bf16.vlgmr.msra.gmra.mrb[12].mxu0 %v1202_v40  ;;  %v4159_v40 = vcombine.high %v1425_v1, %v1433_v37 }
 0x6e9   : > { %2269 = vmatprep.mubr.bf16.mxu0 %v4981_v0  ;;  %2238 = vmatpush1.bf16.msra.mxu0 %v4078_v57  ;;  %v4191_v57 = vcombine.high %v1457_v52, %v1465_v54 }
 0x6ea   : > { %2239 = vmatprep.subr.bf16.mxu0 %v4095_v63  ;;  %2205 = vmatpush1.bf16.msra.mxu1 %v4140_v28  ;;  %v1355_v63 = vld [vmem:[#allocation4 + $0x58] sm:$0xff]  ;;  %v1394_v28 = vld [vmem:[#allocation4 + $0x190] sm:$0xff] }
 0x6eb   : > { %2206 = vmatprep.subr.bf16.mxu1 %v4157_v36  ;;  %v4082_v2 = vcombine.low %v1347_v60, %v1355_v63 }
 0x6ed   : > { %2240 = vmatpush1.bf16.msra.mxu0 %v4094_v4 }
 0x6ee   : > { %2207 = vmatpush1.bf16.msra.mxu1 %v4156_v38  ;;  %v1410_v38 = vld [vmem:[#allocation4 + $0x210] sm:$0xff] }
 0x7bb   : > { %v1308_v42 = vpop.f32.mrb[12].mxu0 }
 0x7bc   : > { %v1309_v43 = vadd.f32 %v4065_v41, %v1308_v42  ;;  %v4633_v44 = vpop.f32.mrb[13].mxu0  ;;  %v1440_v41 = vld [vmem:[#allocation4 + $0x300] sm:$0xff] }
 0x7bd   : > { %v1311_v46 = vpop.f32.mrb[14].mxu0  ;;  %v1448_v42 = vld [vmem:[#allocation4 + $0x340] sm:$0xff] }
 0x7be   : > { %v4634_v47 = vpop.f32.mrb[15].mxu0  ;;  %v1314_v48 = vadd.f32 %v1309_v43, %v5185_v23  ;;  %v1385_v23 = vld [vmem:[#allocation4 + $0x148] sm:$0xff]  ;;  %v4173_v44 = vcombine.high %v1440_v41, %v1448_v42 }
 0x7bf   : > { %v4111_v6 = vcombine.high %v1377_v3, %v1385_v23  ;;  %v4110_v8 = vcombine.low %v1377_v3, %v1385_v23  ;;  %v1441_v43 = vld [vmem:[#allocation4 + $0x308] sm:$0xff]  ;;  %v4172_v47 = vcombine.low %v1440_v41, %v1448_v42  ;;  %v4083_v3 = vcombine.high %v1347_v60, %v1355_v63  ;;  %v1419_v41 = vld [vmem:[#allocation4 + $0x258] sm:$0xff]  ;;  %v1458_v63 = vld [vmem:[#allocation4 + $0x390] sm:$0xff] }
 0x7c0   : > { %1317 = vadd.xlane.f32.xlu1 %v1314_v48  ;;  %v1449_v46 = vld [vmem:[#allocation4 + $0x348] sm:$0xff]  ;;  %2208 = vmatprep.subr.bf16.mxu1 %v4173_v44 }
 0x7c1   : > { %2241 = vmatprep.subr.bf16.mxu0 %v4111_v6  ;;  %v4175_v19 = vcombine.high %v1441_v43, %v1449_v46  ;;  %2209 = vmatpush1.bf16.msra.mxu1 %v4172_v47  ;;  %v4074_v6 = vld [vmem:[%s5433_s5] ss:$0 sm:$0xff]  ;;  %v1426_v47 = vld [vmem:[#allocation4 + $0x290] sm:$0xff] }
 0x7c2   : > { %2242 = vmatpush1.bf16.msra.mxu0 %v4110_v8  ;;  %2210 = vmatprep.subr.bf16.mxu1 %v4189_v53  ;;  %v4075_v8 = vld [vmem:[%s5434_s6] ss:$0 sm:$0xff] }
 0x7c3   : > { %2243 = vmatprep.subr.bf16.mxu0 %v4127_v21  ;;  %v1386_v21 = vld [vmem:[#allocation4 + $0x150] sm:$0xff] }
 0x7c5   : > { %2211 = vmatpush1.bf16.msra.mxu1 %v4188_v55  ;;  %v1442_v55 = vld [vmem:[#allocation4 + $0x310] sm:$0xff] }
 0x7c6   : > { %2244 = vmatpush1.bf16.msra.mxu0 %v4126_v20  ;;  %2278 = vmatprep.subr.bf16.mxu1 %v4081_v62  ;;  %v1378_v20 = vld [vmem:[#allocation4 + $0x110] sm:$0xff] }
 0x7c7   : > { %2245 = vmatprep.subr.bf16.mxu0 %v4143_v33  ;;  %v4113_v26 = vcombine.high %v1378_v20, %v1386_v21  ;;  %v1395_v33 = vld [vmem:[#allocation4 + $0x198] sm:$0xff]  ;;  %v4112_v35 = vcombine.low %v1378_v20, %v1386_v21  ;;  %v1372_v20 = vld [vmem:[#allocation4 + $0xe0] sm:$0xff]  ;;  %v1365_v21 = vld [vmem:[#allocation4 + $0xa8] sm:$0xff] }
 0x7c8   : > { %v4131_v37 = vcombine.high %v1395_v33, %v1403_v34 }
 0x7ca   : > { %2246 = vmatpush1.bf16.msra.mxu0 %v4142_v31  ;;  %v1402_v31 = vld [vmem:[#allocation4 + $0x1d0] sm:$0xff] }
 0x7cb   : > { %2247 = vmatprep.subr.bf16.mxu0 %v4159_v40  ;;  %v4129_v36 = vcombine.high %v1394_v28, %v1402_v31  ;;  %v1411_v40 = vld [vmem:[#allocation4 + $0x218] sm:$0xff]  ;;  %v4128_v42 = vcombine.low %v1394_v28, %v1402_v31  ;;  %v1388_v28 = vld [vmem:[#allocation4 + $0x160] sm:$0xff]  ;;  %v1381_v31 = vld [vmem:[#allocation4 + $0x128] sm:$0xff] }
 0x7cc   : > { %v4146_v52 = vcombine.low %v1411_v40, %v1419_v41 }
 0x7ce   : > { %2248 = vmatpush1.bf16.msra.mxu0 %v4158_v39  ;;  %v1418_v39 = vld [vmem:[#allocation4 + $0x250] sm:$0xff] }
 0x7cf   : > { %2249 = vmatprep.subr.bf16.mxu0 %v4175_v19  ;;  %v4145_v44 = vcombine.high %v1410_v38, %v1418_v39  ;;  %v1427_v19 = vld [vmem:[#allocation4 + $0x298] sm:$0xff]  ;;  %v4144_v50 = vcombine.low %v1410_v38, %v1418_v39  ;;  %v1404_v38 = vld [vmem:[#allocation4 + $0x1e0] sm:$0xff]  ;;  %v1397_v39 = vld [vmem:[#allocation4 + $0x1a8] sm:$0xff] }
 0x7d0   : > { %v4163_v54 = vcombine.high %v1427_v19, %v1435_v49  ;;  %v4162_v60 = vcombine.low %v1427_v19, %v1435_v49  ;;  %v1421_v19 = vld [vmem:[#allocation4 + $0x268] sm:$0xff] }
 0x84d   : > { %v1318_v9 = vpop.xlane.xlu1 %1317 }
 0x84e   : > { %v1320_v10 = vmul.f32 0.0078125, %v1318_v9 }
 0x850   : > { %v5322_v11 = vsub.f32 %v1314_v48, %v1320_v10  ;;  %v4174_v48 = vcombine.low %v1441_v43, %v1449_v46  ;;  %v1362_v10 = vld [vmem:[#allocation4 + $0x90] sm:$0xff]  ;;  %v4130_v43 = vcombine.low %v1395_v33, %v1403_v34  ;;  %v4147_v46 = vcombine.high %v1411_v40, %v1419_v41  ;;  %v1389_v33 = vld [vmem:[#allocation4 + $0x168] sm:$0xff] }
 0x851   : > { %v1405_v40 = vld [vmem:[#allocation4 + $0x1e8] sm:$0xff] }
 0x852   : > { %v1322_v12 = vmul.f32 %v5322_v11, %v5322_v11  ;;  %2250 = vmatpush1.bf16.msra.mxu0 %v4174_v48  ;;  %v1434_v48 = vld [vmem:[#allocation4 + $0x2d0] sm:$0xff] }
 0x853   : > { %2251 = vmatprep.subr.bf16.mxu0 %v4191_v57  ;;  %v4161_v53 = vcombine.high %v1426_v47, %v1434_v48  ;;  %v1443_v57 = vld [vmem:[#allocation4 + $0x318] sm:$0xff]  ;;  %v4160_v59 = vcombine.low %v1426_v47, %v1434_v48  ;;  %v1420_v47 = vld [vmem:[#allocation4 + $0x260] sm:$0xff]  ;;  %v1413_v48 = vld [vmem:[#allocation4 + $0x228] sm:$0xff] }
 0x854   : > { %1323 = vadd.xlane.f32.xlu0 %v1322_v12  ;;  %v1370_v12 = vld [vmem:[#allocation4 + $0xd0] sm:$0xff]  ;;  %v4179_v62 = vcombine.high %v1443_v57, %v1451_v58 }
 0x855   : > { %v4097_v17 = vcombine.high %v1362_v10, %v1370_v12  ;;  %v4096_v24 = vcombine.low %v1362_v10, %v1370_v12  ;;  %v1357_v10 = vld [vmem:[#allocation4 + $0x68] sm:$0xff] }
 0x856   : > { %2252 = vmatpush1.bf16.msra.mxu0 %v4190_v56  ;;  %v1450_v56 = vld [vmem:[#allocation4 + $0x350] sm:$0xff] }
 0x857   : > { %2319 = vmatprep.subr.bf16.mxu0 %v4083_v3  ;;  %v1459_v3 = vld [vmem:[#allocation4 + $0x398] sm:$0xff] }
 0x8e1   : > { %v1324_v23 = vpop.xlane.xlu0 %1323 }
 0x8e2   : > { %v1325_v51 = vmul.f32 0.0078125, %v1324_v23  ;;  %v1467_v23 = vld [vmem:[#allocation4 + $0x3d8] sm:$0xff] }
 0x8e3   : > { %v4194_v13 = vcombine.low %v1459_v3, %v1467_v23 }
 0x8e4   : > { %v1326_v4 = vadd.f32 1e-05, %v1325_v51  ;;  %v4176_v51 = vcombine.low %v1442_v55, %v1450_v56 }
 0x8e6   : > { %4869 = vrsqrt.f32 %v1326_v4  ;;  %v4178_v4 = vcombine.low %v1443_v57, %v1451_v58  ;;  %v1437_v57 = vld [vmem:[#allocation4 + $0x2e8] sm:$0xff] }
 0x8f0   : > { %v4870_v5 = vpop.eup %4869 }
 0x8f1   : > { %v1328_v7 = vmul.f32 %v4870_v5, %v5322_v11  ;;  %v1379_v11 = vld [vmem:[#allocation4 + $0x118] sm:$0xff] }
 0x8f2   : > { %v4115_v27 = vcombine.high %v1379_v11, %v1387_v22  ;;  %v4114_v1 = vcombine.low %v1379_v11, %v1387_v22  ;;  %v1373_v11 = vld [vmem:[#allocation4 + $0xe8] sm:$0xff] }
 0x8f3   : > { %v1335_v9 = vmul.f32 %v4074_v6, %v1328_v7  ;;  %v4195_v6 = vcombine.high %v1459_v3, %v1467_v23  ;;  %v1348_v7 = vld [vmem:[#allocation4 + $0x20] sm:$0xff]  ;;  %v1453_v3 = vld [vmem:[#allocation4 + $0x368] sm:$0xff] }
 0x8f5   : > { %v5333_v15 = vadd.f32 %v4075_v8, %v1335_v9  ;;  %v1356_v8 = vld [vmem:[#allocation4 + $0x60] sm:$0xff]  ;;  %v1349_v9 = vld [vmem:[#allocation4 + $0x28] sm:$0xff] }
 0x8f6   : > { %v4085_v14 = vcombine.high %v1348_v7, %v1356_v8  ;;  %v4084_v22 = vcombine.low %v1348_v7, %v1356_v8  ;;  %v1468_v7 = vld [vmem:[#allocation4 + $0x3e0] sm:$0xff]  ;;  %v1461_v8 = vld [vmem:[#allocation4 + $0x3a8] sm:$0xff] }
 0x8f7   : > { %v5337_v16 = vpack.c.bf16 %v5333_v15, %v5333_v15 }
 0x8f9   : > { %2229 = vmatmul.mubr.bf16.vlgmr.msra.gmra.mrb[28].mxu1 %v5337_v16  ;;  %2270 = vmatmul.mubr.bf16.vlgmr.msra.gmra.mrb[16].mxu0 %v5337_v16 }
 0x8fa   : > { %2279 = vmatpush1.bf16.msra.mxu1 %v4080_v61  ;;  %2320 = vmatpush1.bf16.msra.mxu0 %v4082_v2  ;;  %v4177_v61 = vcombine.high %v1442_v55, %v1450_v56  ;;  %v1466_v2 = vld [vmem:[#allocation4 + $0x3d0] sm:$0xff]  ;;  %v1436_v55 = vld [vmem:[#allocation4 + $0x2e0] sm:$0xff]  ;;  %v1429_v56 = vld [vmem:[#allocation4 + $0x2a8] sm:$0xff] }
 0x8fb   : > { %2280 = vmatprep.subr.bf16.mxu1 %v4097_v17  ;;  %2321 = vmatprep.subr.bf16.mxu0 %v4099_v18  ;;  %v4193_v5 = vcombine.high %v1458_v63, %v1466_v2  ;;  %v4192_v12 = vcombine.low %v1458_v63, %v1466_v2  ;;  %v4087_v17 = vcombine.high %v1349_v9, %v1357_v10  ;;  %v1364_v18 = vld [vmem:[#allocation4 + $0xa0] sm:$0xff]  ;;  %v1445_v2 = vld [vmem:[#allocation4 + $0x328] sm:$0xff] }
 0x8fc   : > { %2310 = vmatprep.mubr.bf16.mxu1 %v4981_v0  ;;  %2351 = vmatprep.mubr.bf16.mxu0 %v4981_v0  ;;  %v4100_v34 = vcombine.low %v1364_v18, %v1372_v20  ;;  %v1452_v63 = vld [vmem:[#allocation4 + $0x360] sm:$0xff] }
 0x8fe   : > { %2281 = vmatpush1.bf16.msra.mxu1 %v4096_v24  ;;  %2322 = vmatpush1.bf16.msra.mxu0 %v4098_v25  ;;  %v4086_v24 = vcombine.low %v1349_v9, %v1357_v10  ;;  %v4101_v25 = vcombine.high %v1364_v18, %v1372_v20  ;;  %v1469_v9 = vld [vmem:[#allocation4 + $0x3e8] sm:$0xff]  ;;  %v1358_v18 = vld [vmem:[#allocation4 + $0x70] sm:$0xff]  ;;  %v1351_v20 = vld [vmem:[#allocation4 + $0x38] sm:$0xff] }
 0x8ff   : > { %2282 = vmatprep.subr.bf16.mxu1 %v4113_v26  ;;  %2323 = vmatprep.subr.bf16.mxu0 %v4115_v27  ;;  %v4103_v26 = vcombine.high %v1365_v21, %v1373_v11  ;;  %v1380_v27 = vld [vmem:[#allocation4 + $0x120] sm:$0xff] }
 0x900   : > { %v4116_v41 = vcombine.low %v1380_v27, %v1388_v28 }
 0x902   : > { %2283 = vmatpush1.bf16.msra.mxu1 %v4112_v35  ;;  %2324 = vmatpush1.bf16.msra.mxu0 %v4114_v1  ;;  %v4102_v35 = vcombine.low %v1365_v21, %v1373_v11  ;;  %v4117_v1 = vcombine.high %v1380_v27, %v1388_v28  ;;  %v1359_v21 = vld [vmem:[#allocation4 + $0x78] sm:$0xff]  ;;  %v1374_v27 = vld [vmem:[#allocation4 + $0xf0] sm:$0xff] }
 0x903   : > { %2284 = vmatprep.subr.bf16.mxu1 %v4129_v36  ;;  %2325 = vmatprep.subr.bf16.mxu0 %v4131_v37  ;;  %v4119_v36 = vcombine.high %v1381_v31, %v1389_v33  ;;  %v1396_v37 = vld [vmem:[#allocation4 + $0x1a0] sm:$0xff]  ;;  %v1367_v28 = vld [vmem:[#allocation4 + $0xb8] sm:$0xff] }
 0x904   : > { %v4132_v49 = vcombine.low %v1396_v37, %v1404_v38 }
 0x906   : > { %2285 = vmatpush1.bf16.msra.mxu1 %v4128_v42  ;;  %2326 = vmatpush1.bf16.msra.mxu0 %v4130_v43  ;;  %v4118_v42 = vcombine.low %v1381_v31, %v1389_v33  ;;  %v4133_v43 = vcombine.high %v1396_v37, %v1404_v38  ;;  %v1375_v31 = vld [vmem:[#allocation4 + $0xf8] sm:$0xff]  ;;  %v1390_v37 = vld [vmem:[#allocation4 + $0x170] sm:$0xff] }
 0x907   : > { %2286 = vmatprep.subr.bf16.mxu1 %v4145_v44  ;;  %2327 = vmatprep.subr.bf16.mxu0 %v4147_v46  ;;  %v4135_v44 = vcombine.high %v1397_v39, %v1405_v40  ;;  %v1412_v46 = vld [vmem:[#allocation4 + $0x220] sm:$0xff]  ;;  %v1383_v38 = vld [vmem:[#allocation4 + $0x138] sm:$0xff] }
 0x908   : > { %v4148_v58 = vcombine.low %v1412_v46, %v1420_v47 }
 0x90a   : > { %2287 = vmatpush1.bf16.msra.mxu1 %v4144_v50  ;;  %2328 = vmatpush1.bf16.msra.mxu0 %v4146_v52  ;;  %v4134_v50 = vcombine.low %v1397_v39, %v1405_v40  ;;  %v4149_v52 = vcombine.high %v1412_v46, %v1420_v47  ;;  %v1391_v39 = vld [vmem:[#allocation4 + $0x178] sm:$0xff]  ;;  %v1406_v46 = vld [vmem:[#allocation4 + $0x1f0] sm:$0xff] }
 0x90b   : > { %2288 = vmatprep.subr.bf16.mxu1 %v4161_v53  ;;  %2329 = vmatprep.subr.bf16.mxu0 %v4163_v54  ;;  %v4151_v53 = vcombine.high %v1413_v48, %v1421_v19  ;;  %v1428_v54 = vld [vmem:[#allocation4 + $0x2a0] sm:$0xff]  ;;  %v1399_v47 = vld [vmem:[#allocation4 + $0x1b8] sm:$0xff] }
 0x90c   : > { %v4164_v23 = vcombine.low %v1428_v54, %v1436_v55 }
 0x90e   : > { %2289 = vmatpush1.bf16.msra.mxu1 %v4160_v59  ;;  %2330 = vmatpush1.bf16.msra.mxu0 %v4162_v60  ;;  %v4150_v59 = vcombine.low %v1413_v48, %v1421_v19  ;;  %v4165_v60 = vcombine.high %v1428_v54, %v1436_v55  ;;  %v1407_v48 = vld [vmem:[#allocation4 + $0x1f8] sm:$0xff]  ;;  %v1422_v54 = vld [vmem:[#allocation4 + $0x270] sm:$0xff] }
 0x90f   : > { %2290 = vmatprep.subr.bf16.mxu1 %v4177_v61  ;;  %2331 = vmatprep.subr.bf16.mxu0 %v4179_v62  ;;  %v4167_v61 = vcombine.high %v1429_v56, %v1437_v57  ;;  %v1444_v62 = vld [vmem:[#allocation4 + $0x320] sm:$0xff]  ;;  %v1415_v55 = vld [vmem:[#allocation4 + $0x238] sm:$0xff] }
 0x910   : > { %v4180_v10 = vcombine.low %v1444_v62, %v1452_v63 }
 0x912   : > { %2291 = vmatpush1.bf16.msra.mxu1 %v4176_v51  ;;  %2332 = vmatpush1.bf16.msra.mxu0 %v4178_v4  ;;  %v4166_v51 = vcombine.low %v1429_v56, %v1437_v57  ;;  %v4181_v4 = vcombine.high %v1444_v62, %v1452_v63  ;;  %v1423_v56 = vld [vmem:[#allocation4 + $0x278] sm:$0xff] }
 0x913   : > { %2292 = vmatprep.subr.bf16.mxu1 %v4193_v5  ;;  %2333 = vmatprep.subr.bf16.mxu0 %v4195_v6  ;;  %v4183_v5 = vcombine.high %v1445_v2, %v1453_v3  ;;  %v1460_v6 = vld [vmem:[#allocation4 + $0x3a0] sm:$0xff]  ;;  %v1431_v62 = vld [vmem:[#allocation4 + $0x2b8] sm:$0xff] }
 0x914   : > { %v4196_v11 = vcombine.low %v1460_v6, %v1468_v7  ;;  %v1439_v63 = vld [vmem:[#allocation4 + $0x2f8] sm:$0xff] }
 0x916   : > { %2293 = vmatpush1.bf16.msra.mxu1 %v4192_v12  ;;  %2334 = vmatpush1.bf16.msra.mxu0 %v4194_v13  ;;  %v4182_v12 = vcombine.low %v1445_v2, %v1453_v3  ;;  %v4197_v13 = vcombine.high %v1460_v6, %v1468_v7  ;;  %v4154_v3 = vcombine.low %v1415_v55, %v1423_v56  ;;  %v1447_v6 = vld [vmem:[#allocation4 + $0x338] sm:$0xff] }
 0x917   : > { %2360 = vmatprep.subr.bf16.mxu1 %v4085_v14  ;;  %2401 = vmatprep.subr.bf16.mxu0 %v4087_v17  ;;  %v4199_v14 = vcombine.high %v1461_v8, %v1469_v9  ;;  %v1350_v17 = vld [vmem:[#allocation4 + $0x30] sm:$0xff]  ;;  %v1455_v7 = vld [vmem:[#allocation4 + $0x378] sm:$0xff] }
 0x918   : > { %v4088_v33 = vcombine.low %v1350_v17, %v1358_v18 }
 0x919   : > { %2311 = vmatmul.mubr.bf16.vlgmr.msra.gmra.mrb[32].mxu1 %v5337_v16  ;;  %2352 = vmatmul.mubr.bf16.vlgmr.msra.gmra.mrb[20].mxu0 %v5337_v16 }
 0x91a   : > { %2361 = vmatpush1.bf16.msra.mxu1 %v4084_v22  ;;  %2402 = vmatpush1.bf16.msra.mxu0 %v4086_v24  ;;  %v4198_v22 = vcombine.low %v1461_v8, %v1469_v9  ;;  %v4089_v24 = vcombine.high %v1350_v17, %v1358_v18  ;;  %v4170_v9 = vcombine.low %v1431_v62, %v1439_v63  ;;  %v1463_v17 = vld [vmem:[#allocation4 + $0x3b8] sm:$0xff] }
 0x91b   : > { %2362 = vmatprep.subr.bf16.mxu1 %v4101_v25  ;;  %2403 = vmatprep.subr.bf16.mxu0 %v4103_v26  ;;  %v4091_v25 = vcombine.high %v1351_v20, %v1359_v21  ;;  %v1366_v26 = vld [vmem:[#allocation4 + $0xb0] sm:$0xff]  ;;  %v1471_v18 = vld [vmem:[#allocation4 + $0x3f8] sm:$0xff] }
 0x91c   : > { %2392 = vmatprep.mubr.bf16.mxu1 %v4981_v0  ;;  %2433 = vmatprep.mubr.bf16.mxu0 %v4981_v0  ;;  %v4104_v40 = vcombine.low %v1366_v26, %v1374_v27 }
 0x91e   : > { %2363 = vmatpush1.bf16.msra.mxu1 %v4100_v34  ;;  %2404 = vmatpush1.bf16.msra.mxu0 %v4102_v35  ;;  %v4090_v34 = vcombine.low %v1351_v20, %v1359_v21  ;;  %v4105_v35 = vcombine.high %v1366_v26, %v1374_v27  ;;  %v4186_v21 = vcombine.low %v1447_v6, %v1455_v7  ;;  %v4725_v26 = vld [vmem:[#allocation6 + $0x40] sm:$0xff]  }
 0x91f   : > { %2364 = vmatprep.subr.bf16.mxu1 %v4117_v1  ;;  %2405 = vmatprep.subr.bf16.mxu0 %v4119_v36  ;;  %v4107_v1 = vcombine.high %v1367_v28, %v1375_v31  ;;  %v1382_v36 = vld [vmem:[#allocation4 + $0x130] sm:$0xff]  ;;  %v4726_v27 = vld [vmem:[#allocation6 + $0xc0] sm:$0xff]  }
 0x920   : > { %v4120_v19 = vcombine.low %v1382_v36, %v1390_v37 }
 0x922   : > { %2365 = vmatpush1.bf16.msra.mxu1 %v4116_v41  ;;  %2406 = vmatpush1.bf16.msra.mxu0 %v4118_v42  ;;  %v4106_v41 = vcombine.low %v1367_v28, %v1375_v31  ;;  %v4121_v42 = vcombine.high %v1382_v36, %v1390_v37  ;;  %v4727_v28 = vld [vmem:[#allocation6] sm:$0xff]   ;;  %v4733_v36 = vld [vmem:[#allocation6 + $0x50] sm:$0xff]  }
 0x923   : > { %2366 = vmatprep.subr.bf16.mxu1 %v4133_v43  ;;  %2407 = vmatprep.subr.bf16.mxu0 %v4135_v44  ;;  %v4123_v43 = vcombine.high %v1383_v38, %v1391_v39  ;;  %v1398_v44 = vld [vmem:[#allocation4 + $0x1b0] sm:$0xff]  ;;  %v4728_v31 = vld [vmem:[#allocation6 + $0x80] sm:$0xff]  }
 0x924   : > { %v4136_v57 = vcombine.low %v1398_v44, %v1406_v46  ;;  %v4734_v37 = vld [vmem:[#allocation6 + $0xd0] sm:$0xff]  }
 0x926   : > { %2367 = vmatpush1.bf16.msra.mxu1 %v4132_v49  ;;  %2408 = vmatpush1.bf16.msra.mxu0 %v4134_v50  ;;  %v4122_v49 = vcombine.low %v1383_v38, %v1391_v39  ;;  %v4137_v50 = vcombine.high %v1398_v44, %v1406_v46  ;;  %v4735_v38 = vld [vmem:[#allocation6 + $0x10] sm:$0xff]   ;;  %v4742_v44 = vld [vmem:[#allocation6 + $0xe0] sm:$0xff]  }
 0x927   : > { %2368 = vmatprep.subr.bf16.mxu1 %v4149_v52  ;;  %2409 = vmatprep.subr.bf16.mxu0 %v4151_v53  ;;  %v4139_v52 = vcombine.high %v1399_v47, %v1407_v48  ;;  %v1414_v53 = vld [vmem:[#allocation4 + $0x230] sm:$0xff]  ;;  %v4743_v46 = vld [vmem:[#allocation6 + $0x20] sm:$0xff]  }
 0x928   : > { %v4152_v2 = vcombine.low %v1414_v53, %v1422_v54  ;;  %v4736_v39 = vld [vmem:[#allocation6 + $0x90] sm:$0xff]  }
 0x92a   : > { %2369 = vmatpush1.bf16.msra.mxu1 %v4148_v58  ;;  %2410 = vmatpush1.bf16.msra.mxu0 %v4150_v59  ;;  %v4138_v58 = vcombine.low %v1399_v47, %v1407_v48  ;;  %v4153_v59 = vcombine.high %v1414_v53, %v1422_v54  ;;  %v4744_v47 = vld [vmem:[#allocation6 + $0xa0] sm:$0xff]   ;;  %v4745_v48 = vld [vmem:[#allocation6 + $0x68] sm:$0xff]   ;;  %v4750_v53 = vld [vmem:[#allocation6 + $0xf0] sm:$0xff]  }
 0x92b   : > { %2370 = vmatprep.subr.bf16.mxu1 %v4165_v60  ;;  %2411 = vmatprep.subr.bf16.mxu0 %v4167_v61  ;;  %v1430_v60 = vld [vmem:[#allocation4 + $0x2b0] sm:$0xff] }
 0x92c   : > { %v1438_v61 = vld [vmem:[#allocation4 + $0x2f0] sm:$0xff] }
 0x92d   : > { %v4168_v8 = vcombine.low %v1430_v60, %v1438_v61  ;;  %v4751_v54 = vld [vmem:[#allocation6 + $0x30] sm:$0xff]  }
 0x92e   : > { %2371 = vmatpush1.bf16.msra.mxu1 %v4164_v23  ;;  %2412 = vmatpush1.bf16.msra.mxu0 %v4166_v51  ;;  %v4169_v23 = vcombine.high %v1430_v60, %v1438_v61  ;;  %v4171_v51 = vcombine.high %v1431_v62, %v1439_v63  ;;  %v4758_v60 = vld [vmem:[#allocation6 + $0x1c0] sm:$0xff]   ;;  %v1490_v62 = vsub.s32 3, %v5201_v29 }
 0x92f   : > { %2372 = vmatprep.subr.bf16.mxu1 %v4181_v4  ;;  %2413 = vmatprep.subr.bf16.mxu0 %v4183_v5  ;;  %v1446_v4 = vld [vmem:[#allocation4 + $0x330] sm:$0xff]  ;;  %v5356_v61 = vld [vmem:[%s5436_s8] sm:$0xff] }
 0x930   : > { %v1454_v5 = vld [vmem:[#allocation4 + $0x370] sm:$0xff]  ;;  %v1479_v63 = vrot.slane %v5356_v61, %v5204_v30 }
 0x931   : > { %v4184_v20 = vcombine.low %v1446_v4, %v1454_v5 }
 0x932   : > { %2373 = vmatpush1.bf16.msra.mxu1 %v4180_v10  ;;  %2414 = vmatpush1.bf16.msra.mxu0 %v4182_v12  ;;  %v4185_v10 = vcombine.high %v1446_v4, %v1454_v5  ;;  %v4187_v12 = vcombine.high %v1447_v6, %v1455_v7 }
 0x933   : > { %2374 = vmatprep.subr.bf16.mxu1 %v4197_v13  ;;  %2415 = vmatprep.subr.bf16.mxu0 %v4199_v14  ;;  %v1462_v13 = vld [vmem:[#allocation4 + $0x3b0] sm:$0xff] }
 0x934   : > { %v1470_v14 = vld [vmem:[#allocation4 + $0x3f0] sm:$0xff] }
 0x936   : > { %2375 = vmatpush1.bf16.msra.mxu1 %v4196_v11  ;;  %2416 = vmatpush1.bf16.msra.mxu0 %v4198_v22  ;;  %v4201_v11 = vcombine.high %v1462_v13, %v1470_v14  ;;  %v4203_v22 = vcombine.high %v1463_v17, %v1471_v18 }
 0x937   : > { %2442 = vmatprep.subr.bf16.mxu1 %v4089_v24  ;;  %2483 = vmatprep.subr.bf16.mxu0 %v4091_v25  ;;  %v4200_v24 = vcombine.low %v1462_v13, %v1470_v14  ;;  %v4202_v25 = vcombine.low %v1463_v17, %v1471_v18 }
 0x939   : > { %2393 = vmatmul.mubr.bf16.vlgmr.msra.gmra.mrb[36].mxu1 %v5337_v16  ;;  %2434 = vmatmul.mubr.bf16.vlgmr.msra.gmra.mrb[24].mxu0 %v5337_v16 }
 0x93a   : > { %2443 = vmatpush1.bf16.msra.mxu1 %v4088_v33  ;;  %2484 = vmatpush1.bf16.msra.mxu0 %v4090_v34  ;;  %v4729_v33 = vld [vmem:[#allocation6 + $0x48] sm:$0xff]  }
 0x93b   : > { %2444 = vmatprep.subr.bf16.mxu1 %v4105_v35  ;;  %2485 = vmatprep.subr.bf16.mxu0 %v4107_v1  ;;  %v4730_v34 = vld [vmem:[#allocation6 + $0xc8] sm:$0xff]  }
 0x93c   : > { %2474 = vmatprep.mubr.bf16.mxu1 %v4981_v0  ;;  %2515 = vmatprep.mubr.bf16.mxu0 %v4981_v0  ;;  %v4155_v0 = vcombine.high %v1415_v55, %v1423_v56  ;;  %v4731_v35 = vld [vmem:[#allocation6 + $0x8] sm:$0xff]   ;;  %v4752_v55 = vld [vmem:[#allocation6 + $0xb0] sm:$0xff]   ;;  %v4753_v56 = vld [vmem:[#allocation6 + $0x78] sm:$0xff]  }
 0x93d   : > { %v4732_v1 = vld [vmem:[#allocation6 + $0x88] sm:$0xff]  }
 0x93e   : > { %2445 = vmatpush1.bf16.msra.mxu1 %v4104_v40  ;;  %2486 = vmatpush1.bf16.msra.mxu0 %v4106_v41  ;;  %v4737_v40 = vld [vmem:[#allocation6 + $0x58] sm:$0xff]  }
 0x93f   : > { %2446 = vmatprep.subr.bf16.mxu1 %v4121_v42  ;;  %2487 = vmatprep.subr.bf16.mxu0 %v4123_v43  ;;  %v4738_v41 = vld [vmem:[#allocation6 + $0xd8] sm:$0xff]   ;;  %v4741_v43 = vld [vmem:[#allocation6 + $0x60] sm:$0xff]  }
 0x940   : > { %v4739_v42 = vld [vmem:[#allocation6 + $0x18] sm:$0xff]  }
 0x942   : > { %2447 = vmatpush1.bf16.msra.mxu1 %v4120_v19  ;;  %2488 = vmatpush1.bf16.msra.mxu0 %v4122_v49  ;;  %v4746_v19 = vld [vmem:[#allocation6 + $0xe8] sm:$0xff]  }
 0x943   : > { %2448 = vmatprep.subr.bf16.mxu1 %v4137_v50  ;;  %2489 = vmatprep.subr.bf16.mxu0 %v4139_v52  ;;  %v4747_v49 = vld [vmem:[#allocation6 + $0x28] sm:$0xff]   ;;  %v4749_v52 = vld [vmem:[#allocation6 + $0x70] sm:$0xff]  }
 0x944   : > { %v4748_v50 = vld [vmem:[#allocation6 + $0xa8] sm:$0xff]  }
 0x946   : > { %2449 = vmatpush1.bf16.msra.mxu1 %v4136_v57  ;;  %2490 = vmatpush1.bf16.msra.mxu0 %v4138_v58  ;;  %v4754_v57 = vld [vmem:[#allocation6 + $0xf8] sm:$0xff]  }
 0x947   : > { %2450 = vmatprep.subr.bf16.mxu1 %v4153_v59  ;;  %2491 = vmatprep.subr.bf16.mxu0 %v4155_v0  ;;  %v4755_v58 = vld [vmem:[#allocation6 + $0x38] sm:$0xff]   ;;  %v4757_v0 = vld [vmem:[#allocation6 + $0x140] sm:$0xff]  }
 0x948   : > { %v4756_v59 = vld [vmem:[#allocation6 + $0xb8] sm:$0xff]  }
 0x94a   : > { %2451 = vmatpush1.bf16.msra.mxu1 %v4152_v2  ;;  %2492 = vmatpush1.bf16.msra.mxu0 %v4154_v3  ;;  %v1487_v2 = vrot.slane %v5356_v61, %v5225_v45  ;;  %v1483_v3 = vrot.slane %v5356_v61, %v5210_v32 }
 0x94b   : > { %2452 = vmatprep.subr.bf16.mxu1 %v4169_v23  ;;  %2493 = vmatprep.subr.bf16.mxu0 %v4171_v51  ;;  %v1491_v23 = vrot.slane %v5356_v61, %v1490_v62 }
 0x94e   : > { %2453 = vmatpush1.bf16.msra.mxu1 %v4168_v8  ;;  %2494 = vmatpush1.bf16.msra.mxu0 %v4170_v9 }
 0x94f   : > { %2454 = vmatprep.subr.bf16.mxu1 %v4185_v10  ;;  %2495 = vmatprep.subr.bf16.mxu0 %v4187_v12 }
 0x952   : > { %2455 = vmatpush1.bf16.msra.mxu1 %v4184_v20  ;;  %2496 = vmatpush1.bf16.msra.mxu0 %v4186_v21 }
 0x953   : > { %2456 = vmatprep.subr.bf16.mxu1 %v4201_v11  ;;  %2497 = vmatprep.subr.bf16.mxu0 %v4203_v22 }
 0x956   : > { %2457 = vmatpush1.bf16.msra.mxu1 %v4200_v24  ;;  %2498 = vmatpush1.bf16.msra.mxu0 %v4202_v25  ;;  %v4759_v25 = vld [vmem:[#allocation6 + $0x100] sm:$0xff]  }
 0x957   : > { %4371 = vmatprep.subr.bf16.mxu1 %v4725_v26  ;;  %4393 = vmatprep.subr.bf16.mxu0 %v4726_v27  ;;  %v4760_v26 = vld [vmem:[#allocation6 + $0x180] sm:$0xff]  }
 0x959   : > { %2475 = vmatmul.mubr.bf16.vlgmr.msra.gmra.mrb[40].mxu1 %v5337_v16  ;;  %2516 = vmatmul.mubr.bf16.vlgmr.msra.gmra.mrb[28].mxu0 %v5337_v16  ;;  %v4740_v16 = vld [vmem:[#allocation6 + $0x98] sm:$0xff]  }
 0x95a   : > { %4372 = vmatpush3.bf16.msra.mxu1 %v4727_v28  ;;  %4394 = vmatpush3.bf16.msra.mxu0 %v4728_v31  ;;  %v4761_v31 = vld [vmem:[#allocation6 + $0x148] sm:$0xff]  }
 0x95b   : > { %4373 = vmatprep.subr.bf16.mxu1 %v4729_v33  ;;  %4395 = vmatprep.subr.bf16.mxu0 %v4730_v34  ;;  %v4762_v33 = vld [vmem:[#allocation6 + $0x1c8] sm:$0xff]  }
 0x95c   : > { %v4763_v34 = vld [vmem:[#allocation6 + $0x108] sm:$0xff]  }
 0x95e   : > { %4374 = vmatpush3.bf16.msra.mxu1 %v4731_v35  ;;  %4396 = vmatpush3.bf16.msra.mxu0 %v4732_v1  ;;  %v4764_v35 = vld [vmem:[#allocation6 + $0x188] sm:$0xff]   ;;  %v4765_v1 = vld [vmem:[#allocation6 + $0x150] sm:$0xff]  }
 0x95f   : > { %4375 = vmatprep.subr.bf16.mxu1 %v4733_v36  ;;  %4397 = vmatprep.subr.bf16.mxu0 %v4734_v37  ;;  %v4766_v36 = vld [vmem:[#allocation6 + $0x1d0] sm:$0xff]  }
 0x960   : > { %v4767_v37 = vld [vmem:[#allocation6 + $0x110] sm:$0xff]  }
 0x962   : > { %4376 = vmatpush3.bf16.msra.mxu1 %v4735_v38  ;;  %4398 = vmatpush3.bf16.msra.mxu0 %v4736_v39  ;;  %v4768_v38 = vld [vmem:[#allocation6 + $0x190] sm:$0xff]   ;;  %v4769_v39 = vld [vmem:[#allocation6 + $0x158] sm:$0xff]  }
 0x963   : > { %4377 = vmatprep.subr.bf16.mxu1 %v4737_v40  ;;  %4399 = vmatprep.subr.bf16.mxu0 %v4738_v41  ;;  %v4770_v40 = vld [vmem:[#allocation6 + $0x1d8] sm:$0xff]  }
 0x964   : > { %v4771_v41 = vld [vmem:[#allocation6 + $0x118] sm:$0xff]  }
 0x966   : > { %4378 = vmatpush3.bf16.msra.mxu1 %v4739_v42  ;;  %4400 = vmatpush3.bf16.msra.mxu0 %v4740_v16  ;;  %v4772_v42 = vld [vmem:[#allocation6 + $0x198] sm:$0xff]   ;;  %v4773_v16 = vld [vmem:[#allocation6 + $0x160] sm:$0xff]  }
 0x967   : > { %4379 = vmatprep.subr.bf16.mxu1 %v4741_v43  ;;  %4401 = vmatprep.subr.bf16.mxu0 %v4742_v44  ;;  %v4774_v43 = vld [vmem:[#allocation6 + $0x1e0] sm:$0xff]  }
 0x968   : > { %v4775_v44 = vld [vmem:[#allocation6 + $0x120] sm:$0xff]  }
 0x96a   : > { %4380 = vmatpush3.bf16.msra.mxu1 %v4743_v46  ;;  %4402 = vmatpush3.bf16.msra.mxu0 %v4744_v47  ;;  %v4776_v46 = vld [vmem:[#allocation6 + $0x1a0] sm:$0xff]   ;;  %v4777_v47 = vld [vmem:[#allocation6 + $0x168] sm:$0xff]  }
 0x96b   : > { %4381 = vmatprep.subr.bf16.mxu1 %v4745_v48  ;;  %4403 = vmatprep.subr.bf16.mxu0 %v4746_v19  ;;  %v4778_v48 = vld [vmem:[#allocation6 + $0x1e8] sm:$0xff]   ;;  %v1494_v19 = vsub.s32 4, %v5201_v29 }
 0x96e   : > { %4382 = vmatpush3.bf16.msra.mxu1 %v4747_v49  ;;  %4404 = vmatpush3.bf16.msra.mxu0 %v4748_v50  ;;  %v1502_v49 = vsub.s32 6, %v5201_v29  ;;  %v4779_v50 = vld [vmem:[#allocation6 + $0x128] sm:$0xff]  }
 0x96f   : > { %4383 = vmatprep.subr.bf16.mxu1 %v4749_v52  ;;  %4405 = vmatprep.subr.bf16.mxu0 %v4750_v53  ;;  %v4780_v52 = vld [vmem:[#allocation6 + $0x1a8] sm:$0xff]   ;;  %v1498_v53 = vsub.s32 5, %v5201_v29 }
 0x972   : > { %4384 = vmatpush3.bf16.msra.mxu1 %v4751_v54  ;;  %4406 = vmatpush3.bf16.msra.mxu0 %v4752_v55  ;;  %v1506_v54 = vsub.s32 7, %v5201_v29  ;;  %v4781_v55 = vld [vmem:[#allocation6 + $0x170] sm:$0xff]   ;;  %v4851_v29 = vld [vmem:[#allocation6 + $0x338] sm:$0xff]  }
 0x973   : > { %4385 = vmatprep.subr.bf16.mxu1 %v4753_v56  ;;  %4407 = vmatprep.subr.bf16.mxu0 %v4754_v57  ;;  %v4782_v56 = vld [vmem:[#allocation6 + $0x1f0] sm:$0xff]   ;;  %v1495_v57 = vrot.slane %v5356_v61, %v1494_v19 }
 0x976   : > { %4386 = vmatpush3.bf16.msra.mxu1 %v4755_v58  ;;  %4408 = vmatpush3.bf16.msra.mxu0 %v4756_v59  ;;  %v1503_v58 = vrot.slane %v5356_v61, %v1502_v49  ;;  %v1499_v59 = vrot.slane %v5356_v61, %v1498_v53 }
 0x977   : > { %4415 = vmatprep.subr.bf16.mxu1 %v4757_v0  ;;  %4437 = vmatprep.subr.bf16.mxu0 %v4758_v60  ;;  %v1507_v0 = vrot.slane %v5356_v61, %v1506_v54  ;;  %v4783_v60 = vld [vmem:[#allocation6 + $0x130] sm:$0xff]   ;;  %v4788_v61 = vld [vmem:[#allocation6 + $0x1b8] sm:$0xff]  }
 0x9cc   : > { %v2230_v51 = vpop.f32.mrb[28].mxu1  ;;  %v2271_v4 = vpop.f32.mrb[16].mxu0 }
 0x9cd   : > { %v2231_v5 = vadd.f32 %v2230_v51, %v1479_v63  ;;  %v2272_v6 = vadd.f32 %v2271_v4, %v1487_v2  ;;  %v2232_v7 = vpop.f32.mrb[29].mxu1  ;;  %v2273_v8 = vpop.f32.mrb[17].mxu0  ;;  %v4784_v63 = vld [vmem:[#allocation6 + $0x1b0] sm:$0xff]   ;;  %v4785_v2 = vld [vmem:[#allocation6 + $0x178] sm:$0xff]  }
 0x9ce   : > { %v2233_v9 = vadd.f32 %v2232_v7, %v1483_v3  ;;  %v2274_v10 = vadd.f32 %v2273_v8, %v1491_v23  ;;  %v2234_v12 = vpop.f32.mrb[30].mxu1  ;;  %v2275_v13 = vpop.f32.mrb[18].mxu0  ;;  %v4786_v3 = vld [vmem:[#allocation6 + $0x1f8] sm:$0xff]  }
 0x9cf   : > { %v2524_v14 = vmax.f32 %v2231_v5, 0.0  ;;  %v2526_v17 = vmax.f32 %v2272_v6, 0.0  ;;  %v2235_v18 = vpop.f32.mrb[31].mxu1  ;;  %v2276_v20 = vpop.f32.mrb[19].mxu0  ;;  %v4787_v13 = vld [vmem:[#allocation6 + $0x138] sm:$0xff]  }
 0x9d0   : > { %v2525_v21 = vmax.f32 %v2233_v9, 0.0  ;;  %v2527_v11 = vmax.f32 %v2274_v10, 0.0 }
 0x9d1   : > { %v2540_v27 = vpack.c.bf16 %v2524_v14, %v2524_v14  ;;  %v2542_v28 = vpack.c.bf16 %v2526_v17, %v2526_v17 }
 0x9d2   : > { %v2541_v22 = vpack.c.bf16 %v2525_v21, %v2525_v21  ;;  %v2543_v24 = vpack.c.bf16 %v2527_v11, %v2527_v11  ;;  %v4789_v21 = vld [vmem:[#allocation6 + $0x240] sm:$0xff]  }
 0x9d3   : > { %v4790_v11 = vld [vmem:[#allocation6 + $0x2c0] sm:$0xff]  }
 0x9d4   : > { %3619 = vmatprep.mubr.bf16.mxu1 %v2541_v22  ;;  %3659 = vmatprep.mubr.bf16.mxu0 %v2543_v24 }
 0x9d5   : > { %3620 = vmatmul.mubr.bf16.vlgmr.msra.gmra.mrb[44].mxu1 %v2540_v27  ;;  %3660 = vmatmul.mubr.bf16.vlgmr.msra.gmra.mrb[32].mxu0 %v2542_v28  ;;  %v4791_v27 = vld [vmem:[#allocation6 + $0x200] sm:$0xff]  }
 0x9d6   : > { %4416 = vmatpush3.bf16.msra.mxu1 %v4759_v25  ;;  %4438 = vmatpush3.bf16.msra.mxu0 %v4760_v26  ;;  %v4792_v28 = vld [vmem:[#allocation6 + $0x280] sm:$0xff]  }
 0x9d7   : > { %4417 = vmatprep.subr.bf16.mxu1 %v4761_v31  ;;  %4439 = vmatprep.subr.bf16.mxu0 %v4762_v33 }
 0x9da   : > { %4418 = vmatpush3.bf16.msra.mxu1 %v4763_v34  ;;  %4440 = vmatpush3.bf16.msra.mxu0 %v4764_v35  ;;  %v4793_v34 = vld [vmem:[#allocation6 + $0x248] sm:$0xff]  }
 0x9db   : > { %4419 = vmatprep.subr.bf16.mxu1 %v4765_v1  ;;  %4441 = vmatprep.subr.bf16.mxu0 %v4766_v36  ;;  %v4794_v35 = vld [vmem:[#allocation6 + $0x2c8] sm:$0xff]  }
 0x9dc   : > { %v4795_v1 = vld [vmem:[#allocation6 + $0x208] sm:$0xff]  }
 0x9dd   : > { %v4796_v36 = vld [vmem:[#allocation6 + $0x288] sm:$0xff]  }
 0x9de   : > { %4420 = vmatpush3.bf16.msra.mxu1 %v4767_v37  ;;  %4442 = vmatpush3.bf16.msra.mxu0 %v4768_v38  ;;  %v4797_v37 = vld [vmem:[#allocation6 + $0x250] sm:$0xff]  }
 0x9df   : > { %4421 = vmatprep.subr.bf16.mxu1 %v4769_v39  ;;  %4443 = vmatprep.subr.bf16.mxu0 %v4770_v40  ;;  %v4798_v38 = vld [vmem:[#allocation6 + $0x2d0] sm:$0xff]  }
 0x9e0   : > { %v4799_v39 = vld [vmem:[#allocation6 + $0x210] sm:$0xff]  }
 0x9e1   : > { %v4800_v40 = vld [vmem:[#allocation6 + $0x290] sm:$0xff]  }
 0x9e2   : > { %4422 = vmatpush3.bf16.msra.mxu1 %v4771_v41  ;;  %4444 = vmatpush3.bf16.msra.mxu0 %v4772_v42  ;;  %v4801_v41 = vld [vmem:[#allocation6 + $0x258] sm:$0xff]  }
 0x9e3   : > { %4423 = vmatprep.subr.bf16.mxu1 %v4773_v16  ;;  %4445 = vmatprep.subr.bf16.mxu0 %v4774_v43  ;;  %v4802_v42 = vld [vmem:[#allocation6 + $0x2d8] sm:$0xff]  }
 0x9e4   : > { %v4803_v16 = vld [vmem:[#allocation6 + $0x218] sm:$0xff]  }
 0x9e5   : > { %v4804_v43 = vld [vmem:[#allocation6 + $0x298] sm:$0xff]  }
 0x9e6   : > { %4424 = vmatpush3.bf16.msra.mxu1 %v4775_v44  ;;  %4446 = vmatpush3.bf16.msra.mxu0 %v4776_v46  ;;  %v4805_v44 = vld [vmem:[#allocation6 + $0x260] sm:$0xff]  }
 0x9e7   : > { %4425 = vmatprep.subr.bf16.mxu1 %v4777_v47  ;;  %4447 = vmatprep.subr.bf16.mxu0 %v4778_v48  ;;  %v4806_v46 = vld [vmem:[#allocation6 + $0x2e0] sm:$0xff]  }
 0x9e8   : > { %v4807_v47 = vld [vmem:[#allocation6 + $0x220] sm:$0xff]  }
 0x9e9   : > { %v4808_v48 = vld [vmem:[#allocation6 + $0x2a0] sm:$0xff]  }
 0x9ea   : > { %4426 = vmatpush3.bf16.msra.mxu1 %v4779_v50  ;;  %4448 = vmatpush3.bf16.msra.mxu0 %v4780_v52  ;;  %v4809_v50 = vld [vmem:[#allocation6 + $0x268] sm:$0xff]  }
 0x9eb   : > { %4427 = vmatprep.subr.bf16.mxu1 %v4781_v55  ;;  %4449 = vmatprep.subr.bf16.mxu0 %v4782_v56  ;;  %v4810_v52 = vld [vmem:[#allocation6 + $0x2e8] sm:$0xff]  }
 0x9ec   : > { %v2312_v23 = vpop.f32.mrb[32].mxu1  ;;  %v2353_v51 = vpop.f32.mrb[20].mxu0  ;;  %v4811_v55 = vld [vmem:[#allocation6 + $0x228] sm:$0xff]  }
 0x9ed   : > { %v2313_v4 = vadd.f32 %v2312_v23, %v1495_v57  ;;  %v2354_v5 = vadd.f32 %v2353_v51, %v1503_v58  ;;  %v2314_v6 = vpop.f32.mrb[33].mxu1  ;;  %v2355_v7 = vpop.f32.mrb[21].mxu0  ;;  %v4812_v56 = vld [vmem:[#allocation6 + $0x2a8] sm:$0xff]   ;;  %v4813_v58 = vld [vmem:[#allocation6 + $0x270] sm:$0xff]   ;;  %v4817_v51 = vld [vmem:[#allocation6 + $0x278] sm:$0xff]  }
 0x9ee   : > { %v2315_v8 = vadd.f32 %v2314_v6, %v1499_v59  ;;  %v2356_v9 = vadd.f32 %v2355_v7, %v1507_v0  ;;  %v2316_v10 = vpop.f32.mrb[34].mxu1  ;;  %v2357_v12 = vpop.f32.mrb[22].mxu0  ;;  %4428 = vmatpush3.bf16.msra.mxu1 %v4783_v60  ;;  %4450 = vmatpush3.bf16.msra.mxu0 %v4784_v63  ;;  %v5387_v57 = vld [vmem:[%s5436_s8 + $0x8] sm:$0xff]  ;;  %v4814_v59 = vld [vmem:[#allocation6 + $0x2f0] sm:$0xff]  }
 0x9ef   : > { %v2528_v14 = vmax.f32 %v2313_v4, 0.0  ;;  %v2530_v17 = vmax.f32 %v2354_v5, 0.0  ;;  %v2317_v18 = vpop.f32.mrb[35].mxu1  ;;  %v2358_v20 = vpop.f32.mrb[23].mxu0  ;;  %4429 = vmatprep.subr.bf16.mxu1 %v4785_v2  ;;  %4451 = vmatprep.subr.bf16.mxu0 %v4786_v3  ;;  %v1511_v0 = vrot.slane %v5387_v57, %v5204_v30  ;;  %v1519_v60 = vrot.slane %v5387_v57, %v5225_v45  ;;  %v4815_v3 = vld [vmem:[#allocation6 + $0x230] sm:$0xff]   ;;  %v4818_v4 = vld [vmem:[#allocation6 + $0x2f8] sm:$0xff]  }
 0x9f0   : > { %v2529_v22 = vmax.f32 %v2315_v8, 0.0  ;;  %v2531_v24 = vmax.f32 %v2356_v9, 0.0  ;;  %v1515_v63 = vrot.slane %v5387_v57, %v5210_v32  ;;  %v1523_v2 = vrot.slane %v5387_v57, %v1490_v62  ;;  %v4816_v23 = vld [vmem:[#allocation6 + $0x2b0] sm:$0xff]   ;;  %v4820_v62 = vld [vmem:[#allocation6 + $0x2b8] sm:$0xff]   ;;  %v4821_v20 = vld [vmem:[#allocation6 + $0x340] sm:$0xff]  }
 0x9f1   : > { %v2544_v31 = vpack.c.bf16 %v2528_v14, %v2528_v14  ;;  %v2546_v33 = vpack.c.bf16 %v2530_v17, %v2530_v17 }
 0x9f2   : > { %v2545_v25 = vpack.c.bf16 %v2529_v22, %v2529_v22  ;;  %v2547_v26 = vpack.c.bf16 %v2531_v24, %v2531_v24  ;;  %4430 = vmatpush3.bf16.msra.mxu1 %v4787_v13  ;;  %4452 = vmatpush3.bf16.msra.mxu0 %v4788_v61  ;;  %v4819_v13 = vld [vmem:[#allocation6 + $0x238] sm:$0xff]  }
 0x9f3   : > { %4459 = vmatprep.subr.bf16.mxu1 %v4789_v21  ;;  %4481 = vmatprep.subr.bf16.mxu0 %v4790_v11  ;;  %v4822_v21 = vld [vmem:[#allocation6 + $0x3c0] sm:$0xff]  }
 0x9f4   : > { %3699 = vmatprep.mubr.bf16.mxu1 %v2545_v25  ;;  %3739 = vmatprep.mubr.bf16.mxu0 %v2547_v26  ;;  %v4823_v26 = vld [vmem:[#allocation6 + $0x300] sm:$0xff]  }
 0x9f5   : > { %3700 = vmatmul.mubr.bf16.vlgmr.msra.gmra.mrb[48].mxu1 %v2544_v31  ;;  %3740 = vmatmul.mubr.bf16.vlgmr.msra.gmra.mrb[36].mxu0 %v2546_v33  ;;  %v4825_v33 = vld [vmem:[#allocation6 + $0x348] sm:$0xff]  }
 0x9f6   : > { %4460 = vmatpush3.bf16.msra.mxu1 %v4791_v27  ;;  %4482 = vmatpush3.bf16.msra.mxu0 %v4792_v28  ;;  %v4824_v27 = vld [vmem:[#allocation6 + $0x380] sm:$0xff]  }
 0x9f7   : > { %4461 = vmatprep.subr.bf16.mxu1 %v4793_v34  ;;  %4483 = vmatprep.subr.bf16.mxu0 %v4794_v35  ;;  %v4826_v34 = vld [vmem:[#allocation6 + $0x3c8] sm:$0xff]  }
 0x9f8   : > { %v4827_v35 = vld [vmem:[#allocation6 + $0x308] sm:$0xff]  }
 0x9fa   : > { %4462 = vmatpush3.bf16.msra.mxu1 %v4795_v1  ;;  %4484 = vmatpush3.bf16.msra.mxu0 %v4796_v36  ;;  %v4828_v1 = vld [vmem:[#allocation6 + $0x388] sm:$0xff]   ;;  %v4829_v36 = vld [vmem:[#allocation6 + $0x350] sm:$0xff]  }
 0x9fb   : > { %4463 = vmatprep.subr.bf16.mxu1 %v4797_v37  ;;  %4485 = vmatprep.subr.bf16.mxu0 %v4798_v38  ;;  %v4830_v37 = vld [vmem:[#allocation6 + $0x3d0] sm:$0xff]  }
 0x9fc   : > { %v4831_v38 = vld [vmem:[#allocation6 + $0x310] sm:$0xff]  }
 0x9fe   : > { %4464 = vmatpush3.bf16.msra.mxu1 %v4799_v39  ;;  %4486 = vmatpush3.bf16.msra.mxu0 %v4800_v40  ;;  %v4832_v39 = vld [vmem:[#allocation6 + $0x390] sm:$0xff]   ;;  %v4833_v40 = vld [vmem:[#allocation6 + $0x358] sm:$0xff]  }
 0x9ff   : > { %4465 = vmatprep.subr.bf16.mxu1 %v4801_v41  ;;  %4487 = vmatprep.subr.bf16.mxu0 %v4802_v42  ;;  %v4834_v41 = vld [vmem:[#allocation6 + $0x3d8] sm:$0xff]  }
 0xa00   : > { %v4835_v42 = vld [vmem:[#allocation6 + $0x318] sm:$0xff]  }
 0xa02   : > { %4466 = vmatpush3.bf16.msra.mxu1 %v4803_v16  ;;  %4488 = vmatpush3.bf16.msra.mxu0 %v4804_v43  ;;  %v4836_v16 = vld [vmem:[#allocation6 + $0x398] sm:$0xff]   ;;  %v4837_v43 = vld [vmem:[#allocation6 + $0x360] sm:$0xff]  }
 0xa03   : > { %4467 = vmatprep.subr.bf16.mxu1 %v4805_v44  ;;  %4489 = vmatprep.subr.bf16.mxu0 %v4806_v46  ;;  %v4838_v44 = vld [vmem:[#allocation6 + $0x3e0] sm:$0xff]  }
 0xa04   : > { %v4839_v46 = vld [vmem:[#allocation6 + $0x320] sm:$0xff]  }
 0xa06   : > { %4468 = vmatpush3.bf16.msra.mxu1 %v4807_v47  ;;  %4490 = vmatpush3.bf16.msra.mxu0 %v4808_v48  ;;  %v4840_v47 = vld [vmem:[#allocation6 + $0x3a0] sm:$0xff]   ;;  %v4841_v48 = vld [vmem:[#allocation6 + $0x368] sm:$0xff]  }
 0xa07   : > { %4469 = vmatprep.subr.bf16.mxu1 %v4809_v50  ;;  %4491 = vmatprep.subr.bf16.mxu0 %v4810_v52  ;;  %v4842_v50 = vld [vmem:[#allocation6 + $0x3e8] sm:$0xff]  }
 0xa08   : > { %v4843_v52 = vld [vmem:[#allocation6 + $0x328] sm:$0xff]  }
 0xa0a   : > { %4470 = vmatpush3.bf16.msra.mxu1 %v4811_v55  ;;  %4492 = vmatpush3.bf16.msra.mxu0 %v4812_v56  ;;  %v4844_v55 = vld [vmem:[#allocation6 + $0x3a8] sm:$0xff]   ;;  %v4845_v56 = vld [vmem:[#allocation6 + $0x370] sm:$0xff]  }
 0xa0b   : > { %4471 = vmatprep.subr.bf16.mxu1 %v4813_v58  ;;  %4493 = vmatprep.subr.bf16.mxu0 %v4814_v59  ;;  %v4846_v58 = vld [vmem:[#allocation6 + $0x3f0] sm:$0xff]   ;;  %v1527_v59 = vrot.slane %v5387_v57, %v1494_v19  ;;  %v4850_v19 = vld [vmem:[#allocation6 + $0x3f8] sm:$0xff]  }
 0xa0c   : > { %v2394_v5 = vpop.f32.mrb[36].mxu1  ;;  %v2435_v30 = vpop.f32.mrb[24].mxu0 }
 0xa0d   : > { %v2395_v6 = vadd.f32 %v2394_v5, %v1511_v0  ;;  %v2436_v7 = vadd.f32 %v2435_v30, %v1519_v60  ;;  %v2396_v45 = vpop.f32.mrb[37].mxu1  ;;  %v2437_v8 = vpop.f32.mrb[25].mxu0  ;;  %v1535_v0 = vrot.slane %v5387_v57, %v1502_v49  ;;  %v1531_v60 = vrot.slane %v5387_v57, %v1498_v53 }
 0xa0e   : > { %v2397_v9 = vadd.f32 %v2396_v45, %v1515_v63  ;;  %v2438_v10 = vadd.f32 %v2437_v8, %v1523_v2  ;;  %v2398_v12 = vpop.f32.mrb[38].mxu1  ;;  %v2439_v32 = vpop.f32.mrb[26].mxu0  ;;  %4472 = vmatpush3.bf16.msra.mxu1 %v4815_v3  ;;  %4494 = vmatpush3.bf16.msra.mxu0 %v4816_v23  ;;  %v1539_v63 = vrot.slane %v5387_v57, %v1506_v54  ;;  %v4847_v2 = vld [vmem:[#allocation6 + $0x330] sm:$0xff]   ;;  %v4849_v23 = vld [vmem:[#allocation6 + $0x378] sm:$0xff]  }
 0xa0f   : > { %v2532_v61 = vmax.f32 %v2395_v6, 0.0  ;;  %v2534_v14 = vmax.f32 %v2436_v7, 0.0  ;;  %v2399_v17 = vpop.f32.mrb[39].mxu1  ;;  %v2440_v18 = vpop.f32.mrb[27].mxu0  ;;  %4473 = vmatprep.subr.bf16.mxu1 %v4817_v51  ;;  %4495 = vmatprep.subr.bf16.mxu0 %v4818_v4  ;;  %v4848_v3 = vld [vmem:[#allocation6 + $0x3b0] sm:$0xff]   ;;  %v4852_v54 = vld [vmem:[#allocation6 + $0x3b8] sm:$0xff]  }
 0xa10   : > { %v2533_v11 = vmax.f32 %v2397_v9, 0.0  ;;  %v2535_v22 = vmax.f32 %v2438_v10, 0.0 }
 0xa11   : > { %v2548_v28 = vpack.c.bf16 %v2532_v61, %v2532_v61  ;;  %v2550_v31 = vpack.c.bf16 %v2534_v14, %v2534_v14 }
 0xa12   : > { %v2549_v24 = vpack.c.bf16 %v2533_v11, %v2533_v11  ;;  %v2551_v25 = vpack.c.bf16 %v2535_v22, %v2535_v22  ;;  %4474 = vmatpush3.bf16.msra.mxu1 %v4819_v13  ;;  %4496 = vmatpush3.bf16.msra.mxu0 %v4820_v62 }
 0xa13   : > { %4503 = vmatprep.subr.bf16.mxu1 %v4821_v20  ;;  %4525 = vmatprep.subr.bf16.mxu0 %v4822_v21  ;;  %v4204_v21 = vld [vmem:[%s5438_s10] ss:$0 sm:$0xff] }
 0xa14   : > { %3779 = vmatprep.mubr.bf16.mxu1 %v2549_v24  ;;  %3819 = vmatprep.mubr.bf16.mxu0 %v2551_v25 }
 0xa15   : > { %3780 = vmatmul.mubr.bf16.vlgmr.msra.gmra.mrb[52].mxu1 %v2548_v28  ;;  %3820 = vmatmul.mubr.bf16.vlgmr.msra.gmra.mrb[40].mxu0 %v2550_v31 }
 0xa16   : > { %4504 = vmatpush3.bf16.msra.mxu1 %v4823_v26  ;;  %4526 = vmatpush3.bf16.msra.mxu0 %v4824_v27 }
 0xa17   : > { %4505 = vmatprep.subr.bf16.mxu1 %v4825_v33  ;;  %4527 = vmatprep.subr.bf16.mxu0 %v4826_v34 }
 0xa1a   : > { %4506 = vmatpush3.bf16.msra.mxu1 %v4827_v35  ;;  %4528 = vmatpush3.bf16.msra.mxu0 %v4828_v1 }
 0xa1b   : > { %4507 = vmatprep.subr.bf16.mxu1 %v4829_v36  ;;  %4529 = vmatprep.subr.bf16.mxu0 %v4830_v37 }
 0xa1e   : > { %4508 = vmatpush3.bf16.msra.mxu1 %v4831_v38  ;;  %4530 = vmatpush3.bf16.msra.mxu0 %v4832_v39 }
 0xa1f   : > { %4509 = vmatprep.subr.bf16.mxu1 %v4833_v40  ;;  %4531 = vmatprep.subr.bf16.mxu0 %v4834_v41 }
 0xa22   : > { %4510 = vmatpush3.bf16.msra.mxu1 %v4835_v42  ;;  %4532 = vmatpush3.bf16.msra.mxu0 %v4836_v16 }
 0xa23   : > { %4511 = vmatprep.subr.bf16.mxu1 %v4837_v43  ;;  %4533 = vmatprep.subr.bf16.mxu0 %v4838_v44 }
 0xa26   : > { %4512 = vmatpush3.bf16.msra.mxu1 %v4839_v46  ;;  %4534 = vmatpush3.bf16.msra.mxu0 %v4840_v47 }
 0xa27   : > { %4513 = vmatprep.subr.bf16.mxu1 %v4841_v48  ;;  %4535 = vmatprep.subr.bf16.mxu0 %v4842_v50 }
 0xa2a   : > { %4514 = vmatpush3.bf16.msra.mxu1 %v4843_v52  ;;  %4536 = vmatpush3.bf16.msra.mxu0 %v4844_v55 }
 0xa2b   : > { %4515 = vmatprep.subr.bf16.mxu1 %v4845_v56  ;;  %4537 = vmatprep.subr.bf16.mxu0 %v4846_v58 }
 0xa2c   : > { %v2476_v51 = vpop.f32.mrb[40].mxu1  ;;  %v2517_v4 = vpop.f32.mrb[28].mxu0 }
 0xa2d   : > { %v2477_v5 = vadd.f32 %v2476_v51, %v1527_v59  ;;  %v2518_v49 = vadd.f32 %v2517_v4, %v1535_v0  ;;  %v2478_v30 = vpop.f32.mrb[41].mxu1  ;;  %v2519_v6 = vpop.f32.mrb[29].mxu0 }
 0xa2e   : > { %v2479_v7 = vadd.f32 %v2478_v30, %v1531_v60  ;;  %v2520_v45 = vadd.f32 %v2519_v6, %v1539_v63  ;;  %v2480_v8 = vpop.f32.mrb[42].mxu1  ;;  %v2521_v53 = vpop.f32.mrb[30].mxu0  ;;  %4516 = vmatpush3.bf16.msra.mxu1 %v4847_v2  ;;  %4538 = vmatpush3.bf16.msra.mxu0 %v4848_v3 }
 0xa2f   : > { %v2536_v57 = vmax.f32 %v2477_v5, 0.0  ;;  %v2538_v9 = vmax.f32 %v2518_v49, 0.0  ;;  %v2481_v10 = vpop.f32.mrb[43].mxu1  ;;  %v2522_v12 = vpop.f32.mrb[31].mxu0  ;;  %4517 = vmatprep.subr.bf16.mxu1 %v4849_v23  ;;  %4539 = vmatprep.subr.bf16.mxu0 %v4850_v19 }
 0xa30   : > { %v2537_v32 = vmax.f32 %v2479_v7, 0.0  ;;  %v2539_v13 = vmax.f32 %v2520_v45, 0.0 }
 0xa31   : > { %v2552_v14 = vpack.c.bf16 %v2536_v57, %v2536_v57  ;;  %v2554_v17 = vpack.c.bf16 %v2538_v9, %v2538_v9 }
 0xa32   : > { %v2553_v62 = vpack.c.bf16 %v2537_v32, %v2537_v32  ;;  %v2555_v61 = vpack.c.bf16 %v2539_v13, %v2539_v13  ;;  %4518 = vmatpush3.bf16.msra.mxu1 %v4851_v29  ;;  %4540 = vmatpush3.bf16.msra.mxu0 %v4852_v54  ;;  %v4333_v13 = vld [vmem:[%s5439_s11] ss:$0 sm:$0xff] }
 0xa34   : > { %3859 = vmatprep.mubr.bf16.mxu1 %v2553_v62  ;;  %3899 = vmatprep.mubr.bf16.mxu0 %v2555_v61 }
 0xa35   : > { %3860 = vmatmul.mubr.bf16.vlgmr.msra.gmra.mrb[56].mxu1 %v2552_v14  ;;  %3900 = vmatmul.mubr.bf16.vlgmr.msra.gmra.mrb[44].mxu0 %v2554_v17 }
 0xaa8   : > { %v4387_v18 = vpop.f32.mrb[44].mxu1  ;;  %v4409_v20 = vpop.f32.mrb[32].mxu0 }
 0xaa9   : > { %v4388_v11 = vpop.f32.mrb[45].mxu1  ;;  %v4410_v22 = vpop.f32.mrb[33].mxu0 }
 0xaaa   : > { %v4389_v24 = vadd.f32 %v4388_v11, %v4387_v18  ;;  %v4411_v25 = vadd.f32 %v4410_v22, %v4409_v20  ;;  %v4390_v26 = vpop.f32.mrb[46].mxu1  ;;  %v4412_v27 = vpop.f32.mrb[34].mxu0 }
 0xaab   : > { %v4391_v28 = vpop.f32.mrb[47].mxu1  ;;  %v4413_v31 = vpop.f32.mrb[35].mxu0 }
 0xaac   : > { %v3622_v33 = vadd.f32 %v4389_v24, %v4204_v21 }
 0xaae   : > { %v3662_v34 = vadd.f32 %v4411_v25, %v3622_v33 }
 0xac8   : > { %v4431_v35 = vpop.f32.mrb[48].mxu1  ;;  %v4453_v1 = vpop.f32.mrb[36].mxu0 }
 0xac9   : > { %v4432_v36 = vpop.f32.mrb[49].mxu1  ;;  %v4454_v37 = vpop.f32.mrb[37].mxu0 }
 0xaca   : > { %v4433_v38 = vadd.f32 %v4432_v36, %v4431_v35  ;;  %v4455_v39 = vadd.f32 %v4454_v37, %v4453_v1  ;;  %v4434_v40 = vpop.f32.mrb[50].mxu1  ;;  %v4456_v41 = vpop.f32.mrb[38].mxu0 }
 0xacb   : > { %v4435_v42 = vpop.f32.mrb[51].mxu1  ;;  %v4457_v16 = vpop.f32.mrb[39].mxu0 }
 0xacc   : > { %v3702_v43 = vadd.f32 %v4433_v38, %v3662_v34 }
 0xace   : > { %v3742_v44 = vadd.f32 %v4455_v39, %v3702_v43 }
 0xae8   : > { %v4475_v46 = vpop.f32.mrb[52].mxu1  ;;  %v4497_v47 = vpop.f32.mrb[40].mxu0 }
 0xae9   : > { %v4476_v48 = vpop.f32.mrb[53].mxu1  ;;  %v4498_v50 = vpop.f32.mrb[41].mxu0 }
 0xaea   : > { %v4477_v52 = vadd.f32 %v4476_v48, %v4475_v46  ;;  %v4499_v55 = vadd.f32 %v4498_v50, %v4497_v47  ;;  %v4478_v56 = vpop.f32.mrb[54].mxu1  ;;  %v4500_v58 = vpop.f32.mrb[42].mxu0 }
 0xaeb   : > { %v4479_v59 = vpop.f32.mrb[55].mxu1  ;;  %v4501_v0 = vpop.f32.mrb[43].mxu0 }
 0xaec   : > { %v3782_v60 = vadd.f32 %v4477_v52, %v3742_v44 }
 0xaee   : > { %v3822_v63 = vadd.f32 %v4499_v55, %v3782_v60 }
 0xb08   : > { %v4519_v2 = vpop.f32.mrb[56].mxu1  ;;  %v4541_v3 = vpop.f32.mrb[44].mxu0 }
 0xb09   : > { %v4520_v23 = vpop.f32.mrb[57].mxu1  ;;  %v4542_v19 = vpop.f32.mrb[45].mxu0 }
 0xb0a   : > { %v4521_v51 = vadd.f32 %v4520_v23, %v4519_v2  ;;  %v4543_v4 = vadd.f32 %v4542_v19, %v4541_v3  ;;  %v4522_v5 = vpop.f32.mrb[58].mxu1  ;;  %v4544_v49 = vpop.f32.mrb[46].mxu0 }
 0xb0b   : > { %v4523_v30 = vpop.f32.mrb[59].mxu1  ;;  %v4545_v6 = vpop.f32.mrb[47].mxu0 }
 0xb0c   : > { %v3862_v7 = vadd.f32 %v4521_v51, %v3822_v63 }
 0xb0e   : > { %v3902_v45 = vadd.f32 %v4543_v4, %v3862_v7 }
 0xb10   : > { %v3907_v8 = vadd.f32 %v3902_v45, %v5333_v15  ;;  %v4334_v15 = vld [vmem:[%s5440_s12] ss:$0 sm:$0xff] }
 0xb12   : > { %3910 = vadd.xlane.f32.xlu0 %v3907_v8 }
 0xb9f   : > { %v3911_v53 = vpop.xlane.xlu0 %3910 }
 0xba0   : > { %v3912_v29 = vmul.f32 0.0078125, %v3911_v53 }
 0xba2   : > { %v3913_v54 = vsub.f32 %v3907_v8, %v3912_v29 }
 0xba4   : > { %v3914_v57 = vmul.f32 %v3913_v54, %v3913_v54 }
 0xba6   : > { %3915 = vadd.xlane.f32.xlu1 %v3914_v57 }
 0xc33   : > { %v3916_v9 = vpop.xlane.xlu1 %3915 }
 0xc34   : > { %v3917_v10 = vmul.f32 0.0078125, %v3916_v9 }
 0xc36   : > { %v3918_v12 = vadd.f32 1e-05, %v3917_v10 }
 0xc38   : > { %4871 = vrsqrt.f32 %v3918_v12 }
 0xc42   : > { %v4872_v32 = vpop.eup %4871 }
 0xc43   : > { %v3920_v62 = vmul.f32 %v4872_v32, %v3913_v54 }
 0xc45   : > { %v3927_v61 = vmul.f32 %v4333_v13, %v3920_v62 }
 0xc47   : > { %v3934_v14 = vadd.f32 %v4334_v15, %v3927_v61 }
 0xc49   : > { %3935 = vst [vmem:[%s479_s27] sm:$0xff] %v3934_v14 }
 0xc4a PF: > { %s5456_s25 = sld [smem:[#allocation9_spill]] }
 0xc50   : > { %s25_s25 = sadd.s32 1, %s5456_s25  }
 0xc51   : > { %p22_p13 = scmp.ge.s32.totalorder %s25_s25, 4  }
 0xc53   :  { %24 = sbr.rel (!%p22_p13) target bundleno = 4 (0x4), region = 115 }
 0xc5a   :  { %3955 = vsyncpa [#allocation3], 1 }
 0xc5b   :  { %3957 = vsyncpa [#allocation3 + $0x1], 1 }
 0xc5c   :  { %3958 = vsyncpa [#allocation5], 1 }

// kernel: trajectory_transformer_forward.7
= control target key start
LH: loop header
LB: loop body
LE: loop exit
PB: predicated region body
PF: predicated region fallthrough
CT: control target
= control target key end

     0   :  { %s4840_s25 = smov 0   ;;  %s5944_s0 = inlined_call_operand.vmem [shape: f32[16,128], index: 0, kind: input, shape index: {}]   ;;  %s5945_s1 = inlined_call_operand.vmem [shape: bf16[128,384], index: 1, kind: input, shape index: {}]   ;;  %s5946_s2 = inlined_call_operand.vmem [shape: f32[1,384], index: 2, kind: input, shape index: {}]   ;;  %s5947_s3 = inlined_call_operand.vmem [shape: bf16[128,128], index: 3, kind: input, shape index: {}]   ;;  %s5948_s4 = inlined_call_operand.vmem [shape: f32[1,128], index: 4, kind: input, shape index: {}]   ;;  %s5949_s5 = inlined_call_operand.vmem [shape: f32[1,128], index: 5, kind: input, shape index: {}]   ;;  %s5950_s6 = inlined_call_operand.vmem [shape: f32[1,128], index: 6, kind: input, shape index: {}]   ;;  %s5951_s7 = inlined_call_operand.vmem [shape: bf16[128,2048], index: 7, kind: input, shape index: {}]   ;;  %s5952_s8 = inlined_call_operand.vmem [shape: f32[1,2048], index: 8, kind: input, shape index: {}]   ;;  %s5953_s9 = inlined_call_operand.vmem [shape: bf16[2048,128], index: 9, kind: input, shape index: {}]   ;;  %s5954_s10 = inlined_call_operand.vmem [shape: f32[1,128], index: 10, kind: input, shape index: {}]   ;;  %s5955_s11 = inlined_call_operand.vmem [shape: f32[1,128], index: 11, kind: input, shape index: {}]   ;;  %s5956_s12 = inlined_call_operand.vmem [shape: f32[1,128], index: 12, kind: input, shape index: {}]   ;;  %s5957_s13 = inlined_call_operand.vmem [shape: f32[16,128], index: 13, kind: output, shape index: {}]  }
   0x1 LB: > { %s3945_s26 = sadd.s32 4294967295, %s4762_s25   ;;  %p3949_p0 = scmp.ge.s32.totalorder %s4762_s25, 1  ;;  %s4762_s25 = sphi %s4840_s25, %s23_s25  }
   0x2   : > { %p386_p1 = scmp.lt.s32.totalorder %s4762_s25, 3 }
   0x4   : > { %p387_p2 = pnand %p3949_p0, %p386_p1 }
   0x5   : > { %v4568_v0 = vld [vmem:[%s5945_s1 + $0x4] ss:$12 sps:$4 sm:$0xff] (!%p387_p2)   ;;  %v4570_v1 = vld [vmem:[%s5945_s1] ss:$12 sps:$4 sm:$0xff] (!%p387_p2)   ;;  %v4764_v2 = vmov (!%p387_p2), 0   ;;  %v4765_v4 = vmov (!%p387_p2), 0.0   ;;  %v473_v28 = vlaneseq (!%p387_p2) }
   0x6   : > { %390 = sbr.rel (%p387_p2) target bundleno = 3059 (0xbf3), region = 72  ;;  %648 = vmatprep.mubr.bf16.mxu0 (!%p387_p2), %v4764_v2  ;;  %616 = vmatprep.subr.bf16.mxu0 (!%p387_p2), %v4568_v0  ;;  %v4571_v3 = vld [vmem:[%s5945_s1 + $0x1c] ss:$12 sps:$4 sm:$0xff] (!%p387_p2)   ;;  %v4573_v5 = vld [vmem:[%s5945_s1 + $0x18] ss:$12 sps:$4 sm:$0xff] (!%p387_p2)   ;;  %p428_p3 = scmp.lt.s32.totalorder (!%p387_p2), %s3945_s26, 1 }
   0x7   : > { %4466 = vmatprep.subr.bf16.mxu1 (!%p387_p2), %v4765_v4  ;;  %617 = vmatpush1.bf16.msra.mxu0 (!%p387_p2), %v4570_v1  ;;  %v4574_v6 = vld [vmem:[%s5945_s1 + $0x34] ss:$12 sps:$4 sm:$0xff] (!%p387_p2)   ;;  %v4576_v7 = vld [vmem:[%s5945_s1 + $0x30] ss:$12 sps:$4 sm:$0xff] (!%p387_p2)   ;;  %v4577_v8 = vld [vmem:[%s5945_s1 + $0x4c] ss:$12 sps:$4 sm:$0xff] (!%p387_p2)  }
   0x8   : > { %618 = vmatprep.subr.bf16.mxu0 (!%p387_p2), %v4571_v3  ;;  %v4579_v9 = vld [vmem:[%s5945_s1 + $0x48] ss:$12 sps:$4 sm:$0xff] (!%p387_p2)   ;;  %v4580_v11 = vld [vmem:[%s5945_s1 + $0x64] ss:$12 sps:$4 sm:$0xff] (!%p387_p2)   ;;  %v4593_v12 = vld [vmem:[%s5945_s1 + $0x20] ss:$12 sps:$4 sm:$0xff] (!%p387_p2)  }
   0x9   : > { %v4592_v10 = vld [vmem:[%s5945_s1 + $0x8] ss:$12 sps:$4 sm:$0xff] (!%p387_p2)   ;;  %v4582_v13 = vld [vmem:[%s5945_s1 + $0x60] ss:$12 sps:$4 sm:$0xff] (!%p387_p2)   ;;  %v4585_v15 = vld [vmem:[%s5945_s1 + $0x78] ss:$12 sps:$4 sm:$0xff] (!%p387_p2)  }
   0xa   : > { %4467 = vmatpush3.bf16.msra.mxu1 (!%p387_p2), %v4592_v10  ;;  %v4583_v14 = vld [vmem:[%s5945_s1 + $0x7c] ss:$12 sps:$4 sm:$0xff] (!%p387_p2)   ;;  %v4594_v16 = vld [vmem:[%s5945_s1 + $0x38] ss:$12 sps:$4 sm:$0xff] (!%p387_p2)   ;;  %v4586_v17 = vld [vmem:[%s5945_s1 + $0x94] ss:$12 sps:$4 sm:$0xff] (!%p387_p2)  }
   0xb   : > { %619 = vmatpush1.bf16.msra.mxu0 (!%p387_p2), %v4573_v5  ;;  %4468 = vmatprep.subr.bf16.mxu1 (!%p387_p2), %v4765_v4  ;;  %v4595_v18 = vld [vmem:[%s5945_s1 + $0x50] ss:$12 sps:$4 sm:$0xff] (!%p387_p2)   ;;  %v4589_v20 = vld [vmem:[%s5945_s1 + $0xac] ss:$12 sps:$4 sm:$0xff] (!%p387_p2)   ;;  %v4596_v21 = vld [vmem:[%s5945_s1 + $0x68] ss:$12 sps:$4 sm:$0xff] (!%p387_p2)  }
   0xc   : > { %620 = vmatprep.subr.bf16.mxu0 (!%p387_p2), %v4574_v6  ;;  %v4588_v19 = vld [vmem:[%s5945_s1 + $0x90] ss:$12 sps:$4 sm:$0xff] (!%p387_p2)   ;;  %v4591_v22 = vld [vmem:[%s5945_s1 + $0xa8] ss:$12 sps:$4 sm:$0xff] (!%p387_p2)   ;;  %v4597_v24 = vld [vmem:[%s5945_s1 + $0x80] ss:$12 sps:$4 sm:$0xff] (!%p387_p2)  }
   0xd   : > { %s5959_s26 = smov (!%p428_p3, %s3945_s26), 1  ;;  %v4598_v26 = vld [vmem:[%s5945_s1 + $0x98] ss:$12 sps:$4 sm:$0xff]   ;;  %v4599_v27 = vld [vmem:[%s5945_s1 + $0xb0] ss:$12 sps:$4 sm:$0xff]   ;;  %vm4766_vm0 = vmmov 0  }
   0xe   : > { %s3950_s17 = sshll.u32 %s5959_s26, 3  ;;  %4469 = vmatpush3.bf16.msra.mxu1 %v4593_v12  ;;  %4482 = vmatprep.mubr.msk.bf16.mxu1 %vm4766_vm0, %v4765_v4  ;;  %v4949_v29 = vshrl.u32 %v473_v28, 7  ;;  %v471_v31 = vld [vmem:[%s5946_s2] sm:$0x7]  ;;  %vm701_vm1 = vcmask 261120   ;;  %s4767_s21 = smov 96  }
   0xf   : > { %621 = vmatpush1.bf16.msra.mxu0 %v4576_v7  ;;  %4470 = vmatprep.subr.bf16.mxu1 %v4765_v4  ;;  %s431_s22 = scalar_lea.vmem %s5944_s0, %s3950_s17  ;;  %s4769_s23 = smov 32   ;;  %vm764_vm2 = vcmask 1043456   ;;  %vm748_vm3 = vcmask 64512   ;;  %vm1154_vm4 = vcmask 523264   ;;  %vm1156_vm5 = vcmask 785408  }
  0x10   : > { %622 = vmatprep.subr.bf16.mxu0 %v4577_v8  ;;  %v4924_v23 = vld [vmem:[%s431_s22] sm:$0xff]  ;;  %v4952_v30 = vsub.s32 0, %v4949_v29  ;;  %v4958_v32 = vsub.s32 1, %v4949_v29  ;;  %s4768_s22 = smov 64   ;;  %v4973_v45 = vsub.s32 2, %v4949_v29  ;;  %s435_s29 = scalar_lea.vmem %s5957_s13, %s3950_s17 }
  0x11   : > { %v438_v25 = vpack.c.bf16 %v4924_v23, %v4924_v23 }
  0x12   : > { %4471 = vmatpush3.bf16.msra.mxu1 %v4594_v16  ;;  %v476_v33 = vrot.slane %v471_v31, %v4952_v30  ;;  %v480_v34 = vrot.slane %v471_v31, %v4958_v32  ;;  %v484_v46 = vrot.slane %v471_v31, %v4973_v45 }
  0x13   : > { %623 = vmatpush1.bf16.msra.mxu0 %v4579_v9  ;;  %4472 = vmatprep.subr.bf16.mxu1 %v4765_v4 }
  0x14   : > { %624 = vmatprep.subr.bf16.mxu0 %v4580_v11 }
  0x16   : > { %4473 = vmatpush3.bf16.msra.mxu1 %v4595_v18 }
  0x17   : > { %625 = vmatpush1.bf16.msra.mxu0 %v4582_v13  ;;  %4474 = vmatprep.subr.bf16.mxu1 %v4765_v4 }
  0x18   : > { %626 = vmatprep.subr.bf16.mxu0 %v4583_v14 }
  0x1a   : > { %4475 = vmatpush3.bf16.msra.mxu1 %v4596_v21 }
  0x1b   : > { %627 = vmatpush1.bf16.msra.mxu0 %v4585_v15  ;;  %4476 = vmatprep.subr.bf16.mxu1 %v4765_v4 }
  0x1c   : > { %628 = vmatprep.subr.bf16.mxu0 %v4586_v17 }
  0x1e   : > { %4477 = vmatpush3.bf16.msra.mxu1 %v4597_v24 }
  0x1f   : > { %629 = vmatpush1.bf16.msra.mxu0 %v4588_v19  ;;  %4478 = vmatprep.subr.bf16.mxu1 %v4765_v4 }
  0x20   : > { %630 = vmatprep.subr.bf16.mxu0 %v4589_v20 }
  0x22   : > { %4479 = vmatpush3.bf16.msra.mxu1 %v4598_v26 }
  0x23   : > { %631 = vmatpush1.bf16.msra.mxu0 %v4591_v22  ;;  %4480 = vmatprep.subr.bf16.mxu1 %v4765_v4 }
  0x24   : > { %4510 = vmatprep.subr.bf16.mxu0 %v4765_v4 }
  0x26   : > { %649 = vmatmul.mubr.bf16.vlgmr.msra.gmra.mrb[0].mxu0 %v438_v25  ;;  %4481 = vmatpush3.bf16.msra.mxu1 %v4599_v27 }
  0x27   : > { %4486 = vmatprep.subr.bf16.mxu1 %v4765_v4  ;;  %4512 = vmatprep.mubr.msk.bf16.mxu0 %vm4766_vm0, %v4765_v4 }
  0x29   : > { %4483 = vmatmul.mubr.bf16.vlgmr.msra.gmra.mrb[0].mxu1 %v438_v25 }
  0x2a   : > { %4488 = vmatprep.mubr.msk.bf16.mxu1 %vm4766_vm0, %v4765_v4 }
  0xf9   : > { %v650_v35 = vpop.f32.mrb[0].mxu0 }
  0xfa   : > { %v651_v36 = vadd.f32 %v650_v35, %v476_v33  ;;  %v652_v37 = vpop.f32.mrb[1].mxu0 }
  0xfb   : > { %v653_v38 = vadd.f32 %v652_v37, %v480_v34  ;;  %v654_v39 = vpop.f32.mrb[2].mxu0 }
  0xfc   : > { %v655_v40 = vpop.f32.mrb[3].mxu0  ;;  %v697_v41 = vmul.f32 0.17677669, %v651_v36  ;;  %v691_v47 = vpop.f32.mrb[0].mxu1 }
  0xfd   : > { %v699_v42 = vpack.c.bf16 %v653_v38, %v653_v38  ;;  %v692_v48 = vadd.f32 %v691_v47, %v484_v46  ;;  %v4484_v49 = vpop.f32.mrb[1].mxu1 }
  0xfe   : > { %v698_v44 = vpack.c.bf16 %v697_v41, %v697_v41  ;;  %v694_v50 = vpop.f32.mrb[2].mxu1 }
  0xff   : > { %812 = vrot.lane.b32.xlu1 %v699_v42, %s4767_s21  ;;  %v706_v43 = vsel %vm701_vm1, %v699_v42, 0  ;;  %v4976_v51 = vpack.c.bf16 %v692_v48, %v692_v48  ;;  %v4485_v52 = vpop.f32.mrb[3].mxu1 }
 0x100   : > { %4487 = vmatpush3.bf16.xpose.msra.mxu1 %v706_v43 }
 0x101   : > { %4492 = vmatprep.subr.bf16.mxu1 %v4765_v4  ;;  %v766_v53 = vsel %vm764_vm2, %v4976_v51, 0 }
 0x103   : > { %809 = vrot.lane.b32.xlu1 %v698_v44, %s4767_s21 }
 0x107   : > { %921 = vrot.lane.b32.xlu1 %v698_v44, %s4768_s22  ;;  %4489 = vmatmul.mubr.msk.bf16.vlgmr.msra.gmra.mrb[4].mxu1 %vm701_vm1, %v698_v44 }
 0x108   : > { %4494 = vmatprep.mubr.msk.bf16.mxu1 %vm4766_vm0, %v4765_v4  ;;  %4493 = vmatpush3.bf16.msra.mxu1 %v766_v53 }
 0x109   : > { %4498 = vmatprep.subr.bf16.mxu1 %v4765_v4 }
 0x10b   : > { %1033 = vrot.lane.b32.xlu1 %v699_v42, %s4769_s23 }
 0x10f   : > { %1031 = vrot.lane.b32.xlu1 %v698_v44, %s4769_s23 }
 0x171   : > { %v813_v0 = vpop.permute.xlu1 %812 }
 0x172   : > { %v818_v13 = vsel %vm701_vm1, %v813_v0, 0 }
 0x175   : > { %v810_v1 = vpop.permute.xlu1 %809 }
 0x179   : > { %v922_v5 = vpop.permute.xlu1 %921 }
 0x17d   : > { %v1034_v8 = vpop.permute.xlu1 %1033 }
 0x17e   : > { %v1039_v11 = vsel %vm701_vm1, %v1034_v8, 0 }
 0x181   : > { %v1032_v14 = vpop.permute.xlu1 %1031 }
 0x1da   : > { %v742_v54 = vpop.f32.mrb[4].mxu1 }
 0x1db   : > { %v4490_v55 = vpop.f32.mrb[5].mxu1  ;;  %v749_v56 = vsel %vm748_vm3, %v742_v54, -inf }
 0x1dc   : > { %750 = vmax.xlane.f32.xlu0 %v749_v56  ;;  %v745_v57 = vpop.f32.mrb[6].mxu1 }
 0x1dd   : > { %v4491_v58 = vpop.f32.mrb[7].mxu1 }
 0x269   : > { %v751_v59 = vpop.xlane.xlu0 %750 }
 0x26a   : > { %v752_v60 = vsub.f32 %v742_v54, %v751_v59 }
 0x26c   : > { %v753_v61 = vmul.f32 1.442695, %v752_v60 }
 0x26e   : > { %4736 = vpow2.f32 %v753_v61 }
 0x278   : > { %v4737_v62 = vpop.eup %4736 }
 0x279   : > { %v755_v63 = vsel %vm748_vm3, %v4737_v62, 0.0 }
 0x27a   : > { %756 = vadd.xlane.f32.xlu0 %v755_v63 }
 0x290   : > { %923 = vrot.lane.b32.xlu0 %v699_v42, %s4768_s22 }
 0x307   : > { %v757_v3 = vpop.xlane.xlu0 %756 }
 0x308   : > { %4738 = vrcp.f32 %v757_v3 }
 0x30b   : > { %v924_v6 = vpop.permute.xlu0 %923 }
 0x30c   : > { %v929_v7 = vsel %vm701_vm1, %v924_v6, 0 }
 0x30d   : > { %4511 = vmatpush3.bf16.xpose.msra.mxu0 %v929_v7 }
 0x30e   : > { %4522 = vmatprep.subr.bf16.mxu0 %v4765_v4 }
 0x312   : > { %v4739_v9 = vpop.eup %4738 }
 0x313   : > { %v759_v10 = vmul.f32 %v4739_v9, %v4737_v62 }
 0x314   : > { %4513 = vmatmul.mubr.msk.bf16.vlgmr.msra.gmra.mrb[4].mxu0 %vm701_vm1, %v922_v5 }
 0x315   : > { %4523 = vmatpush3.bf16.xpose.msra.mxu0 %v1039_v11  ;;  %v760_v12 = vpack.c.bf16 %v759_v10, %v759_v10  ;;  %4524 = vmatprep.mubr.msk.bf16.mxu0 %vm4766_vm0, %v4765_v4  ;;  %v4600_v10 = vld [vmem:[%s5947_s3] sm:$0xff]   ;;  %v4601_v11 = vld [vmem:[%s5947_s3 + $0x8] sm:$0xff]  }
 0x316   : > { %4534 = vmatprep.subr.bf16.mxu0 %v4765_v4 }
 0x317   : > { %4495 = vmatmul.mubr.msk.bf16.vlgmr.msra.gmra.mrb[8].mxu1 %vm748_vm3, %v760_v12  ;;  %v4602_v12 = vld [vmem:[%s5947_s3 + $0x10] sm:$0xff]  }
 0x318   : > { %4499 = vmatpush3.bf16.xpose.msra.mxu1 %v818_v13  ;;  %4500 = vmatprep.mubr.msk.bf16.mxu1 %vm4766_vm0, %v4765_v4  ;;  %v4603_v13 = vld [vmem:[%s5947_s3 + $0x18] sm:$0xff]  }
 0x319   : > { %4504 = vmatprep.subr.bf16.mxu1 %v4765_v4 }
 0x31c   : > { %4525 = vmatmul.mubr.msk.bf16.vlgmr.msra.gmra.mrb[8].mxu0 %vm701_vm1, %v1032_v14  ;;  %v4604_v14 = vld [vmem:[%s5947_s3 + $0x20] sm:$0xff]  }
 0x31d   : > { %4550 = vmatprep.mubr.msk.bf16.mxu0 %vm4766_vm0, %v4765_v4  ;;  %4535 = vmatpush3.bf16.msra.mxu0 %v4600_v10 }
 0x31e   : > { %4536 = vmatprep.subr.bf16.mxu0 %v4765_v4 }
 0x31f   : > { %4501 = vmatmul.mubr.msk.bf16.vlgmr.msra.gmra.mrb[12].mxu1 %vm701_vm1, %v810_v1 }
 0x320   : > { %4506 = vmatprep.mubr.msk.bf16.mxu1 %vm4766_vm0, %v4765_v4 }
 0x321   : > { %4537 = vmatpush3.bf16.msra.mxu0 %v4601_v11 }
 0x322   : > { %4538 = vmatprep.subr.bf16.mxu0 %v4765_v4 }
 0x325   : > { %4539 = vmatpush3.bf16.msra.mxu0 %v4602_v12 }
 0x326   : > { %4540 = vmatprep.subr.bf16.mxu0 %v4765_v4 }
 0x329   : > { %4541 = vmatpush3.bf16.msra.mxu0 %v4603_v13  ;;  %v1348_v13 = vld [vmem:[%s5951_s7 + $0x180] sm:$0xff] }
 0x32a   : > { %4542 = vmatprep.subr.bf16.mxu0 %v4765_v4 }
 0x32d   : > { %4543 = vmatpush3.bf16.msra.mxu0 %v4604_v14  ;;  %v1356_v14 = vld [vmem:[%s5951_s7 + $0x1c0] sm:$0xff] }
 0x32e   : > { %4544 = vmatprep.subr.bf16.mxu0 %v4765_v4 }
 0x3e7   : > { %v965_v15 = vpop.f32.mrb[4].mxu0 }
 0x3e8   : > { %v4514_v16 = vpop.f32.mrb[5].mxu0  ;;  %v971_v17 = vsel %vm748_vm3, %v965_v15, -inf }
 0x3e9   : > { %972 = vmax.xlane.f32.xlu0 %v971_v17  ;;  %v968_v18 = vpop.f32.mrb[6].mxu0  ;;  %v4606_v16 = vld [vmem:[%s5947_s3 + $0x30] sm:$0xff]  }
 0x3ea   : > { %v5003_v19 = vpop.f32.mrb[8].mxu1  ;;  %v4515_v20 = vpop.f32.mrb[7].mxu0 }
 0x3eb   : > { %v4496_v21 = vpop.f32.mrb[9].mxu1 }
 0x3ec   : > { %v805_v22 = vpop.f32.mrb[10].mxu1 }
 0x3ed   : > { %v4497_v24 = vpop.f32.mrb[11].mxu1  ;;  %v4607_v22 = vld [vmem:[%s5947_s3 + $0x38] sm:$0xff]  }
 0x3ef   : > { %v1075_v25 = vpop.f32.mrb[8].mxu0 }
 0x3f0   : > { %v4526_v26 = vpop.f32.mrb[9].mxu0  ;;  %v1081_v37 = vsel %vm748_vm3, %v1075_v25, -inf }
 0x3f1   : > { %v1078_v27 = vpop.f32.mrb[10].mxu0 }
 0x3f2   : > { %v854_v28 = vpop.f32.mrb[12].mxu1  ;;  %v4527_v31 = vpop.f32.mrb[11].mxu0 }
 0x3f3   : > { %v4502_v33 = vpop.f32.mrb[13].mxu1  ;;  %v860_v34 = vsel %vm748_vm3, %v854_v28, -inf }
 0x3f4   : > { %861 = vmax.xlane.f32.xlu1 %v860_v34  ;;  %v857_v35 = vpop.f32.mrb[14].mxu1 }
 0x3f5   : > { %v4503_v36 = vpop.f32.mrb[15].mxu1 }
 0x3f8   : > { %1082 = vmax.xlane.f32.xlu1 %v1081_v37 }
 0x476   : > { %v973_v38 = vpop.xlane.xlu0 %972 }
 0x477   : > { %v974_v39 = vsub.f32 %v965_v15, %v973_v38  ;;  %v4605_v15 = vld [vmem:[%s5947_s3 + $0x28] sm:$0xff]  }
 0x478   : > { %4545 = vmatpush3.bf16.msra.mxu0 %v4605_v15  ;;  %v1349_v15 = vld [vmem:[%s5951_s7 + $0x188] sm:$0xff] }
 0x479   : > { %v975_v40 = vmul.f32 1.442695, %v974_v39  ;;  %4546 = vmatprep.subr.bf16.mxu0 %v4765_v4 }
 0x47b   : > { %4740 = vpow2.f32 %v975_v40 }
 0x47c   : > { %4547 = vmatpush3.bf16.msra.mxu0 %v4606_v16  ;;  %v4044_v16 = vcombine.high %v1348_v13, %v1356_v14 }
 0x47d   : > { %4548 = vmatprep.subr.bf16.mxu0 %v4765_v4 }
 0x480   : > { %4549 = vmatpush3.bf16.msra.mxu0 %v4607_v22  ;;  %v1364_v22 = vld [vmem:[%s5951_s7 + $0x200] sm:$0xff] }
 0x481   : > { %v862_v41 = vpop.xlane.xlu1 %861 }
 0x482   : > { %v863_v42 = vsub.f32 %v854_v28, %v862_v41  ;;  %v3984_v41 = vld [vmem:[%s5948_s4] ss:$0 sm:$0xff] }
 0x484   : > { %v864_v48 = vmul.f32 1.442695, %v863_v42 }
 0x485   : > { %v4741_v43 = vpop.eup %4740  ;;  %v1083_v44 = vpop.xlane.xlu1 %1082 }
 0x486   : > { %v1084_v46 = vsub.f32 %v1075_v25, %v1083_v44  ;;  %v977_v47 = vsel %vm748_vm3, %v4741_v43, 0.0 }
 0x487   : > { %978 = vadd.xlane.f32.xlu0 %v977_v47 }
 0x488   : > { %v1085_v49 = vmul.f32 1.442695, %v1084_v46 }
 0x48a   : > { %4742 = vpow2.f32 %v1085_v49  ;;  %v1308_v49 = vld [vmem:[%s5951_s7 + $0x40] sm:$0xff] }
 0x48b   : > { %4744 = vpow2.f32 %v864_v48 }
 0x494   : > { %v4743_v50 = vpop.eup %4742 }
 0x495   : > { %v1087_v52 = vsel %vm748_vm3, %v4743_v50, 0.0  ;;  %v4745_v53 = vpop.eup %4744 }
 0x496   : > { %1088 = vadd.xlane.f32.xlu1 %v1087_v52  ;;  %v866_v54 = vsel %vm748_vm3, %v4745_v53, 0.0 }
 0x49a   : > { %867 = vadd.xlane.f32.xlu1 %v866_v54  ;;  %v1309_v54 = vld [vmem:[%s5951_s7 + $0x48] sm:$0xff] }
 0x49d   : > { %873 = vrot.lane.b32.xlu0 %v4976_v51, %s4767_s21 }
 0x4ab   : > { %983 = vrot.lane.b32.xlu1 %v4976_v51, %s4768_s22 }
 0x4af   : > { %1093 = vrot.lane.b32.xlu1 %v4976_v51, %s4769_s23 }
 0x514   : > { %v979_v55 = vpop.xlane.xlu0 %978 }
 0x518   : > { %v874_v56 = vpop.permute.xlu0 %873 }
 0x519   : > { %v879_v57 = vsel %vm764_vm2, %v874_v56, 0 }
 0x51a   : > { %4505 = vmatpush3.bf16.msra.mxu1 %v879_v57 }
 0x51b   : > { %4516 = vmatprep.subr.bf16.mxu1 %v4765_v4 }
 0x523   : > { %v1089_v58 = vpop.xlane.xlu1 %1088 }
 0x527   : > { %v868_v59 = vpop.xlane.xlu1 %867 }
 0x528   : > { %4746 = vrcp.f32 %v868_v59  ;;  %v1317_v59 = vld [vmem:[%s5951_s7 + $0x88] sm:$0xff] }
 0x529   : > { %4748 = vrcp.f32 %v979_v55  ;;  %v1324_v55 = vld [vmem:[%s5951_s7 + $0xc0] sm:$0xff] }
 0x52a   : > { %4750 = vrcp.f32 %v1089_v58 }
 0x52b   : > { %v984_v62 = vpop.permute.xlu1 %983 }
 0x52c   : > { %v989_v1 = vsel %vm764_vm2, %v984_v62, 0 }
 0x52f   : > { %v1094_v3 = vpop.permute.xlu1 %1093 }
 0x530   : > { %v1099_v7 = vsel %vm764_vm2, %v1094_v3, 0 }
 0x532   : > { %v4747_v60 = vpop.eup %4746 }
 0x533   : > { %v870_v61 = vmul.f32 %v4747_v60, %v4745_v53  ;;  %v4749_v0 = vpop.eup %4748  ;;  %v1325_v60 = vld [vmem:[%s5951_s7 + $0xc8] sm:$0xff] }
 0x534   : > { %v981_v51 = vmul.f32 %v4749_v0, %v4741_v43  ;;  %v4751_v6 = vpop.eup %4750  ;;  %v4014_v62 = vcombine.high %v1317_v59, %v1325_v60  ;;  %v1333_v0 = vld [vmem:[%s5951_s7 + $0x108] sm:$0xff]  ;;  %v4013_v3 = vcombine.low %v1317_v59, %v1325_v60  ;;  %v1303_v59 = vld [vmem:[%s5951_s7 + $0x18] sm:$0xff] }
 0x535   : > { %v871_v63 = vpack.c.bf16 %v870_v61, %v870_v61  ;;  %v1091_v8 = vmul.f32 %v4751_v6, %v4743_v50  ;;  %v1301_v50 = vld [vmem:[%s5951_s7 + $0x8] sm:$0xff]  ;;  %v1332_v61 = vld [vmem:[%s5951_s7 + $0x100] sm:$0xff] }
 0x536   : > { %v982_v5 = vpack.c.bf16 %v981_v51, %v981_v51  ;;  %v3997_v56 = vcombine.low %v1301_v50, %v1309_v54  ;;  %v3998_v57 = vcombine.high %v1301_v50, %v1309_v54  ;;  %v1420_v50 = vld [vmem:[%s5951_s7 + $0x3c0] sm:$0xff]  ;;  %v1421_v54 = vld [vmem:[%s5951_s7 + $0x3c8] sm:$0xff] }
 0x537   : > { %4507 = vmatmul.mubr.msk.bf16.vlgmr.msra.gmra.mrb[16].mxu1 %vm748_vm3, %v871_v63  ;;  %v1092_v9 = vpack.c.bf16 %v1091_v8, %v1091_v8  ;;  %v1340_v63 = vld [vmem:[%s5951_s7 + $0x140] sm:$0xff] }
 0x538   : > { %4517 = vmatpush3.bf16.msra.mxu1 %v989_v1  ;;  %4518 = vmatprep.mubr.msk.bf16.mxu1 %vm4766_vm0, %v4765_v4  ;;  %v1341_v1 = vld [vmem:[%s5951_s7 + $0x148] sm:$0xff] }
 0x539   : > { %4528 = vmatprep.subr.bf16.mxu1 %v4765_v4  ;;  %2193 = vmatprep.subr.bf16.mxu0 %v3998_v57  ;;  %v4030_v6 = vcombine.high %v1333_v0, %v1341_v1  ;;  %v4029_v8 = vcombine.low %v1333_v0, %v1341_v1  ;;  %v1302_v57 = vld [vmem:[%s5951_s7 + $0x10] sm:$0xff] }
 0x53f   : > { %4519 = vmatmul.mubr.msk.bf16.vlgmr.msra.gmra.mrb[20].mxu1 %vm748_vm3, %v982_v5  ;;  %v4028_v5 = vcombine.high %v1332_v61, %v1340_v63 }
 0x540   : > { %4529 = vmatpush3.bf16.msra.mxu1 %v1099_v7  ;;  %4530 = vmatprep.mubr.msk.bf16.mxu1 %vm4766_vm0, %v4765_v4  ;;  %v4027_v7 = vcombine.low %v1332_v61, %v1340_v63 }
 0x547   : > { %4531 = vmatmul.mubr.msk.bf16.vlgmr.msra.gmra.mrb[24].mxu1 %vm748_vm3, %v1092_v9 }
 0x548   : > { %2184 = vmatprep.mubr.bf16.mxu1 %v4764_v2 }
 0x60a   : > { %v915_v17 = vpop.f32.mrb[16].mxu1 }
 0x60b   : > { %1142 = vrot.lane.b32.xlu0 %v915_v17, %s4769_s23  ;;  %v4508_v18 = vpop.f32.mrb[17].mxu1  ;;  %v1357_v17 = vld [vmem:[%s5951_s7 + $0x1c8] sm:$0xff] }
 0x60c   : > { %v918_v20 = vpop.f32.mrb[18].mxu1  ;;  %v4043_v18 = vcombine.low %v1348_v13, %v1356_v14  ;;  %v1319_v13 = vld [vmem:[%s5951_s7 + $0x98] sm:$0xff] }
 0x60d   : > { %v4509_v21 = vpop.f32.mrb[19].mxu1  ;;  %v4045_v20 = vcombine.low %v1349_v15, %v1357_v17 }
 0x60e   : > { %v4046_v21 = vcombine.high %v1349_v15, %v1357_v17 }
 0x612   : > { %v1025_v24 = vpop.f32.mrb[20].mxu1 }
 0x613   : > { %1146 = vrot.lane.b32.xlu1 %v1025_v24, %s4768_s22  ;;  %v4520_v25 = vpop.f32.mrb[21].mxu1  ;;  %v1372_v24 = vld [vmem:[%s5951_s7 + $0x240] sm:$0xff] }
 0x614   : > { %v1028_v26 = vpop.f32.mrb[22].mxu1  ;;  %v1365_v25 = vld [vmem:[%s5951_s7 + $0x208] sm:$0xff] }
 0x615   : > { %v4521_v27 = vpop.f32.mrb[23].mxu1  ;;  %v4060_v26 = vcombine.high %v1364_v22, %v1372_v24 }
 0x616   : > { %v1373_v27 = vld [vmem:[%s5951_s7 + $0x248] sm:$0xff] }
 0x61a   : > { %v1135_v28 = vpop.f32.mrb[24].mxu1 }
 0x61b   : > { %1150 = vrot.lane.b32.xlu0 %v1135_v28, %s4767_s21  ;;  %v4532_v31 = vpop.f32.mrb[25].mxu1  ;;  %v4059_v28 = vcombine.low %v1364_v22, %v1372_v24  ;;  %v1343_v22 = vld [vmem:[%s5951_s7 + $0x158] sm:$0xff] }
 0x61c   : > { %v1138_v33 = vpop.f32.mrb[26].mxu1  ;;  %v4061_v31 = vcombine.low %v1365_v25, %v1373_v27 }
 0x61d   : > { %v4533_v34 = vpop.f32.mrb[27].mxu1  ;;  %v4062_v33 = vcombine.high %v1365_v25, %v1373_v27 }
 0x61e   : > { %v1380_v34 = vld [vmem:[%s5951_s7 + $0x280] sm:$0xff] }
 0x67d   : > { %v1143_v35 = vpop.permute.xlu0 %1142 }
 0x67e   : > { %v1153_v36 = vsel %vm701_vm1, %v5003_v19, %v1143_v35  ;;  %v1300_v19 = vld [vmem:[%s5951_s7] sm:$0xff] }
 0x67f   : > { %v3995_v52 = vcombine.low %v1300_v19, %v1308_v49  ;;  %v3996_v53 = vcombine.high %v1300_v19, %v1308_v49  ;;  %v1388_v35 = vld [vmem:[%s5951_s7 + $0x2c0] sm:$0xff] }
 0x680   : > { %v1412_v49 = vld [vmem:[%s5951_s7 + $0x380] sm:$0xff] }
 0x681   : > { %2152 = vmatprep.subr.bf16.mxu1 %v3996_v53  ;;  %v4108_v53 = vcombine.high %v1412_v49, %v1420_v50 }
 0x682   : > { %2153 = vmatpush1.bf16.msra.mxu1 %v3995_v52  ;;  %v1413_v52 = vld [vmem:[%s5951_s7 + $0x388] sm:$0xff] }
 0x685   : > { %v1147_v4 = vpop.permute.xlu1 %1146 }
 0x686   : > { %v1155_v37 = vsel %vm1154_vm4, %v1153_v36, %v1147_v4  ;;  %v1381_v4 = vld [vmem:[%s5951_s7 + $0x288] sm:$0xff]  ;;  %v4076_v36 = vcombine.high %v1380_v34, %v1388_v35 }
 0x68d   : > { %v1151_v38 = vpop.permute.xlu0 %1150 }
 0x68e   : > { %v1157_v39 = vsel %vm1156_vm5, %v1155_v37, %v1151_v38  ;;  %v1389_v37 = vld [vmem:[%s5951_s7 + $0x2c8] sm:$0xff]  ;;  %v4075_v38 = vcombine.low %v1380_v34, %v1388_v35  ;;  %v1359_v34 = vld [vmem:[%s5951_s7 + $0x1d8] sm:$0xff] }
 0x68f   : > { %v1158_v40 = vpack.c.bf16 %v1157_v39, %v1157_v39  ;;  %v4077_v39 = vcombine.low %v1381_v4, %v1389_v37 }
 0x691   : > { %4551 = vmatmul.mubr.bf16.vlgmr.msra.gmra.mrb[12].mxu0 %v1158_v40  ;;  %v4078_v40 = vcombine.high %v1381_v4, %v1389_v37 }
 0x692   : > { %2225 = vmatprep.mubr.bf16.mxu0 %v4764_v2  ;;  %2194 = vmatpush1.bf16.msra.mxu0 %v3997_v56  ;;  %v4110_v56 = vcombine.high %v1413_v52, %v1421_v54 }
 0x693   : > { %2195 = vmatprep.subr.bf16.mxu0 %v4014_v62  ;;  %v1311_v62 = vld [vmem:[%s5951_s7 + $0x58] sm:$0xff] }
 0x694   : > { %v4001_v63 = vcombine.low %v1303_v59, %v1311_v62  ;;  %v4002_v0 = vcombine.high %v1303_v59, %v1311_v62  ;;  %v1414_v62 = vld [vmem:[%s5951_s7 + $0x390] sm:$0xff] }
 0x696   : > { %2196 = vmatpush1.bf16.msra.mxu0 %v4013_v3 }
 0x697   : > { %2197 = vmatprep.subr.bf16.mxu0 %v4030_v6  ;;  %v3993_v6 = vld [vmem:[%s5949_s5] ss:$0 sm:$0xff] }
 0x69a   : > { %2198 = vmatpush1.bf16.msra.mxu0 %v4029_v8  ;;  %v3994_v8 = vld [vmem:[%s5950_s6] ss:$0 sm:$0xff] }
 0x69b   : > { %2199 = vmatprep.subr.bf16.mxu0 %v4046_v21  ;;  %v1335_v21 = vld [vmem:[%s5951_s7 + $0x118] sm:$0xff] }
 0x69c   : > { %v4034_v27 = vcombine.high %v1335_v21, %v1343_v22  ;;  %v4033_v4 = vcombine.low %v1335_v21, %v1343_v22  ;;  %v1329_v21 = vld [vmem:[%s5951_s7 + $0xe8] sm:$0xff] }
 0x69e   : > { %2200 = vmatpush1.bf16.msra.mxu0 %v4045_v20  ;;  %v1342_v20 = vld [vmem:[%s5951_s7 + $0x150] sm:$0xff] }
 0x69f   : > { %2201 = vmatprep.subr.bf16.mxu0 %v4062_v33  ;;  %v1351_v33 = vld [vmem:[%s5951_s7 + $0x198] sm:$0xff] }
 0x6a0   : > { %v4050_v37 = vcombine.high %v1351_v33, %v1359_v34 }
 0x6a2   : > { %2202 = vmatpush1.bf16.msra.mxu0 %v4061_v31  ;;  %v1358_v31 = vld [vmem:[%s5951_s7 + $0x1d0] sm:$0xff] }
 0x6a3   : > { %2203 = vmatprep.subr.bf16.mxu0 %v4078_v40  ;;  %v1367_v40 = vld [vmem:[%s5951_s7 + $0x218] sm:$0xff] }
 0x6a6   : > { %2204 = vmatpush1.bf16.msra.mxu0 %v4077_v39  ;;  %v1374_v39 = vld [vmem:[%s5951_s7 + $0x250] sm:$0xff] }
 0x764   : > { %v1264_v42 = vpop.f32.mrb[12].mxu0 }
 0x765   : > { %v1265_v43 = vadd.f32 %v3984_v41, %v1264_v42  ;;  %v4552_v44 = vpop.f32.mrb[13].mxu0  ;;  %v1396_v41 = vld [vmem:[%s5951_s7 + $0x300] sm:$0xff] }
 0x766   : > { %v1267_v46 = vpop.f32.mrb[14].mxu0  ;;  %v1404_v42 = vld [vmem:[%s5951_s7 + $0x340] sm:$0xff] }
 0x767   : > { %v4553_v47 = vpop.f32.mrb[15].mxu0  ;;  %v1270_v48 = vadd.f32 %v1265_v43, %v4924_v23  ;;  %v1316_v23 = vld [vmem:[%s5951_s7 + $0x80] sm:$0xff]  ;;  %v1397_v43 = vld [vmem:[%s5951_s7 + $0x308] sm:$0xff]  ;;  %v4092_v44 = vcombine.high %v1396_v41, %v1404_v42 }
 0x768   : > { %v4012_v58 = vcombine.high %v1316_v23, %v1324_v55  ;;  %v4011_v51 = vcombine.low %v1316_v23, %v1324_v55  ;;  %v1405_v46 = vld [vmem:[%s5951_s7 + $0x348] sm:$0xff]  ;;  %v4091_v47 = vcombine.low %v1396_v41, %v1404_v42  ;;  %v4107_v23 = vcombine.low %v1412_v49, %v1420_v50  ;;  %v1375_v41 = vld [vmem:[%s5951_s7 + $0x258] sm:$0xff] }
 0x769   : > { %1273 = vadd.xlane.f32.xlu1 %v1270_v48  ;;  %v4094_v19 = vcombine.high %v1397_v43, %v1405_v46  ;;  %v4109_v55 = vcombine.low %v1413_v52, %v1421_v54  ;;  %v1391_v49 = vld [vmem:[%s5951_s7 + $0x2d8] sm:$0xff]  ;;  %v4065_v52 = vcombine.low %v1367_v40, %v1375_v41 }
 0x76a   : > { %2154 = vmatprep.subr.bf16.mxu1 %v4012_v58  ;;  %v1310_v58 = vld [vmem:[%s5951_s7 + $0x50] sm:$0xff] }
 0x76b   : > { %2155 = vmatpush1.bf16.msra.mxu1 %v4011_v51  ;;  %2205 = vmatprep.subr.bf16.mxu0 %v4094_v19  ;;  %v3999_v60 = vcombine.low %v1302_v57, %v1310_v58  ;;  %v4000_v61 = vcombine.high %v1302_v57, %v1310_v58  ;;  %v1383_v19 = vld [vmem:[%s5951_s7 + $0x298] sm:$0xff] }
 0x76c   : > { %2156 = vmatprep.subr.bf16.mxu1 %v4028_v5  ;;  %v4082_v54 = vcombine.high %v1383_v19, %v1391_v49  ;;  %v1407_v57 = vld [vmem:[%s5951_s7 + $0x358] sm:$0xff]  ;;  %v4081_v59 = vcombine.low %v1383_v19, %v1391_v49  ;;  %v1377_v19 = vld [vmem:[%s5951_s7 + $0x268] sm:$0xff] }
 0x76f   : > { %2157 = vmatpush1.bf16.msra.mxu1 %v4027_v7 }
 0x770   : > { %2158 = vmatprep.subr.bf16.mxu1 %v4044_v16 }
 0x773   : > { %2159 = vmatpush1.bf16.msra.mxu1 %v4043_v18  ;;  %v1334_v18 = vld [vmem:[%s5951_s7 + $0x110] sm:$0xff] }
 0x774   : > { %2160 = vmatprep.subr.bf16.mxu1 %v4060_v26  ;;  %v4032_v26 = vcombine.high %v1334_v18, %v1342_v20  ;;  %v4031_v35 = vcombine.low %v1334_v18, %v1342_v20  ;;  %v1328_v18 = vld [vmem:[%s5951_s7 + $0xe0] sm:$0xff]  ;;  %v1321_v20 = vld [vmem:[%s5951_s7 + $0xa8] sm:$0xff] }
 0x777   : > { %2161 = vmatpush1.bf16.msra.mxu1 %v4059_v28  ;;  %v1350_v28 = vld [vmem:[%s5951_s7 + $0x190] sm:$0xff] }
 0x778   : > { %2162 = vmatprep.subr.bf16.mxu1 %v4076_v36  ;;  %v4048_v36 = vcombine.high %v1350_v28, %v1358_v31  ;;  %v4047_v42 = vcombine.low %v1350_v28, %v1358_v31  ;;  %v1344_v28 = vld [vmem:[%s5951_s7 + $0x160] sm:$0xff]  ;;  %v1337_v31 = vld [vmem:[%s5951_s7 + $0x128] sm:$0xff] }
 0x77b   : > { %2163 = vmatpush1.bf16.msra.mxu1 %v4075_v38  ;;  %v1366_v38 = vld [vmem:[%s5951_s7 + $0x210] sm:$0xff] }
 0x77c   : > { %2164 = vmatprep.subr.bf16.mxu1 %v4092_v44  ;;  %v4064_v44 = vcombine.high %v1366_v38, %v1374_v39  ;;  %v4063_v50 = vcombine.low %v1366_v38, %v1374_v39  ;;  %v1360_v38 = vld [vmem:[%s5951_s7 + $0x1e0] sm:$0xff]  ;;  %v1353_v39 = vld [vmem:[%s5951_s7 + $0x1a8] sm:$0xff] }
 0x77f   : > { %2165 = vmatpush1.bf16.msra.mxu1 %v4091_v47  ;;  %v1382_v47 = vld [vmem:[%s5951_s7 + $0x290] sm:$0xff] }
 0x780   : > { %2166 = vmatprep.subr.bf16.mxu1 %v4108_v53 }
 0x783   : > { %2167 = vmatpush1.bf16.msra.mxu1 %v4107_v23  ;;  %v1398_v23 = vld [vmem:[%s5951_s7 + $0x310] sm:$0xff] }
 0x784   : > { %2234 = vmatprep.subr.bf16.mxu1 %v4000_v61 }
 0x7f6   : > { %v1274_v9 = vpop.xlane.xlu1 %1273 }
 0x7f7   : > { %v1276_v10 = vmul.f32 0.0078125, %v1274_v9 }
 0x7f9   : > { %v5106_v11 = vsub.f32 %v1270_v48, %v1276_v10  ;;  %v4093_v48 = vcombine.low %v1397_v43, %v1405_v46  ;;  %v1318_v10 = vld [vmem:[%s5951_s7 + $0x90] sm:$0xff]  ;;  %v4049_v43 = vcombine.low %v1351_v33, %v1359_v34  ;;  %v4066_v46 = vcombine.high %v1367_v40, %v1375_v41  ;;  %v1345_v33 = vld [vmem:[%s5951_s7 + $0x168] sm:$0xff] }
 0x7fa   : > { %v1361_v40 = vld [vmem:[%s5951_s7 + $0x1e8] sm:$0xff] }
 0x7fb   : > { %v1278_v12 = vmul.f32 %v5106_v11, %v5106_v11  ;;  %2206 = vmatpush1.bf16.msra.mxu0 %v4093_v48  ;;  %v1390_v48 = vld [vmem:[%s5951_s7 + $0x2d0] sm:$0xff] }
 0x7fc   : > { %2207 = vmatprep.subr.bf16.mxu0 %v4110_v56  ;;  %v4080_v53 = vcombine.high %v1382_v47, %v1390_v48  ;;  %v1399_v56 = vld [vmem:[%s5951_s7 + $0x318] sm:$0xff]  ;;  %v4079_v58 = vcombine.low %v1382_v47, %v1390_v48  ;;  %v1376_v47 = vld [vmem:[%s5951_s7 + $0x260] sm:$0xff]  ;;  %v1369_v48 = vld [vmem:[%s5951_s7 + $0x228] sm:$0xff] }
 0x7fd   : > { %1279 = vadd.xlane.f32.xlu0 %v1278_v12  ;;  %v1326_v12 = vld [vmem:[%s5951_s7 + $0xd0] sm:$0xff]  ;;  %v4098_v61 = vcombine.high %v1399_v56, %v1407_v57 }
 0x7fe   : > { %v4016_v16 = vcombine.high %v1318_v10, %v1326_v12  ;;  %v4015_v24 = vcombine.low %v1318_v10, %v1326_v12  ;;  %v1313_v10 = vld [vmem:[%s5951_s7 + $0x68] sm:$0xff] }
 0x7ff   : > { %2208 = vmatpush1.bf16.msra.mxu0 %v4109_v55  ;;  %v1406_v55 = vld [vmem:[%s5951_s7 + $0x350] sm:$0xff] }
 0x800   : > { %2275 = vmatprep.subr.bf16.mxu0 %v4002_v0  ;;  %v1415_v0 = vld [vmem:[%s5951_s7 + $0x398] sm:$0xff] }
 0x88a   : > { %v1280_v1 = vpop.xlane.xlu0 %1279 }
 0x88b   : > { %v1281_v51 = vmul.f32 0.0078125, %v1280_v1  ;;  %v1423_v1 = vld [vmem:[%s5951_s7 + $0x3d8] sm:$0xff] }
 0x88d   : > { %v1282_v3 = vadd.f32 1e-05, %v1281_v51  ;;  %v4095_v51 = vcombine.low %v1398_v23, %v1406_v55 }
 0x88f   : > { %4752 = vrsqrt.f32 %v1282_v3  ;;  %v4097_v3 = vcombine.low %v1399_v56, %v1407_v57  ;;  %v1393_v56 = vld [vmem:[%s5951_s7 + $0x2e8] sm:$0xff] }
 0x899   : > { %v4753_v5 = vpop.eup %4752 }
 0x89a   : > { %v1284_v7 = vmul.f32 %v4753_v5, %v5106_v11  ;;  %v1327_v11 = vld [vmem:[%s5951_s7 + $0xd8] sm:$0xff] }
 0x89b   : > { %v4018_v17 = vcombine.high %v1319_v13, %v1327_v11  ;;  %v4017_v25 = vcombine.low %v1319_v13, %v1327_v11  ;;  %v4113_v13 = vcombine.low %v1415_v0, %v1423_v1 }
 0x89c   : > { %v1291_v9 = vmul.f32 %v3993_v6, %v1284_v7  ;;  %v4114_v6 = vcombine.high %v1415_v0, %v1423_v1  ;;  %v1304_v7 = vld [vmem:[%s5951_s7 + $0x20] sm:$0xff]  ;;  %v1409_v0 = vld [vmem:[%s5951_s7 + $0x368] sm:$0xff] }
 0x89e   : > { %v5201_v14 = vadd.f32 %v3994_v8, %v1291_v9  ;;  %v1312_v8 = vld [vmem:[%s5951_s7 + $0x60] sm:$0xff]  ;;  %v1305_v9 = vld [vmem:[%s5951_s7 + $0x28] sm:$0xff] }
 0x89f   : > { %v4004_v11 = vcombine.high %v1304_v7, %v1312_v8  ;;  %v4003_v22 = vcombine.low %v1304_v7, %v1312_v8  ;;  %v1424_v7 = vld [vmem:[%s5951_s7 + $0x3e0] sm:$0xff]  ;;  %v1417_v8 = vld [vmem:[%s5951_s7 + $0x3a8] sm:$0xff] }
 0x8a0   : > { %v5205_v15 = vpack.c.bf16 %v5201_v14, %v5201_v14 }
 0x8a2   : > { %2185 = vmatmul.mubr.bf16.vlgmr.msra.gmra.mrb[28].mxu1 %v5205_v15  ;;  %2226 = vmatmul.mubr.bf16.vlgmr.msra.gmra.mrb[16].mxu0 %v5205_v15 }
 0x8a3   : > { %2235 = vmatpush1.bf16.msra.mxu1 %v3999_v60  ;;  %2276 = vmatpush1.bf16.msra.mxu0 %v4001_v63  ;;  %v4096_v60 = vcombine.high %v1398_v23, %v1406_v55  ;;  %v1422_v63 = vld [vmem:[%s5951_s7 + $0x3d0] sm:$0xff]  ;;  %v1392_v23 = vld [vmem:[%s5951_s7 + $0x2e0] sm:$0xff]  ;;  %v1385_v55 = vld [vmem:[%s5951_s7 + $0x2a8] sm:$0xff] }
 0x8a4   : > { %2236 = vmatprep.subr.bf16.mxu1 %v4016_v16  ;;  %2277 = vmatprep.subr.bf16.mxu0 %v4018_v17  ;;  %v4112_v5 = vcombine.high %v1414_v62, %v1422_v63  ;;  %v4111_v12 = vcombine.low %v1414_v62, %v1422_v63  ;;  %v4006_v16 = vcombine.high %v1305_v9, %v1313_v10  ;;  %v1320_v17 = vld [vmem:[%s5951_s7 + $0xa0] sm:$0xff]  ;;  %v1401_v63 = vld [vmem:[%s5951_s7 + $0x328] sm:$0xff] }
 0x8a5   : > { %2266 = vmatprep.mubr.bf16.mxu1 %v4764_v2  ;;  %2307 = vmatprep.mubr.bf16.mxu0 %v4764_v2  ;;  %v4019_v34 = vcombine.low %v1320_v17, %v1328_v18  ;;  %v1408_v62 = vld [vmem:[%s5951_s7 + $0x360] sm:$0xff] }
 0x8a7   : > { %2237 = vmatpush1.bf16.msra.mxu1 %v4015_v24  ;;  %2278 = vmatpush1.bf16.msra.mxu0 %v4017_v25  ;;  %v4005_v24 = vcombine.low %v1305_v9, %v1313_v10  ;;  %v4020_v25 = vcombine.high %v1320_v17, %v1328_v18  ;;  %v1425_v9 = vld [vmem:[%s5951_s7 + $0x3e8] sm:$0xff]  ;;  %v1314_v17 = vld [vmem:[%s5951_s7 + $0x70] sm:$0xff]  ;;  %v1307_v18 = vld [vmem:[%s5951_s7 + $0x38] sm:$0xff] }
 0x8a8   : > { %2238 = vmatprep.subr.bf16.mxu1 %v4032_v26  ;;  %2279 = vmatprep.subr.bf16.mxu0 %v4034_v27  ;;  %v4022_v26 = vcombine.high %v1321_v20, %v1329_v21  ;;  %v1336_v27 = vld [vmem:[%s5951_s7 + $0x120] sm:$0xff] }
 0x8a9   : > { %v4035_v41 = vcombine.low %v1336_v27, %v1344_v28 }
 0x8ab   : > { %2239 = vmatpush1.bf16.msra.mxu1 %v4031_v35  ;;  %2280 = vmatpush1.bf16.msra.mxu0 %v4033_v4  ;;  %v4021_v35 = vcombine.low %v1321_v20, %v1329_v21  ;;  %v4036_v4 = vcombine.high %v1336_v27, %v1344_v28  ;;  %v1315_v20 = vld [vmem:[%s5951_s7 + $0x78] sm:$0xff]  ;;  %v1330_v27 = vld [vmem:[%s5951_s7 + $0xf0] sm:$0xff] }
 0x8ac   : > { %2240 = vmatprep.subr.bf16.mxu1 %v4048_v36  ;;  %2281 = vmatprep.subr.bf16.mxu0 %v4050_v37  ;;  %v4038_v36 = vcombine.high %v1337_v31, %v1345_v33  ;;  %v1352_v37 = vld [vmem:[%s5951_s7 + $0x1a0] sm:$0xff]  ;;  %v1323_v28 = vld [vmem:[%s5951_s7 + $0xb8] sm:$0xff] }
 0x8ad   : > { %v4051_v49 = vcombine.low %v1352_v37, %v1360_v38 }
 0x8af   : > { %2241 = vmatpush1.bf16.msra.mxu1 %v4047_v42  ;;  %2282 = vmatpush1.bf16.msra.mxu0 %v4049_v43  ;;  %v4037_v42 = vcombine.low %v1337_v31, %v1345_v33  ;;  %v4052_v43 = vcombine.high %v1352_v37, %v1360_v38  ;;  %v1331_v31 = vld [vmem:[%s5951_s7 + $0xf8] sm:$0xff]  ;;  %v1346_v37 = vld [vmem:[%s5951_s7 + $0x170] sm:$0xff] }
 0x8b0   : > { %2242 = vmatprep.subr.bf16.mxu1 %v4064_v44  ;;  %2283 = vmatprep.subr.bf16.mxu0 %v4066_v46  ;;  %v4054_v44 = vcombine.high %v1353_v39, %v1361_v40  ;;  %v1368_v46 = vld [vmem:[%s5951_s7 + $0x220] sm:$0xff]  ;;  %v1339_v38 = vld [vmem:[%s5951_s7 + $0x138] sm:$0xff] }
 0x8b1   : > { %v4067_v57 = vcombine.low %v1368_v46, %v1376_v47 }
 0x8b3   : > { %2243 = vmatpush1.bf16.msra.mxu1 %v4063_v50  ;;  %2284 = vmatpush1.bf16.msra.mxu0 %v4065_v52  ;;  %v4053_v50 = vcombine.low %v1353_v39, %v1361_v40  ;;  %v4068_v52 = vcombine.high %v1368_v46, %v1376_v47  ;;  %v1347_v39 = vld [vmem:[%s5951_s7 + $0x178] sm:$0xff]  ;;  %v1362_v46 = vld [vmem:[%s5951_s7 + $0x1f0] sm:$0xff] }
 0x8b4   : > { %2244 = vmatprep.subr.bf16.mxu1 %v4080_v53  ;;  %2285 = vmatprep.subr.bf16.mxu0 %v4082_v54  ;;  %v4070_v53 = vcombine.high %v1369_v48, %v1377_v19  ;;  %v1384_v54 = vld [vmem:[%s5951_s7 + $0x2a0] sm:$0xff]  ;;  %v1355_v47 = vld [vmem:[%s5951_s7 + $0x1b8] sm:$0xff] }
 0x8b5   : > { %v4083_v1 = vcombine.low %v1384_v54, %v1392_v23 }
 0x8b7   : > { %2245 = vmatpush1.bf16.msra.mxu1 %v4079_v58  ;;  %2286 = vmatpush1.bf16.msra.mxu0 %v4081_v59  ;;  %v4069_v58 = vcombine.low %v1369_v48, %v1377_v19  ;;  %v4084_v59 = vcombine.high %v1384_v54, %v1392_v23  ;;  %v1363_v48 = vld [vmem:[%s5951_s7 + $0x1f8] sm:$0xff]  ;;  %v1378_v54 = vld [vmem:[%s5951_s7 + $0x270] sm:$0xff] }
 0x8b8   : > { %2246 = vmatprep.subr.bf16.mxu1 %v4096_v60  ;;  %2287 = vmatprep.subr.bf16.mxu0 %v4098_v61  ;;  %v4086_v60 = vcombine.high %v1385_v55, %v1393_v56  ;;  %v1400_v61 = vld [vmem:[%s5951_s7 + $0x320] sm:$0xff]  ;;  %v1379_v23 = vld [vmem:[%s5951_s7 + $0x278] sm:$0xff] }
 0x8b9   : > { %v4099_v10 = vcombine.low %v1400_v61, %v1408_v62 }
 0x8bb   : > { %2247 = vmatpush1.bf16.msra.mxu1 %v4095_v51  ;;  %2288 = vmatpush1.bf16.msra.mxu0 %v4097_v3  ;;  %v4085_v51 = vcombine.low %v1385_v55, %v1393_v56  ;;  %v4100_v3 = vcombine.high %v1400_v61, %v1408_v62  ;;  %v4057_v56 = vcombine.low %v1355_v47, %v1363_v48  ;;  %v1387_v61 = vld [vmem:[%s5951_s7 + $0x2b8] sm:$0xff] }
 0x8bc   : > { %2248 = vmatprep.subr.bf16.mxu1 %v4112_v5  ;;  %2289 = vmatprep.subr.bf16.mxu0 %v4114_v6  ;;  %v4102_v5 = vcombine.high %v1401_v63, %v1409_v0  ;;  %v1416_v6 = vld [vmem:[%s5951_s7 + $0x3a0] sm:$0xff]  ;;  %v1395_v62 = vld [vmem:[%s5951_s7 + $0x2f8] sm:$0xff] }
 0x8bd   : > { %v4115_v21 = vcombine.low %v1416_v6, %v1424_v7 }
 0x8bf   : > { %2249 = vmatpush1.bf16.msra.mxu1 %v4111_v12  ;;  %2290 = vmatpush1.bf16.msra.mxu0 %v4113_v13  ;;  %v4101_v12 = vcombine.low %v1401_v63, %v1409_v0  ;;  %v4116_v13 = vcombine.high %v1416_v6, %v1424_v7  ;;  %v1403_v6 = vld [vmem:[%s5951_s7 + $0x338] sm:$0xff] }
 0x8c0   : > { %2316 = vmatprep.subr.bf16.mxu1 %v4004_v11  ;;  %2357 = vmatprep.subr.bf16.mxu0 %v4006_v16  ;;  %v4118_v11 = vcombine.high %v1417_v8, %v1425_v9  ;;  %v1306_v16 = vld [vmem:[%s5951_s7 + $0x30] sm:$0xff]  ;;  %v1411_v7 = vld [vmem:[%s5951_s7 + $0x378] sm:$0xff] }
 0x8c1   : > { %v4007_v33 = vcombine.low %v1306_v16, %v1314_v17 }
 0x8c2   : > { %2267 = vmatmul.mubr.bf16.vlgmr.msra.gmra.mrb[32].mxu1 %v5205_v15  ;;  %2308 = vmatmul.mubr.bf16.vlgmr.msra.gmra.mrb[20].mxu0 %v5205_v15 }
 0x8c3   : > { %2317 = vmatpush1.bf16.msra.mxu1 %v4003_v22  ;;  %2358 = vmatpush1.bf16.msra.mxu0 %v4005_v24  ;;  %v4117_v22 = vcombine.low %v1417_v8, %v1425_v9  ;;  %v4008_v24 = vcombine.high %v1306_v16, %v1314_v17  ;;  %v4089_v9 = vcombine.low %v1387_v61, %v1395_v62  ;;  %v1419_v16 = vld [vmem:[%s5951_s7 + $0x3b8] sm:$0xff] }
 0x8c4   : > { %2318 = vmatprep.subr.bf16.mxu1 %v4020_v25  ;;  %2359 = vmatprep.subr.bf16.mxu0 %v4022_v26  ;;  %v4010_v25 = vcombine.high %v1307_v18, %v1315_v20  ;;  %v1322_v26 = vld [vmem:[%s5951_s7 + $0xb0] sm:$0xff]  ;;  %v1427_v17 = vld [vmem:[%s5951_s7 + $0x3f8] sm:$0xff] }
 0x8c5   : > { %2348 = vmatprep.mubr.bf16.mxu1 %v4764_v2  ;;  %2389 = vmatprep.mubr.bf16.mxu0 %v4764_v2  ;;  %v4023_v40 = vcombine.low %v1322_v26, %v1330_v27 }
 0x8c7   : > { %2319 = vmatpush1.bf16.msra.mxu1 %v4019_v34  ;;  %2360 = vmatpush1.bf16.msra.mxu0 %v4021_v35  ;;  %v4009_v34 = vcombine.low %v1307_v18, %v1315_v20  ;;  %v4024_v35 = vcombine.high %v1322_v26, %v1330_v27  ;;  %v4105_v20 = vcombine.low %v1403_v6, %v1411_v7  ;;  %v4608_v26 = vld [vmem:[%s5953_s9 + $0x40] sm:$0xff]  }
 0x8c8   : > { %2320 = vmatprep.subr.bf16.mxu1 %v4036_v4  ;;  %2361 = vmatprep.subr.bf16.mxu0 %v4038_v36  ;;  %v4026_v4 = vcombine.high %v1323_v28, %v1331_v31  ;;  %v1338_v36 = vld [vmem:[%s5951_s7 + $0x130] sm:$0xff]  ;;  %v4609_v27 = vld [vmem:[%s5953_s9 + $0xc0] sm:$0xff]  }
 0x8c9   : > { %v4039_v19 = vcombine.low %v1338_v36, %v1346_v37 }
 0x8cb   : > { %2321 = vmatpush1.bf16.msra.mxu1 %v4035_v41  ;;  %2362 = vmatpush1.bf16.msra.mxu0 %v4037_v42  ;;  %v4025_v41 = vcombine.low %v1323_v28, %v1331_v31  ;;  %v4040_v42 = vcombine.high %v1338_v36, %v1346_v37  ;;  %v4610_v28 = vld [vmem:[%s5953_s9] sm:$0xff]   ;;  %v4616_v36 = vld [vmem:[%s5953_s9 + $0x50] sm:$0xff]  }
 0x8cc   : > { %2322 = vmatprep.subr.bf16.mxu1 %v4052_v43  ;;  %2363 = vmatprep.subr.bf16.mxu0 %v4054_v44  ;;  %v4042_v43 = vcombine.high %v1339_v38, %v1347_v39  ;;  %v1354_v44 = vld [vmem:[%s5951_s7 + $0x1b0] sm:$0xff]  ;;  %v4611_v31 = vld [vmem:[%s5953_s9 + $0x80] sm:$0xff]  }
 0x8cd   : > { %v4055_v55 = vcombine.low %v1354_v44, %v1362_v46  ;;  %v4618_v37 = vld [vmem:[%s5953_s9 + $0x10] sm:$0xff]  }
 0x8cf   : > { %2323 = vmatpush1.bf16.msra.mxu1 %v4051_v49  ;;  %2364 = vmatpush1.bf16.msra.mxu0 %v4053_v50  ;;  %v4041_v49 = vcombine.low %v1339_v38, %v1347_v39  ;;  %v4056_v50 = vcombine.high %v1354_v44, %v1362_v46  ;;  %v4619_v38 = vld [vmem:[%s5953_s9 + $0x90] sm:$0xff]   ;;  %v4620_v39 = vld [vmem:[%s5953_s9 + $0x58] sm:$0xff]   ;;  %v4625_v44 = vld [vmem:[%s5953_s9 + $0xe0] sm:$0xff]  }
 0x8d0   : > { %2324 = vmatprep.subr.bf16.mxu1 %v4068_v52  ;;  %2365 = vmatprep.subr.bf16.mxu0 %v4070_v53  ;;  %v4058_v52 = vcombine.high %v1355_v47, %v1363_v48  ;;  %v1370_v53 = vld [vmem:[%s5951_s7 + $0x230] sm:$0xff]  ;;  %v4626_v46 = vld [vmem:[%s5953_s9 + $0x20] sm:$0xff]   ;;  %v4628_v48 = vld [vmem:[%s5953_s9 + $0x68] sm:$0xff]  }
 0x8d1   : > { %v4071_v63 = vcombine.low %v1370_v53, %v1378_v54  ;;  %v4627_v47 = vld [vmem:[%s5953_s9 + $0xa0] sm:$0xff]  }
 0x8d3   : > { %2325 = vmatpush1.bf16.msra.mxu1 %v4067_v57  ;;  %2366 = vmatpush1.bf16.msra.mxu0 %v4069_v58  ;;  %v4072_v57 = vcombine.high %v1370_v53, %v1378_v54  ;;  %v4633_v53 = vld [vmem:[%s5953_s9 + $0xf0] sm:$0xff]  }
 0x8d4   : > { %2326 = vmatprep.subr.bf16.mxu1 %v4084_v59  ;;  %2367 = vmatprep.subr.bf16.mxu0 %v4086_v60  ;;  %v1386_v59 = vld [vmem:[%s5951_s7 + $0x2b0] sm:$0xff] }
 0x8d5   : > { %v1394_v60 = vld [vmem:[%s5951_s7 + $0x2f0] sm:$0xff] }
 0x8d6   : > { %v4087_v8 = vcombine.low %v1386_v59, %v1394_v60  ;;  %v4634_v54 = vld [vmem:[%s5953_s9 + $0x30] sm:$0xff]  }
 0x8d7   : > { %2327 = vmatpush1.bf16.msra.mxu1 %v4083_v1  ;;  %2368 = vmatpush1.bf16.msra.mxu0 %v4085_v51  ;;  %v4088_v1 = vcombine.high %v1386_v59, %v1394_v60  ;;  %v4090_v51 = vcombine.high %v1387_v61, %v1395_v62  ;;  %v4641_v59 = vld [vmem:[%s5953_s9 + $0x1c0] sm:$0xff]   ;;  %v1446_v61 = vsub.s32 3, %v4949_v29 }
 0x8d8   : > { %2328 = vmatprep.subr.bf16.mxu1 %v4100_v3  ;;  %2369 = vmatprep.subr.bf16.mxu0 %v4102_v5  ;;  %v1402_v3 = vld [vmem:[%s5951_s7 + $0x330] sm:$0xff]  ;;  %v5590_v60 = vld [vmem:[%s5952_s8] sm:$0xff] }
 0x8d9   : > { %v1410_v5 = vld [vmem:[%s5951_s7 + $0x370] sm:$0xff]  ;;  %v1435_v62 = vrot.slane %v5590_v60, %v4952_v30 }
 0x8da   : > { %v4103_v18 = vcombine.low %v1402_v3, %v1410_v5 }
 0x8db   : > { %2329 = vmatpush1.bf16.msra.mxu1 %v4099_v10  ;;  %2370 = vmatpush1.bf16.msra.mxu0 %v4101_v12  ;;  %v4104_v10 = vcombine.high %v1402_v3, %v1410_v5  ;;  %v4106_v12 = vcombine.high %v1403_v6, %v1411_v7 }
 0x8dc   : > { %2330 = vmatprep.subr.bf16.mxu1 %v4116_v13  ;;  %2371 = vmatprep.subr.bf16.mxu0 %v4118_v11  ;;  %v1418_v13 = vld [vmem:[%s5951_s7 + $0x3b0] sm:$0xff] }
 0x8dd   : > { %v1426_v11 = vld [vmem:[%s5951_s7 + $0x3f0] sm:$0xff] }
 0x8df   : > { %2331 = vmatpush1.bf16.msra.mxu1 %v4115_v21  ;;  %2372 = vmatpush1.bf16.msra.mxu0 %v4117_v22  ;;  %v4120_v21 = vcombine.high %v1418_v13, %v1426_v11  ;;  %v4122_v22 = vcombine.high %v1419_v16, %v1427_v17 }
 0x8e0   : > { %2398 = vmatprep.subr.bf16.mxu1 %v4008_v24  ;;  %2439 = vmatprep.subr.bf16.mxu0 %v4010_v25  ;;  %v4119_v24 = vcombine.low %v1418_v13, %v1426_v11  ;;  %v4121_v25 = vcombine.low %v1419_v16, %v1427_v17 }
 0x8e2   : > { %2349 = vmatmul.mubr.bf16.vlgmr.msra.gmra.mrb[36].mxu1 %v5205_v15  ;;  %2390 = vmatmul.mubr.bf16.vlgmr.msra.gmra.mrb[24].mxu0 %v5205_v15 }
 0x8e3   : > { %2399 = vmatpush1.bf16.msra.mxu1 %v4007_v33  ;;  %2440 = vmatpush1.bf16.msra.mxu0 %v4009_v34  ;;  %v4612_v33 = vld [vmem:[%s5953_s9 + $0x48] sm:$0xff]  }
 0x8e4   : > { %2400 = vmatprep.subr.bf16.mxu1 %v4024_v35  ;;  %2441 = vmatprep.subr.bf16.mxu0 %v4026_v4  ;;  %v4613_v34 = vld [vmem:[%s5953_s9 + $0xc8] sm:$0xff]  }
 0x8e5   : > { %2430 = vmatprep.mubr.bf16.mxu1 %v4764_v2  ;;  %2471 = vmatprep.mubr.bf16.mxu0 %v4764_v2  ;;  %v1371_v2 = vld [vmem:[%s5951_s7 + $0x238] sm:$0xff]  ;;  %v4614_v35 = vld [vmem:[%s5953_s9 + $0x8] sm:$0xff]  }
 0x8e6   : > { %v4074_v58 = vcombine.high %v1371_v2, %v1379_v23  ;;  %v4073_v0 = vcombine.low %v1371_v2, %v1379_v23  ;;  %v4615_v4 = vld [vmem:[%s5953_s9 + $0x88] sm:$0xff]   ;;  %v4635_v2 = vld [vmem:[%s5953_s9 + $0xb0] sm:$0xff]   ;;  %v4636_v23 = vld [vmem:[%s5953_s9 + $0x78] sm:$0xff]  }
 0x8e7   : > { %2401 = vmatpush1.bf16.msra.mxu1 %v4023_v40  ;;  %2442 = vmatpush1.bf16.msra.mxu0 %v4025_v41  ;;  %v4621_v40 = vld [vmem:[%s5953_s9 + $0xd8] sm:$0xff]  }
 0x8e8   : > { %2402 = vmatprep.subr.bf16.mxu1 %v4040_v42  ;;  %2443 = vmatprep.subr.bf16.mxu0 %v4042_v43  ;;  %v4622_v41 = vld [vmem:[%s5953_s9 + $0x18] sm:$0xff]   ;;  %v4624_v43 = vld [vmem:[%s5953_s9 + $0x60] sm:$0xff]  }
 0x8e9   : > { %v4623_v42 = vld [vmem:[%s5953_s9 + $0x98] sm:$0xff]  }
 0x8eb   : > { %2403 = vmatpush1.bf16.msra.mxu1 %v4039_v19  ;;  %2444 = vmatpush1.bf16.msra.mxu0 %v4041_v49  ;;  %v4629_v19 = vld [vmem:[%s5953_s9 + $0xe8] sm:$0xff]  }
 0x8ec   : > { %2404 = vmatprep.subr.bf16.mxu1 %v4056_v50  ;;  %2445 = vmatprep.subr.bf16.mxu0 %v4058_v52  ;;  %v4630_v49 = vld [vmem:[%s5953_s9 + $0x28] sm:$0xff]   ;;  %v4632_v52 = vld [vmem:[%s5953_s9 + $0x70] sm:$0xff]  }
 0x8ed   : > { %v4631_v50 = vld [vmem:[%s5953_s9 + $0xa8] sm:$0xff]  }
 0x8ef   : > { %2405 = vmatpush1.bf16.msra.mxu1 %v4055_v55  ;;  %2446 = vmatpush1.bf16.msra.mxu0 %v4057_v56  ;;  %v4637_v55 = vld [vmem:[%s5953_s9 + $0xf8] sm:$0xff]  }
 0x8f0   : > { %2406 = vmatprep.subr.bf16.mxu1 %v4072_v57  ;;  %2447 = vmatprep.subr.bf16.mxu0 %v4074_v58  ;;  %v4638_v56 = vld [vmem:[%s5953_s9 + $0x38] sm:$0xff]   ;;  %v4640_v58 = vld [vmem:[%s5953_s9 + $0x140] sm:$0xff]  }
 0x8f1   : > { %v4639_v57 = vld [vmem:[%s5953_s9 + $0xb8] sm:$0xff]  }
 0x8f3   : > { %2407 = vmatpush1.bf16.msra.mxu1 %v4071_v63  ;;  %2448 = vmatpush1.bf16.msra.mxu0 %v4073_v0  ;;  %v1443_v63 = vrot.slane %v5590_v60, %v4973_v45  ;;  %v1439_v0 = vrot.slane %v5590_v60, %v4958_v32 }
 0x8f4   : > { %2408 = vmatprep.subr.bf16.mxu1 %v4088_v1  ;;  %2449 = vmatprep.subr.bf16.mxu0 %v4090_v51  ;;  %v1447_v1 = vrot.slane %v5590_v60, %v1446_v61 }
 0x8f7   : > { %2409 = vmatpush1.bf16.msra.mxu1 %v4087_v8  ;;  %2450 = vmatpush1.bf16.msra.mxu0 %v4089_v9 }
 0x8f8   : > { %2410 = vmatprep.subr.bf16.mxu1 %v4104_v10  ;;  %2451 = vmatprep.subr.bf16.mxu0 %v4106_v12 }
 0x8fb   : > { %2411 = vmatpush1.bf16.msra.mxu1 %v4103_v18  ;;  %2452 = vmatpush1.bf16.msra.mxu0 %v4105_v20 }
 0x8fc   : > { %2412 = vmatprep.subr.bf16.mxu1 %v4120_v21  ;;  %2453 = vmatprep.subr.bf16.mxu0 %v4122_v22 }
 0x8ff   : > { %2413 = vmatpush1.bf16.msra.mxu1 %v4119_v24  ;;  %2454 = vmatpush1.bf16.msra.mxu0 %v4121_v25  ;;  %v4642_v25 = vld [vmem:[%s5953_s9 + $0x100] sm:$0xff]  }
 0x900   : > { %4290 = vmatprep.subr.bf16.mxu1 %v4608_v26  ;;  %4312 = vmatprep.subr.bf16.mxu0 %v4609_v27  ;;  %v4643_v26 = vld [vmem:[%s5953_s9 + $0x180] sm:$0xff]  }
 0x902   : > { %2431 = vmatmul.mubr.bf16.vlgmr.msra.gmra.mrb[40].mxu1 %v5205_v15  ;;  %2472 = vmatmul.mubr.bf16.vlgmr.msra.gmra.mrb[28].mxu0 %v5205_v15  ;;  %v4617_v15 = vld [vmem:[%s5953_s9 + $0xd0] sm:$0xff]  }
 0x903   : > { %4291 = vmatpush3.bf16.msra.mxu1 %v4610_v28  ;;  %4313 = vmatpush3.bf16.msra.mxu0 %v4611_v31  ;;  %v4644_v31 = vld [vmem:[%s5953_s9 + $0x148] sm:$0xff]  }
 0x904   : > { %4292 = vmatprep.subr.bf16.mxu1 %v4612_v33  ;;  %4314 = vmatprep.subr.bf16.mxu0 %v4613_v34  ;;  %v4645_v33 = vld [vmem:[%s5953_s9 + $0x1c8] sm:$0xff]  }
 0x905   : > { %v4646_v34 = vld [vmem:[%s5953_s9 + $0x108] sm:$0xff]  }
 0x907   : > { %4293 = vmatpush3.bf16.msra.mxu1 %v4614_v35  ;;  %4315 = vmatpush3.bf16.msra.mxu0 %v4615_v4  ;;  %v4647_v35 = vld [vmem:[%s5953_s9 + $0x188] sm:$0xff]   ;;  %v4648_v4 = vld [vmem:[%s5953_s9 + $0x150] sm:$0xff]  }
 0x908   : > { %4294 = vmatprep.subr.bf16.mxu1 %v4616_v36  ;;  %4316 = vmatprep.subr.bf16.mxu0 %v4617_v15  ;;  %v4649_v36 = vld [vmem:[%s5953_s9 + $0x1d0] sm:$0xff]  }
 0x909   : > { %v4650_v15 = vld [vmem:[%s5953_s9 + $0x110] sm:$0xff]  }
 0x90b   : > { %4295 = vmatpush3.bf16.msra.mxu1 %v4618_v37  ;;  %4317 = vmatpush3.bf16.msra.mxu0 %v4619_v38  ;;  %v4651_v37 = vld [vmem:[%s5953_s9 + $0x190] sm:$0xff]   ;;  %v4652_v38 = vld [vmem:[%s5953_s9 + $0x158] sm:$0xff]  }
 0x90c   : > { %4296 = vmatprep.subr.bf16.mxu1 %v4620_v39  ;;  %4318 = vmatprep.subr.bf16.mxu0 %v4621_v40  ;;  %v4653_v39 = vld [vmem:[%s5953_s9 + $0x1d8] sm:$0xff]  }
 0x90d   : > { %v4654_v40 = vld [vmem:[%s5953_s9 + $0x118] sm:$0xff]  }
 0x90f   : > { %4297 = vmatpush3.bf16.msra.mxu1 %v4622_v41  ;;  %4319 = vmatpush3.bf16.msra.mxu0 %v4623_v42  ;;  %v4655_v41 = vld [vmem:[%s5953_s9 + $0x198] sm:$0xff]   ;;  %v4656_v42 = vld [vmem:[%s5953_s9 + $0x160] sm:$0xff]  }
 0x910   : > { %4298 = vmatprep.subr.bf16.mxu1 %v4624_v43  ;;  %4320 = vmatprep.subr.bf16.mxu0 %v4625_v44  ;;  %v4657_v43 = vld [vmem:[%s5953_s9 + $0x1e0] sm:$0xff]  }
 0x911   : > { %v4658_v44 = vld [vmem:[%s5953_s9 + $0x120] sm:$0xff]  }
 0x913   : > { %4299 = vmatpush3.bf16.msra.mxu1 %v4626_v46  ;;  %4321 = vmatpush3.bf16.msra.mxu0 %v4627_v47  ;;  %v4659_v46 = vld [vmem:[%s5953_s9 + $0x1a0] sm:$0xff]   ;;  %v4660_v47 = vld [vmem:[%s5953_s9 + $0x168] sm:$0xff]  }
 0x914   : > { %4300 = vmatprep.subr.bf16.mxu1 %v4628_v48  ;;  %4322 = vmatprep.subr.bf16.mxu0 %v4629_v19  ;;  %v4661_v48 = vld [vmem:[%s5953_s9 + $0x1e8] sm:$0xff]   ;;  %v1450_v19 = vsub.s32 4, %v4949_v29 }
 0x917   : > { %4301 = vmatpush3.bf16.msra.mxu1 %v4630_v49  ;;  %4323 = vmatpush3.bf16.msra.mxu0 %v4631_v50  ;;  %v1458_v49 = vsub.s32 6, %v4949_v29  ;;  %v4662_v50 = vld [vmem:[%s5953_s9 + $0x128] sm:$0xff]  }
 0x918   : > { %4302 = vmatprep.subr.bf16.mxu1 %v4632_v52  ;;  %4324 = vmatprep.subr.bf16.mxu0 %v4633_v53  ;;  %v4663_v52 = vld [vmem:[%s5953_s9 + $0x1a8] sm:$0xff]   ;;  %v1454_v53 = vsub.s32 5, %v4949_v29 }
 0x91b   : > { %4303 = vmatpush3.bf16.msra.mxu1 %v4634_v54  ;;  %4325 = vmatpush3.bf16.msra.mxu0 %v4635_v2  ;;  %v1462_v54 = vsub.s32 7, %v4949_v29  ;;  %v4664_v2 = vld [vmem:[%s5953_s9 + $0x170] sm:$0xff]   ;;  %v4733_v29 = vld [vmem:[%s5953_s9 + $0x3f8] sm:$0xff]  }
 0x91c   : > { %4304 = vmatprep.subr.bf16.mxu1 %v4636_v23  ;;  %4326 = vmatprep.subr.bf16.mxu0 %v4637_v55  ;;  %v4665_v23 = vld [vmem:[%s5953_s9 + $0x1f0] sm:$0xff]   ;;  %v1451_v55 = vrot.slane %v5590_v60, %v1450_v19 }
 0x91f   : > { %4305 = vmatpush3.bf16.msra.mxu1 %v4638_v56  ;;  %4327 = vmatpush3.bf16.msra.mxu0 %v4639_v57  ;;  %v1459_v56 = vrot.slane %v5590_v60, %v1458_v49  ;;  %v1455_v57 = vrot.slane %v5590_v60, %v1454_v53 }
 0x920   : > { %4334 = vmatprep.subr.bf16.mxu1 %v4640_v58  ;;  %4356 = vmatprep.subr.bf16.mxu0 %v4641_v59  ;;  %v1463_v58 = vrot.slane %v5590_v60, %v1462_v54  ;;  %v4666_v59 = vld [vmem:[%s5953_s9 + $0x130] sm:$0xff]  }
 0x975   : > { %v2186_v51 = vpop.f32.mrb[28].mxu1  ;;  %v2227_v3 = vpop.f32.mrb[16].mxu0 }
 0x976   : > { %v2187_v5 = vadd.f32 %v2186_v51, %v1435_v62  ;;  %v2228_v6 = vadd.f32 %v2227_v3, %v1443_v63  ;;  %v2188_v7 = vpop.f32.mrb[29].mxu1  ;;  %v2229_v8 = vpop.f32.mrb[17].mxu0  ;;  %v4667_v62 = vld [vmem:[%s5953_s9 + $0x1b0] sm:$0xff]   ;;  %v4668_v63 = vld [vmem:[%s5953_s9 + $0x178] sm:$0xff]  }
 0x977   : > { %v2189_v9 = vadd.f32 %v2188_v7, %v1439_v0  ;;  %v2230_v10 = vadd.f32 %v2229_v8, %v1447_v1  ;;  %v2190_v12 = vpop.f32.mrb[30].mxu1  ;;  %v2231_v13 = vpop.f32.mrb[18].mxu0  ;;  %v4669_v0 = vld [vmem:[%s5953_s9 + $0x1f8] sm:$0xff]  }
 0x978   : > { %v2480_v11 = vmax.f32 %v2187_v5, 0.0  ;;  %v2482_v16 = vmax.f32 %v2228_v6, 0.0  ;;  %v2191_v17 = vpop.f32.mrb[31].mxu1  ;;  %v2232_v18 = vpop.f32.mrb[19].mxu0  ;;  %v4670_v12 = vld [vmem:[%s5953_s9 + $0x138] sm:$0xff]  }
 0x979   : > { %v2481_v20 = vmax.f32 %v2189_v9, 0.0  ;;  %v2483_v21 = vmax.f32 %v2230_v10, 0.0  ;;  %v4671_v13 = vld [vmem:[%s5953_s9 + $0x1b8] sm:$0xff]  }
 0x97a   : > { %v2496_v27 = vpack.c.bf16 %v2480_v11, %v2480_v11  ;;  %v2498_v28 = vpack.c.bf16 %v2482_v16, %v2482_v16 }
 0x97b   : > { %v2497_v22 = vpack.c.bf16 %v2481_v20, %v2481_v20  ;;  %v2499_v24 = vpack.c.bf16 %v2483_v21, %v2483_v21  ;;  %v4672_v20 = vld [vmem:[%s5953_s9 + $0x240] sm:$0xff]  }
 0x97c   : > { %v4673_v21 = vld [vmem:[%s5953_s9 + $0x2c0] sm:$0xff]  }
 0x97d   : > { %3575 = vmatprep.mubr.bf16.mxu1 %v2497_v22  ;;  %3615 = vmatprep.mubr.bf16.mxu0 %v2499_v24 }
 0x97e   : > { %3576 = vmatmul.mubr.bf16.vlgmr.msra.gmra.mrb[44].mxu1 %v2496_v27  ;;  %3616 = vmatmul.mubr.bf16.vlgmr.msra.gmra.mrb[32].mxu0 %v2498_v28  ;;  %v4674_v27 = vld [vmem:[%s5953_s9 + $0x200] sm:$0xff]  }
 0x97f   : > { %4335 = vmatpush3.bf16.msra.mxu1 %v4642_v25  ;;  %4357 = vmatpush3.bf16.msra.mxu0 %v4643_v26  ;;  %v4675_v28 = vld [vmem:[%s5953_s9 + $0x280] sm:$0xff]  }
 0x980   : > { %4336 = vmatprep.subr.bf16.mxu1 %v4644_v31  ;;  %4358 = vmatprep.subr.bf16.mxu0 %v4645_v33 }
 0x983   : > { %4337 = vmatpush3.bf16.msra.mxu1 %v4646_v34  ;;  %4359 = vmatpush3.bf16.msra.mxu0 %v4647_v35  ;;  %v4676_v34 = vld [vmem:[%s5953_s9 + $0x248] sm:$0xff]  }
 0x984   : > { %4338 = vmatprep.subr.bf16.mxu1 %v4648_v4  ;;  %4360 = vmatprep.subr.bf16.mxu0 %v4649_v36  ;;  %v4677_v35 = vld [vmem:[%s5953_s9 + $0x2c8] sm:$0xff]  }
 0x985   : > { %v4678_v4 = vld [vmem:[%s5953_s9 + $0x208] sm:$0xff]  }
 0x986   : > { %v4679_v36 = vld [vmem:[%s5953_s9 + $0x288] sm:$0xff]  }
 0x987   : > { %4339 = vmatpush3.bf16.msra.mxu1 %v4650_v15  ;;  %4361 = vmatpush3.bf16.msra.mxu0 %v4651_v37  ;;  %v4680_v15 = vld [vmem:[%s5953_s9 + $0x250] sm:$0xff]  }
 0x988   : > { %4340 = vmatprep.subr.bf16.mxu1 %v4652_v38  ;;  %4362 = vmatprep.subr.bf16.mxu0 %v4653_v39  ;;  %v4681_v37 = vld [vmem:[%s5953_s9 + $0x2d0] sm:$0xff]  }
 0x989   : > { %v4682_v38 = vld [vmem:[%s5953_s9 + $0x210] sm:$0xff]  }
 0x98a   : > { %v4683_v39 = vld [vmem:[%s5953_s9 + $0x290] sm:$0xff]  }
 0x98b   : > { %4341 = vmatpush3.bf16.msra.mxu1 %v4654_v40  ;;  %4363 = vmatpush3.bf16.msra.mxu0 %v4655_v41  ;;  %v4684_v40 = vld [vmem:[%s5953_s9 + $0x258] sm:$0xff]  }
 0x98c   : > { %4342 = vmatprep.subr.bf16.mxu1 %v4656_v42  ;;  %4364 = vmatprep.subr.bf16.mxu0 %v4657_v43  ;;  %v4685_v41 = vld [vmem:[%s5953_s9 + $0x2d8] sm:$0xff]  }
 0x98d   : > { %v4686_v42 = vld [vmem:[%s5953_s9 + $0x218] sm:$0xff]  }
 0x98e   : > { %v4687_v43 = vld [vmem:[%s5953_s9 + $0x298] sm:$0xff]  }
 0x98f   : > { %4343 = vmatpush3.bf16.msra.mxu1 %v4658_v44  ;;  %4365 = vmatpush3.bf16.msra.mxu0 %v4659_v46  ;;  %v4688_v44 = vld [vmem:[%s5953_s9 + $0x260] sm:$0xff]  }
 0x990   : > { %4344 = vmatprep.subr.bf16.mxu1 %v4660_v47  ;;  %4366 = vmatprep.subr.bf16.mxu0 %v4661_v48  ;;  %v4689_v46 = vld [vmem:[%s5953_s9 + $0x2e0] sm:$0xff]  }
 0x991   : > { %v4690_v47 = vld [vmem:[%s5953_s9 + $0x220] sm:$0xff]  }
 0x992   : > { %v4691_v48 = vld [vmem:[%s5953_s9 + $0x2a0] sm:$0xff]  }
 0x993   : > { %4345 = vmatpush3.bf16.msra.mxu1 %v4662_v50  ;;  %4367 = vmatpush3.bf16.msra.mxu0 %v4663_v52  ;;  %v4692_v50 = vld [vmem:[%s5953_s9 + $0x268] sm:$0xff]  }
 0x994   : > { %4346 = vmatprep.subr.bf16.mxu1 %v4664_v2  ;;  %4368 = vmatprep.subr.bf16.mxu0 %v4665_v23  ;;  %v4693_v52 = vld [vmem:[%s5953_s9 + $0x2e8] sm:$0xff]  }
 0x995   : > { %v2268_v1 = vpop.f32.mrb[32].mxu1  ;;  %v2309_v60 = vpop.f32.mrb[20].mxu0  ;;  %v4694_v2 = vld [vmem:[%s5953_s9 + $0x228] sm:$0xff]  }
 0x996   : > { %v2269_v51 = vadd.f32 %v2268_v1, %v1451_v55  ;;  %v2310_v3 = vadd.f32 %v2309_v60, %v1459_v56  ;;  %v2270_v5 = vpop.f32.mrb[33].mxu1  ;;  %v2311_v6 = vpop.f32.mrb[21].mxu0  ;;  %v4695_v23 = vld [vmem:[%s5953_s9 + $0x2a8] sm:$0xff]   ;;  %v4696_v56 = vld [vmem:[%s5953_s9 + $0x270] sm:$0xff]  }
 0x997   : > { %v2271_v7 = vadd.f32 %v2270_v5, %v1455_v57  ;;  %v2312_v8 = vadd.f32 %v2311_v6, %v1463_v58  ;;  %v2272_v9 = vpop.f32.mrb[34].mxu1  ;;  %v2313_v10 = vpop.f32.mrb[22].mxu0  ;;  %4347 = vmatpush3.bf16.msra.mxu1 %v4666_v59  ;;  %4369 = vmatpush3.bf16.msra.mxu0 %v4667_v62  ;;  %v5783_v55 = vld [vmem:[%s5952_s8 + $0x8] sm:$0xff]  ;;  %v4697_v57 = vld [vmem:[%s5953_s9 + $0x2f0] sm:$0xff]  }
 0x998   : > { %v2484_v11 = vmax.f32 %v2269_v51, 0.0  ;;  %v2486_v16 = vmax.f32 %v2310_v3, 0.0  ;;  %v2273_v17 = vpop.f32.mrb[35].mxu1  ;;  %v2314_v18 = vpop.f32.mrb[23].mxu0  ;;  %4348 = vmatprep.subr.bf16.mxu1 %v4668_v63  ;;  %4370 = vmatprep.subr.bf16.mxu0 %v4669_v0  ;;  %v1467_v58 = vrot.slane %v5783_v55, %v4952_v30  ;;  %v1475_v59 = vrot.slane %v5783_v55, %v4973_v45  ;;  %v4698_v0 = vld [vmem:[%s5953_s9 + $0x230] sm:$0xff]   ;;  %v4700_v45 = vld [vmem:[%s5953_s9 + $0x278] sm:$0xff]  }
 0x999   : > { %v2485_v22 = vmax.f32 %v2271_v7, 0.0  ;;  %v2487_v24 = vmax.f32 %v2312_v8, 0.0  ;;  %v1471_v62 = vrot.slane %v5783_v55, %v4958_v32  ;;  %v1479_v63 = vrot.slane %v5783_v55, %v1446_v61  ;;  %v4699_v30 = vld [vmem:[%s5953_s9 + $0x2b0] sm:$0xff]   ;;  %v4701_v32 = vld [vmem:[%s5953_s9 + $0x2f8] sm:$0xff]   ;;  %v4704_v18 = vld [vmem:[%s5953_s9 + $0x340] sm:$0xff]  }
 0x99a   : > { %v2500_v31 = vpack.c.bf16 %v2484_v11, %v2484_v11  ;;  %v2502_v33 = vpack.c.bf16 %v2486_v16, %v2486_v16  ;;  %v4702_v10 = vld [vmem:[%s5953_s9 + $0x238] sm:$0xff]  }
 0x99b   : > { %v2501_v25 = vpack.c.bf16 %v2485_v22, %v2485_v22  ;;  %v2503_v26 = vpack.c.bf16 %v2487_v24, %v2487_v24  ;;  %4349 = vmatpush3.bf16.msra.mxu1 %v4670_v12  ;;  %4371 = vmatpush3.bf16.msra.mxu0 %v4671_v13  ;;  %v4703_v12 = vld [vmem:[%s5953_s9 + $0x2b8] sm:$0xff]  }
 0x99c   : > { %4378 = vmatprep.subr.bf16.mxu1 %v4672_v20  ;;  %4400 = vmatprep.subr.bf16.mxu0 %v4673_v21  ;;  %v4705_v20 = vld [vmem:[%s5953_s9 + $0x3c0] sm:$0xff]  }
 0x99d   : > { %3655 = vmatprep.mubr.bf16.mxu1 %v2501_v25  ;;  %3695 = vmatprep.mubr.bf16.mxu0 %v2503_v26  ;;  %v4706_v26 = vld [vmem:[%s5953_s9 + $0x300] sm:$0xff]  }
 0x99e   : > { %3656 = vmatmul.mubr.bf16.vlgmr.msra.gmra.mrb[48].mxu1 %v2500_v31  ;;  %3696 = vmatmul.mubr.bf16.vlgmr.msra.gmra.mrb[36].mxu0 %v2502_v33  ;;  %v4708_v33 = vld [vmem:[%s5953_s9 + $0x348] sm:$0xff]  }
 0x99f   : > { %4379 = vmatpush3.bf16.msra.mxu1 %v4674_v27  ;;  %4401 = vmatpush3.bf16.msra.mxu0 %v4675_v28  ;;  %v4707_v27 = vld [vmem:[%s5953_s9 + $0x380] sm:$0xff]  }
 0x9a0   : > { %4380 = vmatprep.subr.bf16.mxu1 %v4676_v34  ;;  %4402 = vmatprep.subr.bf16.mxu0 %v4677_v35  ;;  %v4709_v34 = vld [vmem:[%s5953_s9 + $0x3c8] sm:$0xff]  }
 0x9a1   : > { %v4710_v35 = vld [vmem:[%s5953_s9 + $0x308] sm:$0xff]  }
 0x9a3   : > { %4381 = vmatpush3.bf16.msra.mxu1 %v4678_v4  ;;  %4403 = vmatpush3.bf16.msra.mxu0 %v4679_v36  ;;  %v4711_v4 = vld [vmem:[%s5953_s9 + $0x388] sm:$0xff]   ;;  %v4712_v36 = vld [vmem:[%s5953_s9 + $0x350] sm:$0xff]  }
 0x9a4   : > { %4382 = vmatprep.subr.bf16.mxu1 %v4680_v15  ;;  %4404 = vmatprep.subr.bf16.mxu0 %v4681_v37  ;;  %v4713_v15 = vld [vmem:[%s5953_s9 + $0x3d0] sm:$0xff]  }
 0x9a5   : > { %v4714_v37 = vld [vmem:[%s5953_s9 + $0x310] sm:$0xff]  }
 0x9a7   : > { %4383 = vmatpush3.bf16.msra.mxu1 %v4682_v38  ;;  %4405 = vmatpush3.bf16.msra.mxu0 %v4683_v39  ;;  %v4715_v38 = vld [vmem:[%s5953_s9 + $0x390] sm:$0xff]   ;;  %v4716_v39 = vld [vmem:[%s5953_s9 + $0x358] sm:$0xff]  }
 0x9a8   : > { %4384 = vmatprep.subr.bf16.mxu1 %v4684_v40  ;;  %4406 = vmatprep.subr.bf16.mxu0 %v4685_v41  ;;  %v4717_v40 = vld [vmem:[%s5953_s9 + $0x3d8] sm:$0xff]  }
 0x9a9   : > { %v4718_v41 = vld [vmem:[%s5953_s9 + $0x318] sm:$0xff]  }
 0x9ab   : > { %4385 = vmatpush3.bf16.msra.mxu1 %v4686_v42  ;;  %4407 = vmatpush3.bf16.msra.mxu0 %v4687_v43  ;;  %v4719_v42 = vld [vmem:[%s5953_s9 + $0x398] sm:$0xff]   ;;  %v4720_v43 = vld [vmem:[%s5953_s9 + $0x360] sm:$0xff]  }
 0x9ac   : > { %4386 = vmatprep.subr.bf16.mxu1 %v4688_v44  ;;  %4408 = vmatprep.subr.bf16.mxu0 %v4689_v46  ;;  %v4721_v44 = vld [vmem:[%s5953_s9 + $0x3e0] sm:$0xff]  }
 0x9ad   : > { %v4722_v46 = vld [vmem:[%s5953_s9 + $0x320] sm:$0xff]  }
 0x9af   : > { %4387 = vmatpush3.bf16.msra.mxu1 %v4690_v47  ;;  %4409 = vmatpush3.bf16.msra.mxu0 %v4691_v48  ;;  %v4723_v47 = vld [vmem:[%s5953_s9 + $0x3a0] sm:$0xff]   ;;  %v4724_v48 = vld [vmem:[%s5953_s9 + $0x368] sm:$0xff]  }
 0x9b0   : > { %4388 = vmatprep.subr.bf16.mxu1 %v4692_v50  ;;  %4410 = vmatprep.subr.bf16.mxu0 %v4693_v52  ;;  %v4725_v50 = vld [vmem:[%s5953_s9 + $0x3e8] sm:$0xff]  }
 0x9b1   : > { %v4726_v52 = vld [vmem:[%s5953_s9 + $0x328] sm:$0xff]  }
 0x9b3   : > { %4389 = vmatpush3.bf16.msra.mxu1 %v4694_v2  ;;  %4411 = vmatpush3.bf16.msra.mxu0 %v4695_v23  ;;  %v4727_v2 = vld [vmem:[%s5953_s9 + $0x3a8] sm:$0xff]   ;;  %v4728_v23 = vld [vmem:[%s5953_s9 + $0x370] sm:$0xff]  }
 0x9b4   : > { %4390 = vmatprep.subr.bf16.mxu1 %v4696_v56  ;;  %4412 = vmatprep.subr.bf16.mxu0 %v4697_v57  ;;  %v4729_v56 = vld [vmem:[%s5953_s9 + $0x3f0] sm:$0xff]   ;;  %v1483_v57 = vrot.slane %v5783_v55, %v1450_v19 }
 0x9b5   : > { %v2350_v1 = vpop.f32.mrb[36].mxu1  ;;  %v2391_v61 = vpop.f32.mrb[24].mxu0  ;;  %v4731_v19 = vld [vmem:[%s5953_s9 + $0x3b0] sm:$0xff]  }
 0x9b6   : > { %v2351_v60 = vadd.f32 %v2350_v1, %v1467_v58  ;;  %v2392_v51 = vadd.f32 %v2391_v61, %v1475_v59  ;;  %v2352_v3 = vpop.f32.mrb[37].mxu1  ;;  %v2393_v5 = vpop.f32.mrb[25].mxu0  ;;  %v1491_v58 = vrot.slane %v5783_v55, %v1458_v49  ;;  %v1487_v59 = vrot.slane %v5783_v55, %v1454_v53  ;;  %v4732_v49 = vld [vmem:[%s5953_s9 + $0x378] sm:$0xff]  }
 0x9b7   : > { %v2353_v6 = vadd.f32 %v2352_v3, %v1471_v62  ;;  %v2394_v7 = vadd.f32 %v2393_v5, %v1479_v63  ;;  %v2354_v8 = vpop.f32.mrb[38].mxu1  ;;  %v2395_v9 = vpop.f32.mrb[26].mxu0  ;;  %4391 = vmatpush3.bf16.msra.mxu1 %v4698_v0  ;;  %4413 = vmatpush3.bf16.msra.mxu0 %v4699_v30  ;;  %v1495_v62 = vrot.slane %v5783_v55, %v1462_v54  ;;  %v4730_v63 = vld [vmem:[%s5953_s9 + $0x330] sm:$0xff]   ;;  %v4735_v3 = vld [vmem:[%s5953_s9 + $0x3b8] sm:$0xff]  }
 0x9b8   : > { %v2488_v13 = vmax.f32 %v2351_v60, 0.0  ;;  %v2490_v11 = vmax.f32 %v2392_v51, 0.0  ;;  %v2355_v16 = vpop.f32.mrb[39].mxu1  ;;  %v2396_v17 = vpop.f32.mrb[27].mxu0  ;;  %4392 = vmatprep.subr.bf16.mxu1 %v4700_v45  ;;  %4414 = vmatprep.subr.bf16.mxu0 %v4701_v32  ;;  %v4734_v51 = vld [vmem:[%s5953_s9 + $0x338] sm:$0xff]  }
 0x9b9   : > { %v2489_v21 = vmax.f32 %v2353_v6, 0.0  ;;  %v2491_v22 = vmax.f32 %v2394_v7, 0.0 }
 0x9ba   : > { %v2504_v28 = vpack.c.bf16 %v2488_v13, %v2488_v13  ;;  %v2506_v31 = vpack.c.bf16 %v2490_v11, %v2490_v11 }
 0x9bb   : > { %v2505_v24 = vpack.c.bf16 %v2489_v21, %v2489_v21  ;;  %v2507_v25 = vpack.c.bf16 %v2491_v22, %v2491_v22  ;;  %4393 = vmatpush3.bf16.msra.mxu1 %v4702_v10  ;;  %4415 = vmatpush3.bf16.msra.mxu0 %v4703_v12 }
 0x9bc   : > { %4422 = vmatprep.subr.bf16.mxu1 %v4704_v18  ;;  %4444 = vmatprep.subr.bf16.mxu0 %v4705_v20  ;;  %v4123_v20 = vld [vmem:[%s5954_s10] ss:$0 sm:$0xff] }
 0x9bd   : > { %3735 = vmatprep.mubr.bf16.mxu1 %v2505_v24  ;;  %3775 = vmatprep.mubr.bf16.mxu0 %v2507_v25 }
 0x9be   : > { %3736 = vmatmul.mubr.bf16.vlgmr.msra.gmra.mrb[52].mxu1 %v2504_v28  ;;  %3776 = vmatmul.mubr.bf16.vlgmr.msra.gmra.mrb[40].mxu0 %v2506_v31 }
 0x9bf   : > { %4423 = vmatpush3.bf16.msra.mxu1 %v4706_v26  ;;  %4445 = vmatpush3.bf16.msra.mxu0 %v4707_v27 }
 0x9c0   : > { %4424 = vmatprep.subr.bf16.mxu1 %v4708_v33  ;;  %4446 = vmatprep.subr.bf16.mxu0 %v4709_v34 }
 0x9c3   : > { %4425 = vmatpush3.bf16.msra.mxu1 %v4710_v35  ;;  %4447 = vmatpush3.bf16.msra.mxu0 %v4711_v4 }
 0x9c4   : > { %4426 = vmatprep.subr.bf16.mxu1 %v4712_v36  ;;  %4448 = vmatprep.subr.bf16.mxu0 %v4713_v15 }
 0x9c7   : > { %4427 = vmatpush3.bf16.msra.mxu1 %v4714_v37  ;;  %4449 = vmatpush3.bf16.msra.mxu0 %v4715_v38 }
 0x9c8   : > { %4428 = vmatprep.subr.bf16.mxu1 %v4716_v39  ;;  %4450 = vmatprep.subr.bf16.mxu0 %v4717_v40 }
 0x9cb   : > { %4429 = vmatpush3.bf16.msra.mxu1 %v4718_v41  ;;  %4451 = vmatpush3.bf16.msra.mxu0 %v4719_v42 }
 0x9cc   : > { %4430 = vmatprep.subr.bf16.mxu1 %v4720_v43  ;;  %4452 = vmatprep.subr.bf16.mxu0 %v4721_v44 }
 0x9cf   : > { %4431 = vmatpush3.bf16.msra.mxu1 %v4722_v46  ;;  %4453 = vmatpush3.bf16.msra.mxu0 %v4723_v47 }
 0x9d0   : > { %4432 = vmatprep.subr.bf16.mxu1 %v4724_v48  ;;  %4454 = vmatprep.subr.bf16.mxu0 %v4725_v50 }
 0x9d3   : > { %4433 = vmatpush3.bf16.msra.mxu1 %v4726_v52  ;;  %4455 = vmatpush3.bf16.msra.mxu0 %v4727_v2 }
 0x9d4   : > { %4434 = vmatprep.subr.bf16.mxu1 %v4728_v23  ;;  %4456 = vmatprep.subr.bf16.mxu0 %v4729_v56 }
 0x9d5   : > { %v2432_v53 = vpop.f32.mrb[40].mxu1  ;;  %v2473_v54 = vpop.f32.mrb[28].mxu0 }
 0x9d6   : > { %v2433_v55 = vadd.f32 %v2432_v53, %v1483_v57  ;;  %v2474_v0 = vadd.f32 %v2473_v54, %v1491_v58  ;;  %v2434_v30 = vpop.f32.mrb[41].mxu1  ;;  %v2475_v45 = vpop.f32.mrb[29].mxu0 }
 0x9d7   : > { %v2435_v32 = vadd.f32 %v2434_v30, %v1487_v59  ;;  %v2476_v1 = vadd.f32 %v2475_v45, %v1495_v62  ;;  %v2436_v61 = vpop.f32.mrb[42].mxu1  ;;  %v2477_v60 = vpop.f32.mrb[30].mxu0  ;;  %4435 = vmatpush3.bf16.msra.mxu1 %v4730_v63  ;;  %4457 = vmatpush3.bf16.msra.mxu0 %v4731_v19 }
 0x9d8   : > { %v2492_v5 = vmax.f32 %v2433_v55, 0.0  ;;  %v2494_v6 = vmax.f32 %v2474_v0, 0.0  ;;  %v2437_v7 = vpop.f32.mrb[43].mxu1  ;;  %v2478_v8 = vpop.f32.mrb[31].mxu0  ;;  %4436 = vmatprep.subr.bf16.mxu1 %v4732_v49  ;;  %4458 = vmatprep.subr.bf16.mxu0 %v4733_v29 }
 0x9d9   : > { %v2493_v9 = vmax.f32 %v2435_v32, 0.0  ;;  %v2495_v10 = vmax.f32 %v2476_v1, 0.0 }
 0x9da   : > { %v2508_v11 = vpack.c.bf16 %v2492_v5, %v2492_v5  ;;  %v2510_v16 = vpack.c.bf16 %v2494_v6, %v2494_v6 }
 0x9db   : > { %v2509_v12 = vpack.c.bf16 %v2493_v9, %v2493_v9  ;;  %v2511_v13 = vpack.c.bf16 %v2495_v10, %v2495_v10  ;;  %4437 = vmatpush3.bf16.msra.mxu1 %v4734_v51  ;;  %4459 = vmatpush3.bf16.msra.mxu0 %v4735_v3  ;;  %v4252_v10 = vld [vmem:[%s5955_s11] ss:$0 sm:$0xff] }
 0x9dd   : > { %3815 = vmatprep.mubr.bf16.mxu1 %v2509_v12  ;;  %3855 = vmatprep.mubr.bf16.mxu0 %v2511_v13 }
 0x9de   : > { %3816 = vmatmul.mubr.bf16.vlgmr.msra.gmra.mrb[56].mxu1 %v2508_v11  ;;  %3856 = vmatmul.mubr.bf16.vlgmr.msra.gmra.mrb[44].mxu0 %v2510_v16 }
 0xa51   : > { %v4306_v17 = vpop.f32.mrb[44].mxu1  ;;  %v4328_v18 = vpop.f32.mrb[32].mxu0 }
 0xa52   : > { %v4307_v21 = vpop.f32.mrb[45].mxu1  ;;  %v4329_v22 = vpop.f32.mrb[33].mxu0 }
 0xa53   : > { %v4308_v24 = vadd.f32 %v4307_v21, %v4306_v17  ;;  %v4330_v25 = vadd.f32 %v4329_v22, %v4328_v18  ;;  %v4309_v26 = vpop.f32.mrb[46].mxu1  ;;  %v4331_v27 = vpop.f32.mrb[34].mxu0 }
 0xa54   : > { %v4310_v28 = vpop.f32.mrb[47].mxu1  ;;  %v4332_v31 = vpop.f32.mrb[35].mxu0 }
 0xa55   : > { %v3578_v33 = vadd.f32 %v4308_v24, %v4123_v20 }
 0xa57   : > { %v3618_v34 = vadd.f32 %v4330_v25, %v3578_v33 }
 0xa71   : > { %v4350_v35 = vpop.f32.mrb[48].mxu1  ;;  %v4372_v4 = vpop.f32.mrb[36].mxu0 }
 0xa72   : > { %v4351_v36 = vpop.f32.mrb[49].mxu1  ;;  %v4373_v15 = vpop.f32.mrb[37].mxu0 }
 0xa73   : > { %v4352_v37 = vadd.f32 %v4351_v36, %v4350_v35  ;;  %v4374_v38 = vadd.f32 %v4373_v15, %v4372_v4  ;;  %v4353_v39 = vpop.f32.mrb[50].mxu1  ;;  %v4375_v40 = vpop.f32.mrb[38].mxu0 }
 0xa74   : > { %v4354_v41 = vpop.f32.mrb[51].mxu1  ;;  %v4376_v42 = vpop.f32.mrb[39].mxu0 }
 0xa75   : > { %v3658_v43 = vadd.f32 %v4352_v37, %v3618_v34 }
 0xa77   : > { %v3698_v44 = vadd.f32 %v4374_v38, %v3658_v43 }
 0xa91   : > { %v4394_v46 = vpop.f32.mrb[52].mxu1  ;;  %v4416_v47 = vpop.f32.mrb[40].mxu0 }
 0xa92   : > { %v4395_v48 = vpop.f32.mrb[53].mxu1  ;;  %v4417_v50 = vpop.f32.mrb[41].mxu0 }
 0xa93   : > { %v4396_v52 = vadd.f32 %v4395_v48, %v4394_v46  ;;  %v4418_v2 = vadd.f32 %v4417_v50, %v4416_v47  ;;  %v4397_v23 = vpop.f32.mrb[54].mxu1  ;;  %v4419_v56 = vpop.f32.mrb[42].mxu0 }
 0xa94   : > { %v4398_v57 = vpop.f32.mrb[55].mxu1  ;;  %v4420_v58 = vpop.f32.mrb[43].mxu0 }
 0xa95   : > { %v3738_v59 = vadd.f32 %v4396_v52, %v3698_v44 }
 0xa97   : > { %v3778_v62 = vadd.f32 %v4418_v2, %v3738_v59 }
 0xab1   : > { %v4438_v63 = vpop.f32.mrb[56].mxu1  ;;  %v4460_v19 = vpop.f32.mrb[44].mxu0 }
 0xab2   : > { %v4439_v49 = vpop.f32.mrb[57].mxu1  ;;  %v4461_v29 = vpop.f32.mrb[45].mxu0 }
 0xab3   : > { %v4440_v53 = vadd.f32 %v4439_v49, %v4438_v63  ;;  %v4462_v54 = vadd.f32 %v4461_v29, %v4460_v19  ;;  %v4441_v55 = vpop.f32.mrb[58].mxu1  ;;  %v4463_v0 = vpop.f32.mrb[46].mxu0 }
 0xab4   : > { %v4442_v30 = vpop.f32.mrb[59].mxu1  ;;  %v4464_v45 = vpop.f32.mrb[47].mxu0 }
 0xab5   : > { %v3818_v32 = vadd.f32 %v4440_v53, %v3778_v62 }
 0xab7   : > { %v3858_v1 = vadd.f32 %v4462_v54, %v3818_v32 }
 0xab9   : > { %v3863_v61 = vadd.f32 %v3858_v1, %v5201_v14  ;;  %v4253_v14 = vld [vmem:[%s5956_s12] ss:$0 sm:$0xff] }
 0xabb   : > { %3866 = vadd.xlane.f32.xlu0 %v3863_v61 }
 0xb48   : > { %v3867_v60 = vpop.xlane.xlu0 %3866 }
 0xb49   : > { %v3868_v51 = vmul.f32 0.0078125, %v3867_v60 }
 0xb4b   : > { %v3869_v3 = vsub.f32 %v3863_v61, %v3868_v51 }
 0xb4d   : > { %v3870_v5 = vmul.f32 %v3869_v3, %v3869_v3 }
 0xb4f   : > { %3871 = vadd.xlane.f32.xlu1 %v3870_v5 }
 0xbdc   : > { %v3872_v6 = vpop.xlane.xlu1 %3871 }
 0xbdd   : > { %v3873_v7 = vmul.f32 0.0078125, %v3872_v6 }
 0xbdf   : > { %v3874_v8 = vadd.f32 1e-05, %v3873_v7 }
 0xbe1   : > { %4754 = vrsqrt.f32 %v3874_v8 }
 0xbeb   : > { %v4755_v9 = vpop.eup %4754 }
 0xbec   : > { %v3876_v12 = vmul.f32 %v4755_v9, %v3869_v3 }
 0xbee   : > { %v3883_v13 = vmul.f32 %v4252_v10, %v3876_v12 }
 0xbf0   : > { %v3890_v11 = vadd.f32 %v4253_v14, %v3883_v13 }
 0xbf2   : > { %3891 = vst [vmem:[%s435_s29] sm:$0xff] %v3890_v11 }
 0xbf3 PF: > { %s23_s25 = sadd.s32 1, %s4762_s25  }
 0xbf4   : > { %p20_p4 = scmp.ge.s32.totalorder %s23_s25, 4  }
 0xbf6   :  { %22 = sbr.rel (!%p20_p4) target bundleno = 1 (0x1), region = 102 }

</bundles_post_ra>
